<compile_context>
chip_gen: v5e
topology: v5e:2x2
jax: 0.10.0
libtpu: 0.0.40
codegen_flags: <defaults>
</compile_context>

<pallas_src>
import jax
import jax.numpy as jnp
from jax.experimental import pallas as pl
from jax.experimental.pallas import tpu as pltpu


def _round_up(x, m):
    return (x + m - 1) // m * m


def _cdiv(a, b):
    return (a + b - 1) // b


def spatial_encoder_kernel(x_ref, w1_ref, b1_ref, w2_ref, b2_ref, out_ref):
    """Fused out = relu(x @ W1 + b1) @ W2 + b2 for one row tile (all f32)."""
    x = x_ref[...]                                                   # [tile, in_c]
    h = jnp.dot(x, w1_ref[...],
                preferred_element_type=jnp.float32,
                precision=jax.lax.Precision.HIGHEST)                 # [tile, hid_c]
    h = jnp.maximum(h + b1_ref[...], 0.0)                            # bias + ReLU (VPU)
    y = jnp.dot(h, w2_ref[...],
                preferred_element_type=jnp.float32,
                precision=jax.lax.Precision.HIGHEST)                 # [tile, out_c]
    out_ref[...] = (y + b2_ref[...]).astype(out_ref.dtype)


def _choose_tile(rows, tile_rows):
    """Pick a 16-aligned row tile; >=2 grid steps so v7x's 2 TCs both get work."""
    rows_aligned = _round_up(max(rows, 1), 16)
    min_steps = 2 if rows_aligned >= 32 else 1          # tiny inputs stay grid=1
    n_steps = max(min_steps, _cdiv(rows_aligned, tile_rows))
    tile = _round_up(_cdiv(rows_aligned, n_steps), 16)
    return tile, tile * n_steps


def spatial_encoder(x, edge_index, w1, b1, w2, b2, *, k=1, tile_rows=1024):
    """Pallas SpatialEncoder forward.

    x: [..., N, in_channels] (all leading batch/time/node dims are folded into rows).
    edge_index: accepted for API parity but unused (ChebConv K=1 -> identity prop).
    w1: [in_c, hid_c], b1: [hid_c] or [1, hid_c], w2: [hid_c, out_c], b2: [out_c] or [1, out_c].
    Returns [..., N, out_channels] in float32.
    """
    if k != 1:
        # TODO(synk): K>1 Chebyshev propagation over edge_index not implemented.
        raise NotImplementedError("SpatialEncoder Pallas kernel only supports K=1 ChebConv.")
    del edge_index  # K=1: T_0(L~) = I, graph structure never touches the output.

    lead_shape = x.shape[:-1]
    in_c = x.shape[-1]
    hid_c = w1.shape[1]
    out_c = w2.shape[1]

    rows = 1
    for d in lead_shape:
        rows *= d
    x2 = x.reshape(rows, in_c).astype(jnp.float32)

    tile, padded_rows = _choose_tile(rows, tile_rows)
    if padded_rows != rows:
        x2 = jnp.pad(x2, ((0, padded_rows - rows), (0, 0)))

    w1f = w1.astype(jnp.float32)
    b1f = b1.reshape(1, hid_c).astype(jnp.float32)
    w2f = w2.astype(jnp.float32)
    b2f = b2.reshape(1, out_c).astype(jnp.float32)

    grid = (padded_rows // tile,)
    flops = 2 * padded_rows * (in_c * hid_c + hid_c * out_c)
    bytes_accessed = 4 * (padded_rows * (in_c + out_c)
                          + w1f.size + b1f.size + w2f.size + b2f.size)

    out = pl.pallas_call(
        spatial_encoder_kernel,
        out_shape=jax.ShapeDtypeStruct((padded_rows, out_c), jnp.float32),
        grid_spec=pltpu.PrefetchScalarGridSpec(
            num_scalar_prefetch=0,
            grid=grid,
            in_specs=[
                pl.BlockSpec((tile, in_c), lambda i: (i, 0)),    # x row tiles (streamed)
                pl.BlockSpec((in_c, hid_c), lambda i: (0, 0)),   # W1 (VMEM resident)
                pl.BlockSpec((1, hid_c), lambda i: (0, 0)),      # b1 (resident)
                pl.BlockSpec((hid_c, out_c), lambda i: (0, 0)),  # W2 (resident)
                pl.BlockSpec((1, out_c), lambda i: (0, 0)),      # b2 (resident)
            ],
            out_specs=pl.BlockSpec((tile, out_c), lambda i: (i, 0)),  # unpadded, lane = full out_c
        ),
        compiler_params=pltpu.CompilerParams(
            dimension_semantics=("parallel",),
            vmem_limit_bytes=32 * 1024 * 1024,   # explicit; actual per-step use << 1 MiB
        ),
        cost_estimate=pl.CostEstimate(
            flops=flops, transcendentals=0, bytes_accessed=bytes_accessed),
    )(x2, w1f, b1f, w2f, b2f)

    out = out[:rows]
    return out.reshape(*lead_shape, out_c)


def reference(x, w1, b1, w2, b2):
    h = jnp.maximum(x @ w1 + b1.reshape(1, -1), 0.0)
    return h @ w2 + b2.reshape(1, -1)


if __name__ == "__main__":
    # Small shapes consistent with the module's forward (LSTM-GCN usage):
    # B graphs x T timesteps x N nodes, in_channels -> hidden -> out, k=1.
    B, T, N, IN_C, HID_C, OUT_C = 2, 8, 64, 4, 32, 8

    key = jax.random.PRNGKey(0)
    kx, kw1, kb1, kw2, kb2 = jax.random.split(key, 5)

    x = jax.random.normal(kx, (B, T, N, IN_C), dtype=jnp.float32)

    # ChebConv K=1: one weight + bias per layer, stored as [C_in, C_out]
    # (i.e. the PyTorch weight, transposed).
    w1 = jax.random.normal(kw1, (IN_C, HID_C), dtype=jnp.float32) * 0.2
    b1 = jax.random.normal(kb1, (1, HID_C), dtype=jnp.float32) * 0.1
    w2 = jax.random.normal(kw2, (HID_C, OUT_C), dtype=jnp.float32) * 0.2
    b2 = jax.random.normal(kb2, (1, OUT_C), dtype=jnp.float32) * 0.1

    # Ring-graph edge_index (int32 [2, E]) — unused for K=1, kept for parity.
    src = jnp.arange(N, dtype=jnp.int32)
    dst = (src + 1) % N
    edge_index = jnp.stack([src, dst], axis=0)

    out = spatial_encoder(x, edge_index, w1, b1, w2, b2)
    out = jax.block_until_ready(out)

    ref = reference(x, w1, b1, w2, b2)
    assert out.shape == (B, T, N, OUT_C)
    max_err = float(jnp.max(jnp.abs(out - ref)))
    assert max_err < 2e-2, f"max abs err {max_err}"
    print("KERNEL_OK")
</pallas_src>

<mosaic_0001>
module attributes {stable_mosaic.version = 11 : i64} {
  func.func @spatial_encoder_kernel(%arg0: i32, %arg1: memref<512x4xf32, #tpu.memory_space<vmem>>, %arg2: memref<4x32xf32, #tpu.memory_space<vmem>>, %arg3: memref<1x32xf32, #tpu.memory_space<vmem>>, %arg4: memref<32x8xf32, #tpu.memory_space<vmem>>, %arg5: memref<1x8xf32, #tpu.memory_space<vmem>>, %arg6: memref<512x8xf32, #tpu.memory_space<vmem>>) attributes {dimension_semantics = [#tpu.dimension_semantics<parallel>], iteration_bounds = array<i64: 2>, scalar_prefetch = 0 : i64, scratch_operands = 0 : i64, tpu.core_type = #tpu.core_type<tc>, window_params = [{transform_indices = @transform_0, window_bounds = array<i64: 512, 4>}, {pipeline_mode = #tpu.pipeline_mode<synchronous>, transform_indices = @transform_1, window_bounds = array<i64: 4, 32>}, {pipeline_mode = #tpu.pipeline_mode<synchronous>, transform_indices = @transform_2, window_bounds = array<i64: 1, 32>}, {pipeline_mode = #tpu.pipeline_mode<synchronous>, transform_indices = @transform_3, window_bounds = array<i64: 32, 8>}, {pipeline_mode = #tpu.pipeline_mode<synchronous>, transform_indices = @transform_4, window_bounds = array<i64: 1, 8>}, {transform_indices = @transform_5, window_bounds = array<i64: 512, 8>}]} {
    %c0 = arith.constant 0 : index
    %c0_0 = arith.constant 0 : index
    %0 = vector.load %arg1[%c0, %c0_0] : memref<512x4xf32, #tpu.memory_space<vmem>>, vector<512x4xf32>
    %c0_1 = arith.constant 0 : index
    %c0_2 = arith.constant 0 : index
    %1 = vector.load %arg2[%c0_1, %c0_2] : memref<4x32xf32, #tpu.memory_space<vmem>>, vector<4x32xf32>
    %cst = arith.constant dense<0.000000e+00> : vector<512x32xf32>
    %2 = tpu.matmul %0, %1, %cst {dimension_numbers = #tpu.dot_dimension_numbers<[1], [0], [0], [1], [0, 0, 1, 1], [], []>, precision = #tpu.contract_precision<fp32>} : vector<512x4xf32>, vector<4x32xf32>, vector<512x32xf32> -> vector<512x32xf32>
    %c0_3 = arith.constant 0 : index
    %c0_4 = arith.constant 0 : index
    %3 = vector.load %arg3[%c0_3, %c0_4] : memref<1x32xf32, #tpu.memory_space<vmem>>, vector<1x32xf32>
    %4 = vector.broadcast %3 : vector<1x32xf32> to vector<512x32xf32>
    %5 = arith.addf %2, %4 : vector<512x32xf32>
    %cst_5 = arith.constant 0.000000e+00 : f32
    %6 = vector.broadcast %cst_5 : f32 to vector<512x32xf32>
    %7 = arith.maximumf %5, %6 : vector<512x32xf32>
    %c0_6 = arith.constant 0 : index
    %c0_7 = arith.constant 0 : index
    %8 = vector.load %arg4[%c0_6, %c0_7] : memref<32x8xf32, #tpu.memory_space<vmem>>, vector<32x8xf32>
    %cst_8 = arith.constant dense<0.000000e+00> : vector<512x8xf32>
    %9 = tpu.matmul %7, %8, %cst_8 {dimension_numbers = #tpu.dot_dimension_numbers<[1], [0], [0], [1], [0, 0, 1, 1], [], []>, precision = #tpu.contract_precision<fp32>} : vector<512x32xf32>, vector<32x8xf32>, vector<512x8xf32> -> vector<512x8xf32>
    %c0_9 = arith.constant 0 : index
    %c0_10 = arith.constant 0 : index
    %10 = vector.load %arg5[%c0_9, %c0_10] : memref<1x8xf32, #tpu.memory_space<vmem>>, vector<1x8xf32>
    %11 = vector.broadcast %10 : vector<1x8xf32> to vector<512x8xf32>
    %12 = arith.addf %9, %11 : vector<512x8xf32>
    %c0_11 = arith.constant 0 : index
    %c0_12 = arith.constant 0 : index
    %13 = vector.load %arg6[%c0_11, %c0_12] : memref<512x8xf32, #tpu.memory_space<vmem>>, vector<512x8xf32>
    tpu.vector_store %arg6[%c0_11, %c0_12], %12 {strides = array<i32>} : memref<512x8xf32, #tpu.memory_space<vmem>>, vector<512x8xf32>,
    return
  }
  func.func @transform_0(%arg0: i32) -> (i32, i32) {
    %c0_i32 = arith.constant 0 : i32
    %c0_i32_0 = arith.constant 0 : i32
    return %arg0, %c0_i32 : i32, i32
  }
  func.func @transform_1(%arg0: i32) -> (i32, i32) {
    %c0_i32 = arith.constant 0 : i32
    %c0_i32_0 = arith.constant 0 : i32
    %c0_i32_1 = arith.constant 0 : i32
    return %c0_i32, %c0_i32_0 : i32, i32
  }
  func.func @transform_2(%arg0: i32) -> (i32, i32) {
    %c0_i32 = arith.constant 0 : i32
    %c0_i32_0 = arith.constant 0 : i32
    %c0_i32_1 = arith.constant 0 : i32
    return %c0_i32, %c0_i32_0 : i32, i32
  }
  func.func @transform_3(%arg0: i32) -> (i32, i32) {
    %c0_i32 = arith.constant 0 : i32
    %c0_i32_0 = arith.constant 0 : i32
    %c0_i32_1 = arith.constant 0 : i32
    return %c0_i32, %c0_i32_0 : i32, i32
  }
  func.func @transform_4(%arg0: i32) -> (i32, i32) {
    %c0_i32 = arith.constant 0 : i32
    %c0_i32_0 = arith.constant 0 : i32
    %c0_i32_1 = arith.constant 0 : i32
    return %c0_i32, %c0_i32_0 : i32, i32
  }
  func.func @transform_5(%arg0: i32) -> (i32, i32) {
    %c0_i32 = arith.constant 0 : i32
    %c0_i32_0 = arith.constant 0 : i32
    return %arg0, %c0_i32 : i32, i32
  }
}

</mosaic_0001>

<bundles_post_ra>
// kernel: tpu_custom_call.1
= control target key start
LH: loop header
LB: loop body
LE: loop exit
PB: predicated region body
PF: predicated region fallthrough
CT: control target
= control target key end

     0   :  { %s5181_s18 = smov 0   ;;  %s7813_s0 = inlined_call_operand.vmem [shape: f32[1024,4], index: 0, kind: input, shape index: {}]   ;;  %s7814_s1 = inlined_call_operand.vmem [shape: f32[4,32], index: 1, kind: input, shape index: {}]   ;;  %s7815_s2 = inlined_call_operand.vmem [shape: f32[1,32], index: 2, kind: input, shape index: {}]   ;;  %s7816_s3 = inlined_call_operand.vmem [shape: f32[32,8], index: 3, kind: input, shape index: {}]   ;;  %s7817_s4 = inlined_call_operand.vmem [shape: f32[1,8], index: 4, kind: input, shape index: {}]   ;;  %s7818_s5 = inlined_call_operand.vmem [shape: f32[1024,8], index: 5, kind: output, shape index: {}]  }
   0x1 LB: > { %s5117_s19 = sadd.s32 4294967295, %s5149_s18   ;;  %p5121_p0 = scmp.ge.s32.totalorder %s5149_s18, 1  ;;  %s5149_s18 = sphi %s5181_s18, %s15_s18  }
   0x2   : > { %p188_p1 = scmp.lt.s32.totalorder %s5149_s18, 3 }
   0x4   : > { %p189_p2 = pnand %p5121_p0, %p188_p1 }
   0x6   : > { %192 = sbr.rel (%p189_p2) target bundleno = 1837 (0x72d), region = 40 }
   0xb   : > { %v292_v0 = vld [vmem:[%s7814_s1] sm:$0xf]  ;;  %vm490_vm0 = vcmask 1043456   ;;  %s5122_s22 = sshll.u32 %s5117_s19, 6  ;;  %vm297_vm1 = vcmask 31744   ;;  %vm2665_vm2 = vcmask 261120  }
   0xc   : > { %v492_v1 = vsel %vm490_vm0, %v292_v0, 0  ;;  %p217_p3 = scmp.lt.s32.totalorder %s5122_s22, 127  ;;  %vm4996_vm3 = vcmask 64512  }
   0xd   : > { %v509_v2 = vand.u32 4294901760, %v492_v1 }
   0xe   : > { %s8816_s22 = smov (!%p217_p3, %s5122_s22), 127 }
   0xf   : > { %v1040_v3 = vsub.f32 %v492_v1, %v509_v2  ;;  %510 = vmatpush.msra.mxu0 %v509_v2  ;;  %1657 = vmatpush.msra.mxu3 %v509_v2  ;;  %s5123_s23 = sshll.u32 %s8816_s22, 3 }
  0x10   : > { %s5200_s26 = scalar_lea.vmem %s7813_s0, %s5123_s23  ;;  %s7376_s29 = scalar_lea.vmem %s7818_s5, %s5123_s23 }
  0x11   : > { %v1041_v4 = vand.u32 4294901760, %v1040_v3  ;;  %1319 = vmatpush.msra.mxu2 %v1040_v3  ;;  %v228_v5 = vld [vmem:[%s5200_s26] sm:$0xff]  ;;  %v229_v6 = vld [vmem:[%s5200_s26 + $0x8] sm:$0xff]  ;;  %v230_v12 = vld [vmem:[%s5200_s26 + $0x10] sm:$0xff] }
  0x12   : > { %v299_v8 = vsel %vm297_vm1, %v228_v5, 0  ;;  %v302_v9 = vsel %vm297_vm1, %v229_v6, 0  ;;  %v305_v16 = vsel %vm297_vm1, %v230_v12, 0  ;;  %v231_v22 = vld [vmem:[%s5200_s26 + $0x18] sm:$0xff]  ;;  %v232_v29 = vld [vmem:[%s5200_s26 + $0x20] sm:$0xff]  ;;  %v233_v36 = vld [vmem:[%s5200_s26 + $0x28] sm:$0xff] }
  0x13   : > { %v1042_v7 = vsub.f32 %v1040_v3, %v1041_v4  ;;  %2061 = vmatpush.msrb.mxu0 %v1041_v4  ;;  %v5206_v10 = vand.u32 4294901760, %v299_v8  ;;  %v5208_v11 = vand.u32 4294901760, %v302_v9  ;;  %v5215_v20 = vand.u32 4294901760, %v305_v16  ;;  %v234_v43 = vld [vmem:[%s5200_s26 + $0x30] sm:$0xff]  ;;  %v235_v50 = vld [vmem:[%s5200_s26 + $0x38] sm:$0xff]  ;;  %v236_v57 = vld [vmem:[%s5200_s26 + $0x40] sm:$0xff] }
  0x14   : > { %v308_v25 = vsel %vm297_vm1, %v231_v22, 0  ;;  %v311_v32 = vsel %vm297_vm1, %v232_v29, 0  ;;  %v314_v39 = vsel %vm297_vm1, %v233_v36, 0  ;;  %v317_v46 = vsel %vm297_vm1, %v234_v43, 0  ;;  %v237_v0 = vld [vmem:[%s5200_s26 + $0x48] sm:$0xff] }
  0x15   : > { %v1043_v13 = vand.u32 4294901760, %v1042_v7  ;;  %v512_v14 = vsub.f32 %v299_v8, %v5206_v10  ;;  %v520_v15 = vsub.f32 %v302_v9, %v5208_v11  ;;  %v528_v24 = vsub.f32 %v305_v16, %v5215_v20  ;;  %v238_v7 = vld [vmem:[%s5200_s26 + $0x50] sm:$0xff]  ;;  %v239_v16 = vld [vmem:[%s5200_s26 + $0x58] sm:$0xff] }
  0x16   : > { %v5221_v28 = vand.u32 4294901760, %v308_v25  ;;  %v5227_v35 = vand.u32 4294901760, %v311_v32  ;;  %v5233_v42 = vand.u32 4294901760, %v314_v39  ;;  %v5239_v49 = vand.u32 4294901760, %v317_v46 }
  0x17   : > { %1044 = vmatpush.msra.mxu1 %v1043_v13  ;;  %1322 = vmatmul.f32.vlgmr.msra.gmra.mxu2 %v512_v14  ;;  %v513_v17 = vand.u32 4294901760, %v512_v14  ;;  %v521_v19 = vand.u32 4294901760, %v520_v15  ;;  %v529_v27 = vand.u32 4294901760, %v528_v24  ;;  %v320_v53 = vsel %vm297_vm1, %v235_v50, 0 }
  0x18   : > { %1046 = vmatmul.f32.vlgmr.msra.gmra.mxu1 %v5206_v10  ;;  %v536_v31 = vsub.f32 %v308_v25, %v5221_v28  ;;  %v544_v38 = vsub.f32 %v311_v32, %v5227_v35  ;;  %v552_v45 = vsub.f32 %v314_v39, %v5233_v42  ;;  %v560_v52 = vsub.f32 %v317_v46, %v5239_v49  ;;  %v241_v32 = vld [vmem:[%s5200_s26 + $0x68] sm:$0xff] }
  0x19   : > { %2335 = vmatpush.msrb.mxu1 %v509_v2  ;;  %v514_v18 = vsub.f32 %v512_v14, %v513_v17  ;;  %1661 = vmatmul.f32.vlgmr.msra.gmra.mxu3 %v513_v17  ;;  %v522_v23 = vsub.f32 %v520_v15, %v521_v19  ;;  %v530_v30 = vsub.f32 %v528_v24, %v529_v27  ;;  %v5245_v56 = vand.u32 4294901760, %v320_v53 }
  0x1a   : > { %v537_v34 = vand.u32 4294901760, %v536_v31  ;;  %v545_v41 = vand.u32 4294901760, %v544_v38  ;;  %v553_v48 = vand.u32 4294901760, %v552_v45  ;;  %v561_v55 = vand.u32 4294901760, %v560_v52 }
  0x1b   : > { %v515_v21 = vand.u32 4294901760, %v514_v18  ;;  %v523_v26 = vand.u32 4294901760, %v522_v23  ;;  %v531_v33 = vand.u32 4294901760, %v530_v30  ;;  %v568_v59 = vsub.f32 %v320_v53, %v5245_v56 }
  0x1c   : > { %v538_v37 = vsub.f32 %v536_v31, %v537_v34  ;;  %v546_v44 = vsub.f32 %v544_v38, %v545_v41  ;;  %v554_v51 = vsub.f32 %v552_v45, %v553_v48  ;;  %v562_v58 = vsub.f32 %v560_v52, %v561_v55 }
  0x1d   : > { %516 = vmatmul.f32.vlgmr.msra.gmra.mxu0 %v515_v21  ;;  %v323_v60 = vsel %vm297_vm1, %v236_v57, 0  ;;  %v569_v62 = vand.u32 4294901760, %v568_v59  ;;  %v326_v3 = vsel %vm297_vm1, %v237_v0, 0  ;;  %v329_v12 = vsel %vm297_vm1, %v238_v7, 0  ;;  %v244_v57 = vld [vmem:[%s5200_s26 + $0x80] sm:$0xff] }
  0x1e   : > { %v539_v40 = vand.u32 4294901760, %v538_v37  ;;  %v547_v47 = vand.u32 4294901760, %v546_v44  ;;  %v555_v54 = vand.u32 4294901760, %v554_v51  ;;  %v563_v61 = vand.u32 4294901760, %v562_v58 }
  0x1f   : > { %1327 = vmatmul.f32.gmra.mxu2 %v520_v15  ;;  %v5251_v63 = vand.u32 4294901760, %v323_v60  ;;  %v570_v1 = vsub.f32 %v568_v59, %v569_v62  ;;  %v5257_v6 = vand.u32 4294901760, %v326_v3  ;;  %v5263_v15 = vand.u32 4294901760, %v329_v12 }
  0x20   : > { %1050 = vmatmul.f32.gmra.mxu1 %v5208_v11  ;;  %v338_v36 = vsel %vm297_vm1, %v241_v32, 0 }
  0x21   : > { %1667 = vmatmul.f32.gmra.mxu3 %v521_v19  ;;  %v576_v2 = vsub.f32 %v323_v60, %v5251_v63  ;;  %v571_v4 = vand.u32 4294901760, %v570_v1  ;;  %v584_v9 = vsub.f32 %v326_v3, %v5257_v6  ;;  %v592_v18 = vsub.f32 %v329_v12, %v5263_v15  ;;  %v245_v1 = vld [vmem:[%s5200_s26 + $0x88] sm:$0xff] }
  0x22   : > { %v332_v19 = vsel %vm297_vm1, %v239_v16, 0  ;;  %v5281_v39 = vand.u32 4294901760, %v338_v36  ;;  %v347_v60 = vsel %vm297_vm1, %v244_v57, 0  ;;  %v350_v7 = vsel %vm297_vm1, %v245_v1, 0  ;;  %v246_v16 = vld [vmem:[%s5200_s26 + $0x90] sm:$0xff] }
  0x23   : > { %v577_v5 = vand.u32 4294901760, %v576_v2  ;;  %v585_v14 = vand.u32 4294901760, %v584_v9  ;;  %v593_v22 = vand.u32 4294901760, %v592_v18  ;;  %v5269_v23 = vand.u32 4294901760, %v332_v19 }
  0x24   : > { %v616_v43 = vsub.f32 %v338_v36, %v5281_v39  ;;  %v5299_v0 = vand.u32 4294901760, %v347_v60 }
  0x25   : > { %524 = vmatmul.f32.gmra.mxu0 %v523_v26  ;;  %v578_v8 = vsub.f32 %v576_v2, %v577_v5  ;;  %v586_v17 = vsub.f32 %v584_v9, %v585_v14  ;;  %v594_v25 = vsub.f32 %v592_v18, %v593_v22  ;;  %v600_v26 = vsub.f32 %v332_v19, %v5269_v23 }
  0x26   : > { %v617_v46 = vand.u32 4294901760, %v616_v43 }
  0x27   : > { %1332 = vmatmul.f32.gmra.mxu2 %v528_v24  ;;  %v579_v13 = vand.u32 4294901760, %v578_v8  ;;  %v587_v21 = vand.u32 4294901760, %v586_v17  ;;  %v240_v24 = vld [vmem:[%s5200_s26 + $0x60] sm:$0xff]  ;;  %v595_v29 = vand.u32 4294901760, %v594_v25  ;;  %v601_v30 = vand.u32 4294901760, %v600_v26 }
  0x28   : > { %1054 = vmatmul.f32.gmra.mxu1 %v5215_v20  ;;  %v618_v50 = vsub.f32 %v616_v43, %v617_v46  ;;  %v5329_v25 = vld [vmem:[%s7815_s2] ss:$0 sm:$0xff] }
  0x29   : > { %1673 = vmatmul.f32.gmra.mxu3 %v529_v27  ;;  %v335_v27 = vsel %vm297_vm1, %v240_v24, 0  ;;  %v353_v24 = vsel %vm297_vm1, %v246_v16, 0 }
  0x2a   : > { %v619_v53 = vand.u32 4294901760, %v618_v50 }
  0x2d   : > { %532 = vmatmul.f32.gmra.mxu0 %v531_v33  ;;  %v602_v33 = vsub.f32 %v600_v26, %v601_v30 }
  0x2f   : > { %1337 = vmatmul.f32.gmra.mxu2 %v536_v31  ;;  %v5275_v31 = vand.u32 4294901760, %v335_v27  ;;  %v603_v37 = vand.u32 4294901760, %v602_v33 }
  0x30   : > { %1058 = vmatmul.f32.gmra.mxu1 %v5221_v28 }
  0x31   : > { %1679 = vmatmul.f32.gmra.mxu3 %v537_v34  ;;  %v608_v34 = vsub.f32 %v335_v27, %v5275_v31 }
  0x35   : > { %540 = vmatmul.f32.gmra.mxu0 %v539_v40  ;;  %v242_v40 = vld [vmem:[%s5200_s26 + $0x70] sm:$0xff] }
  0x36   : > { %v341_v44 = vsel %vm297_vm1, %v242_v40, 0 }
  0x37   : > { %1342 = vmatmul.f32.gmra.mxu2 %v544_v38  ;;  %v609_v38 = vand.u32 4294901760, %v608_v34 }
  0x38   : > { %1062 = vmatmul.f32.gmra.mxu1 %v5227_v35 }
  0x39   : > { %1685 = vmatmul.f32.gmra.mxu3 %v545_v41  ;;  %v610_v41 = vsub.f32 %v608_v34, %v609_v38 }
  0x3d   : > { %548 = vmatmul.f32.gmra.mxu0 %v547_v47  ;;  %v5287_v47 = vand.u32 4294901760, %v341_v44 }
  0x3f   : > { %1347 = vmatmul.f32.gmra.mxu2 %v552_v45  ;;  %v611_v45 = vand.u32 4294901760, %v610_v41  ;;  %v624_v51 = vsub.f32 %v341_v44, %v5287_v47 }
  0x40   : > { %1066 = vmatmul.f32.gmra.mxu1 %v5233_v42 }
  0x41   : > { %1691 = vmatmul.f32.gmra.mxu3 %v553_v48  ;;  %v243_v48 = vld [vmem:[%s5200_s26 + $0x78] sm:$0xff] }
  0x45   : > { %556 = vmatmul.f32.gmra.mxu0 %v555_v54  ;;  %v625_v54 = vand.u32 4294901760, %v624_v51 }
  0x47   : > { %1352 = vmatmul.f32.gmra.mxu2 %v560_v52  ;;  %v344_v52 = vsel %vm297_vm1, %v243_v48, 0  ;;  %v626_v58 = vsub.f32 %v624_v51, %v625_v54 }
  0x48   : > { %1070 = vmatmul.f32.gmra.mxu1 %v5239_v49 }
  0x49   : > { %1697 = vmatmul.f32.gmra.mxu3 %v561_v55  ;;  %v5293_v55 = vand.u32 4294901760, %v344_v52 }
  0x4d   : > { %564 = vmatmul.f32.gmra.mxu0 %v563_v61  ;;  %v627_v61 = vand.u32 4294901760, %v626_v58 }
  0x4f   : > { %1357 = vmatmul.f32.gmra.mxu2 %v568_v59  ;;  %v632_v59 = vsub.f32 %v344_v52, %v5293_v55 }
  0x50   : > { %1074 = vmatmul.f32.gmra.mxu1 %v5245_v56 }
  0x51   : > { %1703 = vmatmul.f32.gmra.mxu3 %v569_v62  ;;  %v633_v62 = vand.u32 4294901760, %v632_v59 }
  0x53   : > { %v634_v3 = vsub.f32 %v632_v59, %v633_v62 }
  0x55   : > { %572 = vmatmul.f32.gmra.mxu0 %v571_v4  ;;  %v640_v4 = vsub.f32 %v347_v60, %v5299_v0 }
  0x57   : > { %1362 = vmatmul.f32.gmra.mxu2 %v576_v2  ;;  %v2660_v2 = vld [vmem:[%s7816_s3 + $0x18] sm:$0xff]  ;;  %v641_v12 = vand.u32 4294901760, %v640_v4 }
  0x58   : > { %1078 = vmatmul.f32.gmra.mxu1 %v5251_v63 }
  0x59   : > { %1709 = vmatmul.f32.gmra.mxu3 %v577_v5  ;;  %v5306_v5 = vand.u32 4294901760, %v2660_v2  ;;  %v642_v19 = vsub.f32 %v640_v4, %v641_v12 }
  0x5b   : > { %v5311_v8 = vsub.f32 %v2660_v2, %v5306_v5  ;;  %2871 = vmatpush.msrb.mxu2 %v5306_v5  ;;  %4042 = vmatpush.msra.mxu1 %v5306_v5 }
  0x5d   : > { %580 = vmatmul.f32.gmra.mxu0 %v579_v13  ;;  %v5315_v13 = vand.u32 4294901760, %v350_v7 }
  0x5e   : > { %3698 = vmatpush.msra.mxu0 %v5311_v8 }
  0x5f   : > { %1367 = vmatmul.f32.gmra.mxu2 %v584_v9  ;;  %v635_v9 = vand.u32 4294901760, %v634_v3 }
  0x60   : > { %1082 = vmatmul.f32.gmra.mxu1 %v5257_v6 }
  0x61   : > { %1715 = vmatmul.f32.gmra.mxu3 %v585_v14  ;;  %v7819_v14 = vand.u32 4294901760, %v5311_v8 }
  0x63   : > { %v3406_v17 = vsub.f32 %v5311_v8, %v7819_v14 }
  0x65   : > { %588 = vmatmul.f32.gmra.mxu0 %v587_v21  ;;  %v648_v21 = vsub.f32 %v350_v7, %v5315_v13 }
  0x67   : > { %1372 = vmatmul.f32.gmra.mxu2 %v592_v18  ;;  %v649_v27 = vand.u32 4294901760, %v648_v21 }
  0x68   : > { %1086 = vmatmul.f32.gmra.mxu1 %v5263_v15 }
  0x69   : > { %1721 = vmatmul.f32.gmra.mxu3 %v593_v22  ;;  %v3407_v22 = vand.u32 4294901760, %v3406_v17  ;;  %v650_v40 = vsub.f32 %v648_v21, %v649_v27  ;;  %v249_v17 = vld [vmem:[%s5200_s26 + $0xa8] sm:$0xff] }
  0x6b   : > { %3408 = vmatpush.msrb.mxu3 %v3407_v22 }
  0x6d   : > { %596 = vmatmul.f32.gmra.mxu0 %v595_v29  ;;  %v5331_v29 = vand.u32 4294901760, %v353_v24 }
  0x6f   : > { %1377 = vmatmul.f32.gmra.mxu2 %v600_v26  ;;  %v643_v26 = vand.u32 4294901760, %v642_v19  ;;  %v656_v41 = vsub.f32 %v353_v24, %v5331_v29 }
  0x70   : > { %1090 = vmatmul.f32.gmra.mxu1 %v5269_v23 }
  0x71   : > { %1727 = vmatmul.f32.gmra.mxu3 %v601_v30  ;;  %v657_v48 = vand.u32 4294901760, %v656_v41 }
  0x73   : > { %v658_v60 = vsub.f32 %v656_v41, %v657_v48 }
  0x75   : > { %604 = vmatmul.f32.gmra.mxu0 %v603_v37  ;;  %v659_v3 = vand.u32 4294901760, %v658_v60 }
  0x77   : > { %1382 = vmatmul.f32.gmra.mxu2 %v608_v34  ;;  %v247_v34 = vld [vmem:[%s5200_s26 + $0x98] sm:$0xff] }
  0x78   : > { %1094 = vmatmul.f32.gmra.mxu1 %v5275_v31 }
  0x79   : > { %1733 = vmatmul.f32.gmra.mxu3 %v609_v38 }
  0x7d   : > { %612 = vmatmul.f32.gmra.mxu0 %v611_v45 }
  0x7f   : > { %1387 = vmatmul.f32.gmra.mxu2 %v616_v43  ;;  %v356_v43 = vsel %vm297_vm1, %v247_v34, 0 }
  0x80   : > { %1098 = vmatmul.f32.gmra.mxu1 %v5281_v39  ;;  %v5340_v50 = vand.u32 4294901760, %v356_v43 }
  0x81   : > { %1739 = vmatmul.f32.gmra.mxu3 %v617_v46  ;;  %v651_v46 = vand.u32 4294901760, %v650_v40  ;;  %v250_v40 = vld [vmem:[%s5200_s26 + $0xb0] sm:$0xff] }
  0x85   : > { %620 = vmatmul.f32.gmra.mxu0 %v619_v53 }
  0x87   : > { %1392 = vmatmul.f32.gmra.mxu2 %v624_v51 }
  0x88   : > { %1102 = vmatmul.f32.gmra.mxu1 %v5287_v47 }
  0x89   : > { %1745 = vmatmul.f32.gmra.mxu3 %v625_v54  ;;  %v248_v54 = vld [vmem:[%s5200_s26 + $0xa0] sm:$0xff] }
  0x8d   : > { %628 = vmatmul.f32.gmra.mxu0 %v627_v61  ;;  %v664_v61 = vsub.f32 %v356_v43, %v5340_v50 }
  0x8f   : > { %1397 = vmatmul.f32.gmra.mxu2 %v632_v59 }
  0x90   : > { %1106 = vmatmul.f32.gmra.mxu1 %v5293_v55 }
  0x91   : > { %1751 = vmatmul.f32.gmra.mxu3 %v633_v62  ;;  %v359_v62 = vsel %vm297_vm1, %v248_v54, 0 }
  0x92   : > { %v5349_v7 = vand.u32 4294901760, %v359_v62 }
  0x94   : > { %v672_v24 = vsub.f32 %v359_v62, %v5349_v7  ;;  %v251_v62 = vld [vmem:[%s5200_s26 + $0xb8] sm:$0xff] }
  0x95   : > { %v1047_v18 = vpop.f32.mrf.mxu1  ;;  %636 = vmatmul.f32.gmra.mxu0 %v635_v9 }
  0x97   : > { %1402 = vmatmul.f32.gmra.mxu2 %v640_v4  ;;  %v665_v4 = vand.u32 4294901760, %v664_v61 }
  0x98   : > { %1110 = vmatmul.f32.gmra.mxu1 %v5299_v0 }
  0x99   : > { %1757 = vmatmul.f32.gmra.mxu3 %v641_v12  ;;  %v666_v22 = vsub.f32 %v664_v61, %v665_v4 }
  0x9a   : > { %v517_v30 = vpop.f32.mrf.mxu0  ;;  %v1323_v32 = vpop.f32.mrf.mxu2 }
  0x9b   : > { %v518_v33 = vadd.f32 %v5329_v25, %v517_v30 }
  0x9c   : > { %v1662_v37 = vpop.f32.mrf.mxu3 }
  0x9d   : > { %v1051_v36 = vpop.f32.mrf.mxu1  ;;  %644 = vmatmul.f32.gmra.mxu0 %v643_v26  ;;  %v1048_v38 = vadd.f32 %v1047_v18, %v518_v33  ;;  %v362_v26 = vsel %vm297_vm1, %v249_v17, 0  ;;  %v673_v33 = vand.u32 4294901760, %v672_v24 }
  0x9e   : > { %v5358_v34 = vand.u32 4294901760, %v362_v26 }
  0x9f   : > { %v1324_v44 = vadd.f32 %v1323_v32, %v1048_v38  ;;  %1407 = vmatmul.f32.gmra.mxu2 %v648_v21  ;;  %v667_v32 = vand.u32 4294901760, %v666_v22 }
  0xa0   : > { %1114 = vmatmul.f32.gmra.mxu1 %v5315_v13 }
  0xa1   : > { %v5338_v45 = vadd.f32 %v1662_v37, %v1324_v44  ;;  %1763 = vmatmul.f32.gmra.mxu3 %v649_v27 }
  0xa2   : > { %v525_v51 = vpop.f32.mrf.mxu0  ;;  %v1328_v52 = vpop.f32.mrf.mxu2 }
  0xa3   : > { %v526_v53 = vadd.f32 %v5329_v25, %v525_v51  ;;  %v365_v51 = vsel %vm297_vm1, %v250_v40, 0 }
  0xa4   : > { %v1668_v58 = vpop.f32.mrf.mxu3 }
  0xa5   : > { %v1055_v57 = vpop.f32.mrf.mxu1  ;;  %652 = vmatmul.f32.gmra.mxu0 %v651_v46  ;;  %v1052_v59 = vadd.f32 %v1051_v36, %v526_v53  ;;  %v674_v46 = vsub.f32 %v672_v24, %v673_v33 }
  0xa7   : > { %v1329_v1 = vadd.f32 %v1328_v52, %v1052_v59  ;;  %1412 = vmatmul.f32.gmra.mxu2 %v656_v41  ;;  %v675_v54 = vand.u32 4294901760, %v674_v46 }
  0xa8   : > { %1118 = vmatmul.f32.gmra.mxu1 %v5331_v29 }
  0xa9   : > { %v5347_v2 = vadd.f32 %v1668_v58, %v1329_v1  ;;  %1769 = vmatmul.f32.gmra.mxu3 %v657_v48  ;;  %v680_v48 = vsub.f32 %v362_v26, %v5358_v34  ;;  %v5367_v58 = vand.u32 4294901760, %v365_v51 }
  0xaa   : > { %v533_v9 = vpop.f32.mrf.mxu0  ;;  %v1333_v12 = vpop.f32.mrf.mxu2 }
  0xab   : > { %v534_v16 = vadd.f32 %v5329_v25, %v533_v9 }
  0xac   : > { %v1674_v19 = vpop.f32.mrf.mxu3 }
  0xad   : > { %v1059_v18 = vpop.f32.mrf.mxu1  ;;  %660 = vmatmul.f32.gmra.mxu0 %v659_v3  ;;  %v1056_v21 = vadd.f32 %v1055_v57, %v534_v16  ;;  %v681_v57 = vand.u32 4294901760, %v680_v48  ;;  %v368_v16 = vsel %vm297_vm1, %v251_v62, 0 }
  0xae   : > { %v5376_v22 = vand.u32 4294901760, %v368_v16 }
  0xaf   : > { %v1334_v27 = vadd.f32 %v1333_v12, %v1056_v21  ;;  %1417 = vmatmul.f32.gmra.mxu2 %v664_v61  ;;  %v682_v9 = vsub.f32 %v680_v48, %v681_v57  ;;  %v688_v12 = vsub.f32 %v365_v51, %v5367_v58 }
  0xb0   : > { %1122 = vmatmul.f32.gmra.mxu1 %v5340_v50  ;;  %v696_v40 = vsub.f32 %v368_v16, %v5376_v22 }
  0xb1   : > { %v5356_v30 = vadd.f32 %v1674_v19, %v1334_v27  ;;  %1775 = vmatmul.f32.gmra.mxu3 %v665_v4  ;;  %v683_v19 = vand.u32 4294901760, %v682_v9  ;;  %v689_v21 = vand.u32 4294901760, %v688_v12 }
  0xb2   : > { %v541_v36 = vpop.f32.mrf.mxu0  ;;  %v1338_v37 = vpop.f32.mrf.mxu2 }
  0xb3   : > { %v542_v38 = vadd.f32 %v5329_v25, %v541_v36 }
  0xb4   : > { %v1680_v43 = vpop.f32.mrf.mxu3 }
  0xb5   : > { %v1063_v41 = vpop.f32.mrf.mxu1  ;;  %668 = vmatmul.f32.gmra.mxu0 %v667_v32  ;;  %v1060_v44 = vadd.f32 %v1059_v18, %v542_v38  ;;  %v252_v32 = vld [vmem:[%s5200_s26 + $0xc0] sm:$0xff]  ;;  %v690_v38 = vsub.f32 %v688_v12, %v689_v21 }
  0xb7   : > { %v1339_v52 = vadd.f32 %v1338_v37, %v1060_v44  ;;  %1422 = vmatmul.f32.gmra.mxu2 %v672_v24  ;;  %v691_v46 = vand.u32 4294901760, %v690_v38 }
  0xb8   : > { %1126 = vmatmul.f32.gmra.mxu1 %v5349_v7 }
  0xb9   : > { %v5365_v53 = vadd.f32 %v1680_v43, %v1339_v52  ;;  %1781 = vmatmul.f32.gmra.mxu3 %v673_v33 }
  0xba   : > { %v549_v59 = vpop.f32.mrf.mxu0  ;;  %v1343_v60 = vpop.f32.mrf.mxu2 }
  0xbb   : > { %v550_v61 = vadd.f32 %v5329_v25, %v549_v59  ;;  %v253_v59 = vld [vmem:[%s5200_s26 + $0xc8] sm:$0xff] }
  0xbc   : > { %v1686_v3 = vpop.f32.mrf.mxu3 }
  0xbd   : > { %v1067_v1 = vpop.f32.mrf.mxu1  ;;  %676 = vmatmul.f32.gmra.mxu0 %v675_v54  ;;  %v1064_v4 = vadd.f32 %v1063_v41, %v550_v61  ;;  %v371_v41 = vsel %vm297_vm1, %v252_v32, 0 }
  0xbe   : > { %v5385_v51 = vand.u32 4294901760, %v371_v41 }
  0xbf   : > { %v1344_v17 = vadd.f32 %v1343_v60, %v1064_v4  ;;  %1427 = vmatmul.f32.gmra.mxu2 %v680_v48  ;;  %v697_v48 = vand.u32 4294901760, %v696_v40  ;;  %v374_v4 = vsel %vm297_vm1, %v253_v59, 0 }
  0xc0   : > { %1130 = vmatmul.f32.gmra.mxu1 %v5358_v34 }
  0xc1   : > { %v5374_v18 = vadd.f32 %v1686_v3, %v1344_v17  ;;  %1787 = vmatmul.f32.gmra.mxu3 %v681_v57  ;;  %v704_v3 = vsub.f32 %v371_v41, %v5385_v51 }
  0xc2   : > { %v557_v24 = vpop.f32.mrf.mxu0  ;;  %v1348_v26 = vpop.f32.mrf.mxu2 }
  0xc3   : > { %v558_v27 = vadd.f32 %v5329_v25, %v557_v24  ;;  %v705_v17 = vand.u32 4294901760, %v704_v3 }
  0xc4   : > { %v1692_v36 = vpop.f32.mrf.mxu3 }
  0xc5   : > { %v1071_v33 = vpop.f32.mrf.mxu1  ;;  %684 = vmatmul.f32.gmra.mxu0 %v683_v19  ;;  %v1068_v37 = vadd.f32 %v1067_v1, %v558_v27  ;;  %v698_v1 = vsub.f32 %v696_v40, %v697_v48  ;;  %v5394_v19 = vand.u32 4294901760, %v374_v4  ;;  %v254_v27 = vld [vmem:[%s5200_s26 + $0xd0] sm:$0xff] }
  0xc7   : > { %v1349_v43 = vadd.f32 %v1348_v26, %v1068_v37  ;;  %1432 = vmatmul.f32.gmra.mxu2 %v688_v12  ;;  %v699_v16 = vand.u32 4294901760, %v698_v1  ;;  %8180 = vst [vmem:[#allocation2_spill] sm:$0xff] %v5394_v19  ;;  %v706_v37 = vsub.f32 %v704_v3, %v705_v17  ;;  %v712_v38 = vsub.f32 %v374_v4, %v5394_v19 }
  0xc8   : > { %1134 = vmatmul.f32.gmra.mxu1 %v5367_v58 }
  0xc9   : > { %v5383_v44 = vadd.f32 %v1692_v36, %v1349_v43  ;;  %1793 = vmatmul.f32.gmra.mxu3 %v689_v21 }
  0xca   : > { %v565_v52 = vpop.f32.mrf.mxu0  ;;  %v1353_v54 = vpop.f32.mrf.mxu2 }
  0xcb   : > { %v566_v57 = vadd.f32 %v5329_v25, %v565_v52 }
  0xcc   : > { %v1698_v61 = vpop.f32.mrf.mxu3 }
  0xcd   : > { %v1075_v60 = vpop.f32.mrf.mxu1  ;;  %692 = vmatmul.f32.gmra.mxu0 %v691_v46  ;;  %v1072_v62 = vadd.f32 %v1071_v33, %v566_v57  ;;  %v707_v46 = vand.u32 4294901760, %v706_v37 }
  0xcf   : > { %v1354_v9 = vadd.f32 %v1353_v54, %v1072_v62  ;;  %1437 = vmatmul.f32.gmra.mxu2 %v696_v40  ;;  %v377_v40 = vsel %vm297_vm1, %v254_v27, 0 }
  0xd0   : > { %1138 = vmatmul.f32.gmra.mxu1 %v5376_v22  ;;  %v5403_v52 = vand.u32 4294901760, %v377_v40 }
  0xd1   : > { %v5392_v12 = vadd.f32 %v1698_v61, %v1354_v9  ;;  %1799 = vmatmul.f32.gmra.mxu3 %v697_v48  ;;  %v713_v48 = vand.u32 4294901760, %v712_v38 }
  0xd2   : > { %v573_v21 = vpop.f32.mrf.mxu0  ;;  %v1358_v24 = vpop.f32.mrf.mxu2  ;;  %8181 = vst [vmem:[#allocation3_spill] sm:$0xff] %v5403_v52 }
  0xd3   : > { %v574_v26 = vadd.f32 %v5329_v25, %v573_v21  ;;  %v714_v4 = vsub.f32 %v712_v38, %v713_v48 }
  0xd4   : > { %v1704_v33 = vpop.f32.mrf.mxu3 }
  0xd5   : > { %v1079_v32 = vpop.f32.mrf.mxu1  ;;  %700 = vmatmul.f32.gmra.mxu0 %v699_v16  ;;  %v1076_v36 = vadd.f32 %v1075_v60, %v574_v26  ;;  %v255_v60 = vld [vmem:[%s5200_s26 + $0xd8] sm:$0xff]  ;;  %v715_v21 = vand.u32 4294901760, %v714_v4 }
  0xd6   : > { %v380_v9 = vsel %vm297_vm1, %v255_v60, 0 }
  0xd7   : > { %v1359_v41 = vadd.f32 %v1358_v24, %v1076_v36  ;;  %1442 = vmatmul.f32.gmra.mxu2 %v704_v3  ;;  %v720_v3 = vsub.f32 %v377_v40, %v5403_v52  ;;  %v5412_v26 = vand.u32 4294901760, %v380_v9  ;;  %v256_v36 = vld [vmem:[%s5200_s26 + $0xe0] sm:$0xff] }
  0xd8   : > { %1142 = vmatmul.f32.gmra.mxu1 %v5385_v51 }
  0xd9   : > { %v5401_v43 = vadd.f32 %v1704_v33, %v1359_v41  ;;  %1805 = vmatmul.f32.gmra.mxu3 %v705_v17  ;;  %v721_v24 = vand.u32 4294901760, %v720_v3  ;;  %8183 = vst [vmem:[#allocation5_spill] sm:$0xff] %v5412_v26 }
  0xda   : > { %v581_v54 = vpop.f32.mrf.mxu0  ;;  %v1363_v57 = vpop.f32.mrf.mxu2 }
  0xdb   : > { %v582_v59 = vadd.f32 %v5329_v25, %v581_v54  ;;  %v383_v54 = vsel %vm297_vm1, %v256_v36, 0 }
  0xdc   : > { %v1710_v62 = vpop.f32.mrf.mxu3 }
  0xdd   : > { %v1083_v61 = vpop.f32.mrf.mxu1  ;;  %708 = vmatmul.f32.gmra.mxu0 %v707_v46  ;;  %v1080_v1 = vadd.f32 %v1079_v32, %v582_v59  ;;  %v722_v46 = vsub.f32 %v720_v3, %v721_v24 }
  0xdf   : > { %v1364_v16 = vadd.f32 %v1363_v57, %v1080_v1  ;;  %1447 = vmatmul.f32.gmra.mxu2 %v712_v38  ;;  %v728_v38 = vsub.f32 %v380_v9, %v5412_v26  ;;  %v723_v59 = vand.u32 4294901760, %v722_v46 }
  0xe0   : > { %1146 = vmatmul.f32.gmra.mxu1 %v5394_v19 }
  0xe1   : > { %v5410_v17 = vadd.f32 %v1710_v62, %v1364_v16  ;;  %1811 = vmatmul.f32.gmra.mxu3 %v713_v48  ;;  %v729_v60 = vand.u32 4294901760, %v728_v38  ;;  %v5421_v62 = vand.u32 4294901760, %v383_v54  ;;  %v257_v16 = vld [vmem:[%s5200_s26 + $0xe8] sm:$0xff] }
  0xe2   : > { %v589_v27 = vpop.f32.mrf.mxu0  ;;  %v1368_v33 = vpop.f32.mrf.mxu2 }
  0xe3   : > { %8182 = vst [vmem:[#allocation4_spill] sm:$0xff] %v5410_v17  ;;  %v590_v32 = vadd.f32 %v5329_v25, %v589_v27 }
  0xe4   : > { %v1716_v40 = vpop.f32.mrf.mxu3  ;;  %8185 = vst [vmem:[#allocation7_spill] sm:$0xff] %v5421_v62 }
  0xe5   : > { %v1087_v37 = vpop.f32.mrf.mxu1  ;;  %716 = vmatmul.f32.gmra.mxu0 %v715_v21  ;;  %v1084_v41 = vadd.f32 %v1083_v61, %v590_v32  ;;  %v386_v32 = vsel %vm297_vm1, %v257_v16, 0 }
  0xe6   : > { %v5430_v46 = vand.u32 4294901760, %v386_v32 }
  0xe7   : > { %v1369_v57 = vadd.f32 %v1368_v33, %v1084_v41  ;;  %1452 = vmatmul.f32.gmra.mxu2 %v720_v3  ;;  %v730_v33 = vsub.f32 %v728_v38, %v729_v60  ;;  %v736_v3 = vsub.f32 %v383_v54, %v5421_v62 }
  0xe8   : > { %1150 = vmatmul.f32.gmra.mxu1 %v5403_v52  ;;  %8187 = vst [vmem:[#allocation9_spill] sm:$0xff] %v5430_v46 }
  0xe9   : > { %v5419_v48 = vadd.f32 %v1716_v40, %v1369_v57  ;;  %1817 = vmatmul.f32.gmra.mxu3 %v721_v24  ;;  %v731_v40 = vand.u32 4294901760, %v730_v33  ;;  %v737_v41 = vand.u32 4294901760, %v736_v3 }
  0xea   : > { %v597_v1 = vpop.f32.mrf.mxu0  ;;  %v1373_v4 = vpop.f32.mrf.mxu2 }
  0xeb   : > { %8184 = vst [vmem:[#allocation6_spill] sm:$0xff] %v5419_v48  ;;  %v598_v61 = vadd.f32 %v5329_v25, %v597_v1  ;;  %v258_v1 = vld [vmem:[%s5200_s26 + $0xf0] sm:$0xff]  ;;  %v738_v16 = vsub.f32 %v736_v3, %v737_v41 }
  0xec   : > { %v1722_v9 = vpop.f32.mrf.mxu3 }
  0xed   : > { %v1091_v21 = vpop.f32.mrf.mxu1  ;;  %724 = vmatmul.f32.gmra.mxu0 %v723_v59  ;;  %v1088_v27 = vadd.f32 %v1087_v37, %v598_v61  ;;  %v739_v33 = vand.u32 4294901760, %v738_v16 }
  0xef   : > { %v1374_v36 = vadd.f32 %v1373_v4, %v1088_v27  ;;  %1457 = vmatmul.f32.gmra.mxu2 %v728_v38  ;;  %v744_v38 = vsub.f32 %v386_v32, %v5430_v46 }
  0xf0   : > { %1154 = vmatmul.f32.gmra.mxu1 %v5412_v26 }
  0xf1   : > { %v5428_v24 = vadd.f32 %v1722_v9, %v1374_v36  ;;  %1823 = vmatmul.f32.gmra.mxu3 %v729_v60  ;;  %v389_v9 = vsel %vm297_vm1, %v258_v1, 0  ;;  %v745_v36 = vand.u32 4294901760, %v744_v38 }
  0xf2   : > { %v605_v57 = vpop.f32.mrf.mxu0  ;;  %v1378_v59 = vpop.f32.mrf.mxu2 }
  0xf3   : > { %8186 = vst [vmem:[#allocation8_spill] sm:$0xff] %v5428_v24  ;;  %v606_v37 = vadd.f32 %v5329_v25, %v605_v57  ;;  %v5439_v57 = vand.u32 4294901760, %v389_v9  ;;  %v746_v1 = vsub.f32 %v744_v38, %v745_v36 }
  0xf4   : > { %v1728_v54 = vpop.f32.mrf.mxu3 }
  0xf5   : > { %v1095_v61 = vpop.f32.mrf.mxu1  ;;  %732 = vmatmul.f32.gmra.mxu0 %v731_v40  ;;  %v1092_v4 = vadd.f32 %v1091_v21, %v606_v37  ;;  %8189 = vst [vmem:[#allocation11_spill] sm:$0xff] %v5439_v57  ;;  %v259_v40 = vld [vmem:[%s5200_s26 + $0xf8] sm:$0xff] }
  0xf7   : > { %v1379_v27 = vadd.f32 %v1378_v59, %v1092_v4  ;;  %1462 = vmatmul.f32.gmra.mxu2 %v736_v3  ;;  %v752_v3 = vsub.f32 %v389_v9, %v5439_v57 }
  0xf8   : > { %1158 = vmatmul.f32.gmra.mxu1 %v5421_v62 }
  0xf9   : > { %v5437_v60 = vadd.f32 %v1728_v54, %v1379_v27  ;;  %1829 = vmatmul.f32.gmra.mxu3 %v737_v41  ;;  %v392_v54 = vsel %vm297_vm1, %v259_v40, 0  ;;  %v747_v27 = vand.u32 4294901760, %v746_v1 }
  0xfa   : > { %v613_v14 = vpop.f32.mrf.mxu0  ;;  %v1383_v26 = vpop.f32.mrf.mxu2  ;;  %v5446_v41 = vand.u32 4294901760, %v392_v54 }
  0xfb   : > { %8188 = vst [vmem:[#allocation10_spill] sm:$0xff] %v5437_v60  ;;  %v614_v21 = vadd.f32 %v5329_v25, %v613_v14  ;;  %v753_v14 = vand.u32 4294901760, %v752_v3 }
  0xfc   : > { %v1734_v32 = vpop.f32.mrf.mxu3  ;;  %8190 = vst [vmem:[#allocation12_spill] sm:$0xff] %v5446_v41  ;;  %v760_v40 = vsub.f32 %v392_v54, %v5446_v41 }
  0xfd   : > { %v1099_v37 = vpop.f32.mrf.mxu1  ;;  %740 = vmatmul.f32.gmra.mxu0 %v739_v33  ;;  %v1096_v59 = vadd.f32 %v1095_v61, %v614_v21  ;;  %v260_v21 = vld [vmem:[%s5200_s26 + $0x100] sm:$0xff] }
  0xff   : > { %v1384_v4 = vadd.f32 %v1383_v26, %v1096_v59  ;;  %1467 = vmatmul.f32.gmra.mxu2 %v744_v38  ;;  %v754_v38 = vsub.f32 %v752_v3, %v753_v14  ;;  %v395_v59 = vsel %vm297_vm1, %v260_v21, 0 }
 0x100   : > { %1162 = vmatmul.f32.gmra.mxu1 %v5430_v46 }
 0x101   : > { %v5448_v16 = vadd.f32 %v1734_v32, %v1384_v4  ;;  %1835 = vmatmul.f32.gmra.mxu3 %v745_v36  ;;  %v761_v36 = vand.u32 4294901760, %v760_v40  ;;  %v755_v4 = vand.u32 4294901760, %v754_v38 }
 0x102   : > { %v621_v62 = vpop.f32.mrf.mxu0  ;;  %v1388_v33 = vpop.f32.mrf.mxu2 }
 0x103   : > { %8191 = vst [vmem:[#allocation13_spill] sm:$0xff] %v5448_v16  ;;  %v622_v61 = vadd.f32 %v5329_v25, %v621_v62  ;;  %v5457_v62 = vand.u32 4294901760, %v395_v59  ;;  %v762_v24 = vsub.f32 %v760_v40, %v761_v36 }
 0x104   : > { %v1740_v9 = vpop.f32.mrf.mxu3 }
 0x105   : > { %v1103_v60 = vpop.f32.mrf.mxu1  ;;  %748 = vmatmul.f32.gmra.mxu0 %v747_v27  ;;  %v1100_v26 = vadd.f32 %v1099_v37, %v622_v61  ;;  %8193 = vst [vmem:[#allocation15_spill] sm:$0xff] %v5457_v62  ;;  %v261_v27 = vld [vmem:[%s5200_s26 + $0x108] sm:$0xff]  ;;  %v768_v21 = vsub.f32 %v395_v59, %v5457_v62  ;;  %v763_v38 = vand.u32 4294901760, %v762_v24 }
 0x107   : > { %v1389_v32 = vadd.f32 %v1388_v33, %v1100_v26  ;;  %1472 = vmatmul.f32.gmra.mxu2 %v752_v3  ;;  %v2659_v33 = vld [vmem:[%s7816_s3 + $0x10] sm:$0xff]  ;;  %v769_v59 = vand.u32 4294901760, %v768_v21 }
 0x108   : > { %1166 = vmatmul.f32.gmra.mxu1 %v5439_v57 }
 0x109   : > { %v5455_v1 = vadd.f32 %v1740_v9, %v1389_v32  ;;  %1841 = vmatmul.f32.gmra.mxu3 %v753_v14  ;;  %v5465_v9 = vand.u32 4294901760, %v2659_v33  ;;  %v398_v14 = vsel %vm297_vm1, %v261_v27, 0  ;;  %v262_v27 = vld [vmem:[%s5200_s26 + $0x110] sm:$0xff] }
 0x10a   : > { %v629_v46 = vpop.f32.mrf.mxu0  ;;  %v1393_v16 = vpop.f32.mrf.mxu2  ;;  %v5476_v32 = vand.u32 4294901760, %v398_v14 }
 0x10b   : > { %8192 = vst [vmem:[#allocation14_spill] sm:$0xff] %v5455_v1  ;;  %v630_v54 = vadd.f32 %v5329_v25, %v629_v46  ;;  %v5470_v46 = vsub.f32 %v2659_v33, %v5465_v9  ;;  %2873 = vmatpush.msrb.mxu2 %v5465_v9  ;;  %4044 = vmatpush.msra.mxu1 %v5465_v9 }
 0x10c   : > { %v1746_v61 = vpop.f32.mrf.mxu3  ;;  %8195 = vst [vmem:[#allocation17_spill] sm:$0xff] %v5476_v32 }
 0x10d   : > { %v1107_v37 = vpop.f32.mrf.mxu1  ;;  %756 = vmatmul.f32.gmra.mxu0 %v755_v4  ;;  %v1104_v3 = vadd.f32 %v1103_v60, %v630_v54 }
 0x10e   : > { %3701 = vmatpush.msra.mxu0 %v5470_v46 }
 0x10f   : > { %v1394_v26 = vadd.f32 %v1393_v16, %v1104_v3  ;;  %1477 = vmatmul.f32.gmra.mxu2 %v760_v40  ;;  %v7830_v16 = vand.u32 4294901760, %v5470_v46  ;;  %v770_v3 = vsub.f32 %v768_v21, %v769_v59 }
 0x110   : > { %1170 = vmatmul.f32.gmra.mxu1 %v5446_v41 }
 0x111   : > { %v5474_v60 = vadd.f32 %v1746_v61, %v1394_v26  ;;  %1847 = vmatmul.f32.gmra.mxu3 %v761_v36  ;;  %v3412_v24 = vsub.f32 %v5470_v46, %v7830_v16  ;;  %v776_v26 = vsub.f32 %v398_v14, %v5476_v32  ;;  %v771_v1 = vand.u32 4294901760, %v770_v3  ;;  %v263_v14 = vld [vmem:[%s5200_s26 + $0x118] sm:$0xff] }
 0x112   : > { %v637_v4 = vpop.f32.mrf.mxu0  ;;  %v1398_v40 = vpop.f32.mrf.mxu2 }
 0x113   : > { %8194 = vst [vmem:[#allocation16_spill] sm:$0xff] %v5474_v60  ;;  %v638_v54 = vadd.f32 %v5329_v25, %v637_v4  ;;  %v3413_v41 = vand.u32 4294901760, %v3412_v24  ;;  %v401_v60 = vsel %vm297_vm1, %v262_v27, 0  ;;  %v777_v16 = vand.u32 4294901760, %v776_v26 }
 0x114   : > { %v1752_v61 = vpop.f32.mrf.mxu3  ;;  %v5490_v52 = vand.u32 4294901760, %v401_v60 }
 0x115   : > { %v1111_v33 = vpop.f32.mrf.mxu1  ;;  %764 = vmatmul.f32.gmra.mxu0 %v763_v38  ;;  %v1108_v36 = vadd.f32 %v1107_v37, %v638_v54  ;;  %3414 = vmatpush.msrb.mxu3 %v3413_v41  ;;  %v778_v27 = vsub.f32 %v776_v26, %v777_v16 }
 0x116   : > { %8197 = vst [vmem:[#allocation19_spill] sm:$0xff] %v5490_v52  ;;  %v784_v41 = vsub.f32 %v401_v60, %v5490_v52 }
 0x117   : > { %v1399_v57 = vadd.f32 %v1398_v40, %v1108_v36  ;;  %1482 = vmatmul.f32.gmra.mxu2 %v768_v21 }
 0x118   : > { %1174 = vmatmul.f32.gmra.mxu1 %v5457_v62  ;;  %v785_v36 = vand.u32 4294901760, %v784_v41 }
 0x119   : > { %v5488_v4 = vadd.f32 %v1752_v61, %v1399_v57  ;;  %1853 = vmatmul.f32.gmra.mxu3 %v769_v59  ;;  %v404_v57 = vsel %vm297_vm1, %v263_v14, 0  ;;  %v779_v61 = vand.u32 4294901760, %v778_v27 }
 0x11a   : > { %v645_v37 = vpop.f32.mrf.mxu0  ;;  %v1403_v38 = vpop.f32.mrf.mxu2  ;;  %v5499_v3 = vand.u32 4294901760, %v404_v57  ;;  %v786_v14 = vsub.f32 %v784_v41, %v785_v36 }
 0x11b   : > { %8196 = vst [vmem:[#allocation18_spill] sm:$0xff] %v5488_v4  ;;  %v646_v54 = vadd.f32 %v5329_v25, %v645_v37 }
 0x11c   : > { %v1758_v48 = vpop.f32.mrf.mxu3  ;;  %8199 = vst [vmem:[#allocation21_spill] sm:$0xff] %v5499_v3  ;;  %v787_v27 = vand.u32 4294901760, %v786_v14 }
 0x11d   : > { %v1115_v24 = vpop.f32.mrf.mxu1  ;;  %772 = vmatmul.f32.gmra.mxu0 %v771_v1  ;;  %v1112_v40 = vadd.f32 %v1111_v33, %v646_v54  ;;  %v264_v54 = vld [vmem:[%s5200_s26 + $0x120] sm:$0xff] }
 0x11f   : > { %v1404_v21 = vadd.f32 %v1403_v38, %v1112_v40  ;;  %1487 = vmatmul.f32.gmra.mxu2 %v776_v26  ;;  %v792_v26 = vsub.f32 %v404_v57, %v5499_v3 }
 0x120   : > { %1178 = vmatmul.f32.gmra.mxu1 %v5476_v32 }
 0x121   : > { %v5497_v59 = vadd.f32 %v1758_v48, %v1404_v21  ;;  %1859 = vmatmul.f32.gmra.mxu3 %v777_v16  ;;  %v407_v48 = vsel %vm297_vm1, %v264_v54, 0  ;;  %v793_v21 = vand.u32 4294901760, %v792_v26 }
 0x122   : > { %v653_v37 = vpop.f32.mrf.mxu0  ;;  %v1408_v1 = vpop.f32.mrf.mxu2 }
 0x123   : > { %8198 = vst [vmem:[#allocation20_spill] sm:$0xff] %v5497_v59  ;;  %v654_v33 = vadd.f32 %v5329_v25, %v653_v37  ;;  %v5508_v37 = vand.u32 4294901760, %v407_v48  ;;  %v794_v54 = vsub.f32 %v792_v26, %v793_v21 }
 0x124   : > { %v1764_v60 = vpop.f32.mrf.mxu3 }
 0x125   : > { %v1119_v62 = vpop.f32.mrf.mxu1  ;;  %780 = vmatmul.f32.gmra.mxu0 %v779_v61  ;;  %v1116_v38 = vadd.f32 %v1115_v24, %v654_v33  ;;  %8201 = vst [vmem:[#allocation23_spill] sm:$0xff] %v5508_v37  ;;  %v265_v33 = vld [vmem:[%s5200_s26 + $0x128] sm:$0xff]  ;;  %v795_v14 = vand.u32 4294901760, %v794_v54 }
 0x127   : > { %v1409_v40 = vadd.f32 %v1408_v1, %v1116_v38  ;;  %1492 = vmatmul.f32.gmra.mxu2 %v784_v41  ;;  %v800_v41 = vsub.f32 %v407_v48, %v5508_v37 }
 0x128   : > { %1182 = vmatmul.f32.gmra.mxu1 %v5490_v52 }
 0x129   : > { %v5506_v16 = vadd.f32 %v1764_v60, %v1409_v40  ;;  %1865 = vmatmul.f32.gmra.mxu3 %v785_v36  ;;  %v410_v60 = vsel %vm297_vm1, %v265_v33, 0 }
 0x12a   : > { %v661_v32 = vpop.f32.mrf.mxu0  ;;  %v1413_v61 = vpop.f32.mrf.mxu2  ;;  %v5517_v40 = vand.u32 4294901760, %v410_v60 }
 0x12b   : > { %8200 = vst [vmem:[#allocation22_spill] sm:$0xff] %v5506_v16  ;;  %v662_v24 = vadd.f32 %v5329_v25, %v661_v32  ;;  %v801_v32 = vand.u32 4294901760, %v800_v41 }
 0x12c   : > { %v1770_v57 = vpop.f32.mrf.mxu3  ;;  %8203 = vst [vmem:[#allocation25_spill] sm:$0xff] %v5517_v40 }
 0x12d   : > { %v1123_v59 = vpop.f32.mrf.mxu1  ;;  %788 = vmatmul.f32.gmra.mxu0 %v787_v27  ;;  %v1120_v1 = vadd.f32 %v1119_v62, %v662_v24  ;;  %v266_v24 = vld [vmem:[%s5200_s26 + $0x130] sm:$0xff]  ;;  %v802_v33 = vsub.f32 %v800_v41, %v801_v32 }
 0x12f   : > { %v1414_v38 = vadd.f32 %v1413_v61, %v1120_v1  ;;  %1497 = vmatmul.f32.gmra.mxu2 %v792_v26  ;;  %v808_v26 = vsub.f32 %v410_v60, %v5517_v40  ;;  %v803_v54 = vand.u32 4294901760, %v802_v33 }
 0x130   : > { %1186 = vmatmul.f32.gmra.mxu1 %v5499_v3 }
 0x131   : > { %v5515_v36 = vadd.f32 %v1770_v57, %v1414_v38  ;;  %1871 = vmatmul.f32.gmra.mxu3 %v793_v21  ;;  %v413_v57 = vsel %vm297_vm1, %v266_v24, 0 }
 0x132   : > { %v669_v52 = vpop.f32.mrf.mxu0  ;;  %v1418_v27 = vpop.f32.mrf.mxu2  ;;  %v5526_v38 = vand.u32 4294901760, %v413_v57 }
 0x133   : > { %8202 = vst [vmem:[#allocation24_spill] sm:$0xff] %v5515_v36  ;;  %v670_v62 = vadd.f32 %v5329_v25, %v669_v52  ;;  %v809_v52 = vand.u32 4294901760, %v808_v26 }
 0x134   : > { %v1776_v48 = vpop.f32.mrf.mxu3  ;;  %8205 = vst [vmem:[#allocation27_spill] sm:$0xff] %v5526_v38 }
 0x135   : > { %v1127_v16 = vpop.f32.mrf.mxu1  ;;  %796 = vmatmul.f32.gmra.mxu0 %v795_v14  ;;  %v1124_v61 = vadd.f32 %v1123_v59, %v670_v62  ;;  %v267_v62 = vld [vmem:[%s5200_s26 + $0x138] sm:$0xff]  ;;  %v810_v24 = vsub.f32 %v808_v26, %v809_v52 }
 0x137   : > { %v1419_v1 = vadd.f32 %v1418_v27, %v1124_v61  ;;  %1502 = vmatmul.f32.gmra.mxu2 %v800_v41  ;;  %v816_v41 = vsub.f32 %v413_v57, %v5526_v38  ;;  %v811_v33 = vand.u32 4294901760, %v810_v24 }
 0x138   : > { %1190 = vmatmul.f32.gmra.mxu1 %v5508_v37 }
 0x139   : > { %v5524_v21 = vadd.f32 %v1776_v48, %v1419_v1  ;;  %1877 = vmatmul.f32.gmra.mxu3 %v801_v32  ;;  %v416_v48 = vsel %vm297_vm1, %v267_v62, 0 }
 0x13a   : > { %v677_v3 = vpop.f32.mrf.mxu0  ;;  %v1423_v14 = vpop.f32.mrf.mxu2  ;;  %v5535_v1 = vand.u32 4294901760, %v416_v48 }
 0x13b   : > { %8204 = vst [vmem:[#allocation26_spill] sm:$0xff] %v5524_v21  ;;  %v678_v59 = vadd.f32 %v5329_v25, %v677_v3  ;;  %v817_v3 = vand.u32 4294901760, %v816_v41 }
 0x13c   : > { %v1782_v60 = vpop.f32.mrf.mxu3  ;;  %8207 = vst [vmem:[#allocation29_spill] sm:$0xff] %v5535_v1 }
 0x13d   : > { %v1131_v36 = vpop.f32.mrf.mxu1  ;;  %804 = vmatmul.f32.gmra.mxu0 %v803_v54  ;;  %v1128_v27 = vadd.f32 %v1127_v16, %v678_v59  ;;  %v268_v59 = vld [vmem:[%s5200_s26 + $0x140] sm:$0xff]  ;;  %v818_v62 = vsub.f32 %v816_v41, %v817_v3 }
 0x13f   : > { %v1424_v61 = vadd.f32 %v1423_v14, %v1128_v27  ;;  %1507 = vmatmul.f32.gmra.mxu2 %v808_v26  ;;  %v824_v26 = vsub.f32 %v416_v48, %v5535_v1  ;;  %v819_v24 = vand.u32 4294901760, %v818_v62 }
 0x140   : > { %1194 = vmatmul.f32.gmra.mxu1 %v5517_v40 }
 0x141   : > { %v5533_v32 = vadd.f32 %v1782_v60, %v1424_v61  ;;  %1883 = vmatmul.f32.gmra.mxu3 %v809_v52  ;;  %v419_v60 = vsel %vm297_vm1, %v268_v59, 0 }
 0x142   : > { %v685_v37 = vpop.f32.mrf.mxu0  ;;  %v1428_v54 = vpop.f32.mrf.mxu2  ;;  %v5544_v61 = vand.u32 4294901760, %v419_v60 }
 0x143   : > { %8206 = vst [vmem:[#allocation28_spill] sm:$0xff] %v5533_v32  ;;  %v686_v16 = vadd.f32 %v5329_v25, %v685_v37  ;;  %v825_v37 = vand.u32 4294901760, %v824_v26 }
 0x144   : > { %v1788_v57 = vpop.f32.mrf.mxu3  ;;  %8209 = vst [vmem:[#allocation31_spill] sm:$0xff] %v5544_v61 }
 0x145   : > { %v1135_v21 = vpop.f32.mrf.mxu1  ;;  %812 = vmatmul.f32.gmra.mxu0 %v811_v33  ;;  %v1132_v14 = vadd.f32 %v1131_v36, %v686_v16  ;;  %v269_v16 = vld [vmem:[%s5200_s26 + $0x148] sm:$0xff]  ;;  %v826_v59 = vsub.f32 %v824_v26, %v825_v37 }
 0x147   : > { %v1429_v27 = vadd.f32 %v1428_v54, %v1132_v14  ;;  %1512 = vmatmul.f32.gmra.mxu2 %v816_v41  ;;  %v832_v41 = vsub.f32 %v419_v60, %v5544_v61  ;;  %v827_v62 = vand.u32 4294901760, %v826_v59 }
 0x148   : > { %1198 = vmatmul.f32.gmra.mxu1 %v5526_v38 }
 0x149   : > { %v5542_v52 = vadd.f32 %v1788_v57, %v1429_v27  ;;  %1889 = vmatmul.f32.gmra.mxu3 %v817_v3  ;;  %v422_v57 = vsel %vm297_vm1, %v269_v16, 0 }
 0x14a   : > { %v693_v40 = vpop.f32.mrf.mxu0  ;;  %v1433_v33 = vpop.f32.mrf.mxu2  ;;  %v5553_v27 = vand.u32 4294901760, %v422_v57 }
 0x14b   : > { %8208 = vst [vmem:[#allocation30_spill] sm:$0xff] %v5542_v52  ;;  %v694_v36 = vadd.f32 %v5329_v25, %v693_v40  ;;  %v833_v40 = vand.u32 4294901760, %v832_v41 }
 0x14c   : > { %v1794_v48 = vpop.f32.mrf.mxu3  ;;  %8211 = vst [vmem:[#allocation33_spill] sm:$0xff] %v5553_v27 }
 0x14d   : > { %v1139_v32 = vpop.f32.mrf.mxu1  ;;  %820 = vmatmul.f32.gmra.mxu0 %v819_v24  ;;  %v1136_v54 = vadd.f32 %v1135_v21, %v694_v36  ;;  %v270_v36 = vld [vmem:[%s5200_s26 + $0x150] sm:$0xff]  ;;  %v834_v16 = vsub.f32 %v832_v41, %v833_v40 }
 0x14f   : > { %v1434_v14 = vadd.f32 %v1433_v33, %v1136_v54  ;;  %1517 = vmatmul.f32.gmra.mxu2 %v824_v26  ;;  %v840_v26 = vsub.f32 %v422_v57, %v5553_v27  ;;  %v835_v59 = vand.u32 4294901760, %v834_v16 }
 0x150   : > { %1202 = vmatmul.f32.gmra.mxu1 %v5535_v1 }
 0x151   : > { %v5551_v3 = vadd.f32 %v1794_v48, %v1434_v14  ;;  %1895 = vmatmul.f32.gmra.mxu3 %v825_v37  ;;  %v425_v48 = vsel %vm297_vm1, %v270_v36, 0 }
 0x152   : > { %v701_v38 = vpop.f32.mrf.mxu0  ;;  %v1438_v24 = vpop.f32.mrf.mxu2  ;;  %v5562_v14 = vand.u32 4294901760, %v425_v48 }
 0x153   : > { %8210 = vst [vmem:[#allocation32_spill] sm:$0xff] %v5551_v3  ;;  %v702_v21 = vadd.f32 %v5329_v25, %v701_v38  ;;  %v841_v38 = vand.u32 4294901760, %v840_v26 }
 0x154   : > { %v1800_v60 = vpop.f32.mrf.mxu3  ;;  %8213 = vst [vmem:[#allocation35_spill] sm:$0xff] %v5562_v14 }
 0x155   : > { %v1143_v52 = vpop.f32.mrf.mxu1  ;;  %828 = vmatmul.f32.gmra.mxu0 %v827_v62  ;;  %v1140_v33 = vadd.f32 %v1139_v32, %v702_v21  ;;  %v271_v21 = vld [vmem:[%s5200_s26 + $0x158] sm:$0xff]  ;;  %v842_v36 = vsub.f32 %v840_v26, %v841_v38 }
 0x157   : > { %v1439_v54 = vadd.f32 %v1438_v24, %v1140_v33  ;;  %1522 = vmatmul.f32.gmra.mxu2 %v832_v41  ;;  %v848_v41 = vsub.f32 %v425_v48, %v5562_v14  ;;  %v843_v16 = vand.u32 4294901760, %v842_v36 }
 0x158   : > { %1206 = vmatmul.f32.gmra.mxu1 %v5544_v61 }
 0x159   : > { %v5560_v37 = vadd.f32 %v1800_v60, %v1439_v54  ;;  %1901 = vmatmul.f32.gmra.mxu3 %v833_v40  ;;  %v428_v60 = vsel %vm297_vm1, %v271_v21, 0 }
 0x15a   : > { %v709_v1 = vpop.f32.mrf.mxu0  ;;  %v1443_v62 = vpop.f32.mrf.mxu2  ;;  %v5571_v54 = vand.u32 4294901760, %v428_v60 }
 0x15b   : > { %8212 = vst [vmem:[#allocation34_spill] sm:$0xff] %v5560_v37  ;;  %v710_v32 = vadd.f32 %v5329_v25, %v709_v1  ;;  %v849_v1 = vand.u32 4294901760, %v848_v41 }
 0x15c   : > { %v1806_v57 = vpop.f32.mrf.mxu3  ;;  %8215 = vst [vmem:[#allocation37_spill] sm:$0xff] %v5571_v54 }
 0x15d   : > { %v1147_v3 = vpop.f32.mrf.mxu1  ;;  %836 = vmatmul.f32.gmra.mxu0 %v835_v59  ;;  %v1144_v24 = vadd.f32 %v1143_v52, %v710_v32  ;;  %v272_v32 = vld [vmem:[%s5200_s26 + $0x160] sm:$0xff] }
 0x15f   : > { %v1444_v33 = vadd.f32 %v1443_v62, %v1144_v24  ;;  %1527 = vmatmul.f32.gmra.mxu2 %v840_v26  ;;  %v850_v62 = vsub.f32 %v848_v41, %v849_v1  ;;  %v856_v26 = vsub.f32 %v428_v60, %v5571_v54 }
 0x160   : > { %1210 = vmatmul.f32.gmra.mxu1 %v5553_v27 }
 0x161   : > { %v5569_v40 = vadd.f32 %v1806_v57, %v1444_v33  ;;  %1907 = vmatmul.f32.gmra.mxu3 %v841_v38  ;;  %v431_v57 = vsel %vm297_vm1, %v272_v32, 0  ;;  %v851_v36 = vand.u32 4294901760, %v850_v62 }
 0x162   : > { %v717_v61 = vpop.f32.mrf.mxu0  ;;  %v1448_v59 = vpop.f32.mrf.mxu2 }
 0x163   : > { %8214 = vst [vmem:[#allocation36_spill] sm:$0xff] %v5569_v40  ;;  %v718_v52 = vadd.f32 %v5329_v25, %v717_v61  ;;  %v857_v25 = vand.u32 4294901760, %v856_v26  ;;  %v5580_v61 = vand.u32 4294901760, %v431_v57 }
 0x164   : > { %v1812_v48 = vpop.f32.mrf.mxu3 }
 0x165   : > { %v1151_v37 = vpop.f32.mrf.mxu1  ;;  %844 = vmatmul.f32.gmra.mxu0 %v843_v16  ;;  %v1148_v21 = vadd.f32 %v1147_v3, %v718_v52  ;;  %8217 = vst [vmem:[#allocation39_spill] sm:$0xff] %v5580_v61  ;;  %v5585_v3 = vld [vmem:[%s7815_s2] ss:$0 sm:$0xff] }
 0x167   : > { %v1449_v24 = vadd.f32 %v1448_v59, %v1148_v21  ;;  %1532 = vmatmul.f32.gmra.mxu2 %v848_v41  ;;  %v273_v59 = vld [vmem:[%s5200_s26 + $0x168] sm:$0xff] }
 0x168   : > { %1214 = vmatmul.f32.gmra.mxu1 %v5562_v14  ;;  %v434_v21 = vsel %vm297_vm1, %v273_v59, 0 }
 0x169   : > { %v5578_v38 = vadd.f32 %v1812_v48, %v1449_v24  ;;  %1913 = vmatmul.f32.gmra.mxu3 %v849_v1  ;;  %v858_v48 = vsub.f32 %v856_v26, %v857_v25  ;;  %v864_v1 = vsub.f32 %v431_v57, %v5580_v61 }
 0x16a   : > { %v725_v33 = vpop.f32.mrf.mxu0  ;;  %v1453_v16 = vpop.f32.mrf.mxu2 }
 0x16b   : > { %8216 = vst [vmem:[#allocation38_spill] sm:$0xff] %v5578_v38  ;;  %v726_v60 = vadd.f32 %v5585_v3, %v725_v33  ;;  %v859_v14 = vand.u32 4294901760, %v858_v48  ;;  %v865_v33 = vand.u32 4294901760, %v864_v1  ;;  %v5594_v38 = vand.u32 4294901760, %v434_v21 }
 0x16c   : > { %v1818_v32 = vpop.f32.mrf.mxu3 }
 0x16d   : > { %v1155_v52 = vpop.f32.mrf.mxu1  ;;  %852 = vmatmul.f32.gmra.mxu0 %v851_v36  ;;  %v1152_v41 = vadd.f32 %v1151_v37, %v726_v60  ;;  %8219 = vst [vmem:[#allocation41_spill] sm:$0xff] %v5594_v38  ;;  %v274_v60 = vld [vmem:[%s5200_s26 + $0x170] sm:$0xff]  ;;  %v866_v59 = vsub.f32 %v864_v1, %v865_v33 }
 0x16f   : > { %v1454_v62 = vadd.f32 %v1453_v16, %v1152_v41  ;;  %1537 = vmatmul.f32.gmra.mxu2 %v856_v26  ;;  %v872_v26 = vsub.f32 %v434_v21, %v5594_v38  ;;  %v867_v48 = vand.u32 4294901760, %v866_v59 }
 0x170   : > { %1218 = vmatmul.f32.gmra.mxu1 %v5571_v54 }
 0x171   : > { %v5592_v24 = vadd.f32 %v1818_v32, %v1454_v62  ;;  %1919 = vmatmul.f32.gmra.mxu3 %v857_v25  ;;  %v437_v32 = vsel %vm297_vm1, %v274_v60, 0 }
 0x172   : > { %v733_v27 = vpop.f32.mrf.mxu0  ;;  %v1458_v36 = vpop.f32.mrf.mxu2  ;;  %v5603_v62 = vand.u32 4294901760, %v437_v32 }
 0x173   : > { %8218 = vst [vmem:[#allocation40_spill] sm:$0xff] %v5592_v24  ;;  %v734_v37 = vadd.f32 %v5585_v3, %v733_v27  ;;  %v873_v27 = vand.u32 4294901760, %v872_v26 }
 0x174   : > { %v1824_v57 = vpop.f32.mrf.mxu3  ;;  %8221 = vst [vmem:[#allocation43_spill] sm:$0xff] %v5603_v62 }
 0x175   : > { %v1159_v40 = vpop.f32.mrf.mxu1  ;;  %860 = vmatmul.f32.gmra.mxu0 %v859_v14  ;;  %v1156_v16 = vadd.f32 %v1155_v52, %v734_v37  ;;  %v275_v14 = vld [vmem:[%s5200_s26 + $0x178] sm:$0xff]  ;;  %v874_v60 = vsub.f32 %v872_v26, %v873_v27 }
 0x177   : > { %v1459_v41 = vadd.f32 %v1458_v36, %v1156_v16  ;;  %1542 = vmatmul.f32.gmra.mxu2 %v864_v1  ;;  %v880_v1 = vsub.f32 %v437_v32, %v5603_v62 }
 0x178   : > { %1222 = vmatmul.f32.gmra.mxu1 %v5580_v61 }
 0x179   : > { %v5601_v25 = vadd.f32 %v1824_v57, %v1459_v41  ;;  %1925 = vmatmul.f32.gmra.mxu3 %v865_v33  ;;  %v440_v57 = vsel %vm297_vm1, %v275_v14, 0  ;;  %v875_v41 = vand.u32 4294901760, %v874_v60 }
 0x17a   : > { %v741_v54 = vpop.f32.mrf.mxu0  ;;  %v1463_v24 = vpop.f32.mrf.mxu2  ;;  %v5610_v33 = vand.u32 4294901760, %v440_v57 }
 0x17b   : > { %8220 = vst [vmem:[#allocation42_spill] sm:$0xff] %v5601_v25  ;;  %v742_v52 = vadd.f32 %v5585_v3, %v741_v54  ;;  %v881_v54 = vand.u32 4294901760, %v880_v1 }
 0x17c   : > { %v1830_v21 = vpop.f32.mrf.mxu3  ;;  %8222 = vst [vmem:[#allocation44_spill] sm:$0xff] %v5610_v33  ;;  %v888_v14 = vsub.f32 %v440_v57, %v5610_v33 }
 0x17d   : > { %v1163_v37 = vpop.f32.mrf.mxu1  ;;  %868 = vmatmul.f32.gmra.mxu0 %v867_v48  ;;  %v1160_v36 = vadd.f32 %v1159_v40, %v742_v52  ;;  %v276_v52 = vld [vmem:[%s5200_s26 + $0x180] sm:$0xff] }
 0x17f   : > { %v1464_v16 = vadd.f32 %v1463_v24, %v1160_v36  ;;  %1547 = vmatmul.f32.gmra.mxu2 %v872_v26  ;;  %v882_v26 = vsub.f32 %v880_v1, %v881_v54  ;;  %v443_v36 = vsel %vm297_vm1, %v276_v52, 0 }
 0x180   : > { %1226 = vmatmul.f32.gmra.mxu1 %v5594_v38 }
 0x181   : > { %v5612_v59 = vadd.f32 %v1830_v21, %v1464_v16  ;;  %1931 = vmatmul.f32.gmra.mxu3 %v873_v27  ;;  %v889_v27 = vand.u32 4294901760, %v888_v14  ;;  %v883_v16 = vand.u32 4294901760, %v882_v26 }
 0x182   : > { %v749_v61 = vpop.f32.mrf.mxu0  ;;  %v1468_v48 = vpop.f32.mrf.mxu2 }
 0x183   : > { %8223 = vst [vmem:[#allocation45_spill] sm:$0xff] %v5612_v59  ;;  %v750_v40 = vadd.f32 %v5585_v3, %v749_v61  ;;  %v5621_v61 = vand.u32 4294901760, %v443_v36  ;;  %v890_v4 = vsub.f32 %v888_v14, %v889_v27 }
 0x184   : > { %v1836_v32 = vpop.f32.mrf.mxu3 }
 0x185   : > { %v1167_v25 = vpop.f32.mrf.mxu1  ;;  %876 = vmatmul.f32.gmra.mxu0 %v875_v41  ;;  %v1164_v24 = vadd.f32 %v1163_v37, %v750_v40  ;;  %8225 = vst [vmem:[#allocation47_spill] sm:$0xff] %v5621_v61  ;;  %v277_v41 = vld [vmem:[%s5200_s26 + $0x188] sm:$0xff]  ;;  %v896_v52 = vsub.f32 %v443_v36, %v5621_v61  ;;  %v891_v26 = vand.u32 4294901760, %v890_v4 }
 0x187   : > { %v1469_v21 = vadd.f32 %v1468_v48, %v1164_v24  ;;  %1552 = vmatmul.f32.gmra.mxu2 %v880_v1  ;;  %v2658_v48 = vld [vmem:[%s7816_s3 + $0x8] sm:$0xff]  ;;  %v897_v36 = vand.u32 4294901760, %v896_v52 }
 0x188   : > { %1230 = vmatmul.f32.gmra.mxu1 %v5603_v62 }
 0x189   : > { %v5619_v60 = vadd.f32 %v1836_v32, %v1469_v21  ;;  %1937 = vmatmul.f32.gmra.mxu3 %v881_v54  ;;  %v5629_v32 = vand.u32 4294901760, %v2658_v48  ;;  %v446_v54 = vsel %vm297_vm1, %v277_v41, 0  ;;  %v278_v41 = vld [vmem:[%s5200_s26 + $0x190] sm:$0xff] }
 0x18a   : > { %v757_v38 = vpop.f32.mrf.mxu0  ;;  %v1473_v59 = vpop.f32.mrf.mxu2  ;;  %v5640_v21 = vand.u32 4294901760, %v446_v54 }
 0x18b   : > { %8224 = vst [vmem:[#allocation46_spill] sm:$0xff] %v5619_v60  ;;  %v758_v57 = vadd.f32 %v5585_v3, %v757_v38  ;;  %v5634_v38 = vsub.f32 %v2658_v48, %v5629_v32  ;;  %2875 = vmatpush.msrb.mxu2 %v5629_v32  ;;  %4046 = vmatpush.msra.mxu1 %v5629_v32 }
 0x18c   : > { %v1842_v40 = vpop.f32.mrf.mxu3  ;;  %8227 = vst [vmem:[#allocation49_spill] sm:$0xff] %v5640_v21 }
 0x18d   : > { %v1171_v37 = vpop.f32.mrf.mxu1  ;;  %884 = vmatmul.f32.gmra.mxu0 %v883_v16  ;;  %v1168_v1 = vadd.f32 %v1167_v25, %v758_v57 }
 0x18e   : > { %3704 = vmatpush.msra.mxu0 %v5634_v38 }
 0x18f   : > { %v1474_v24 = vadd.f32 %v1473_v59, %v1168_v1  ;;  %1557 = vmatmul.f32.gmra.mxu2 %v888_v14  ;;  %v7865_v59 = vand.u32 4294901760, %v5634_v38  ;;  %v898_v1 = vsub.f32 %v896_v52, %v897_v36 }
 0x190   : > { %1234 = vmatmul.f32.gmra.mxu1 %v5610_v33 }
 0x191   : > { %v5638_v25 = vadd.f32 %v1842_v40, %v1474_v24  ;;  %1943 = vmatmul.f32.gmra.mxu3 %v889_v27  ;;  %v3418_v4 = vsub.f32 %v5634_v38, %v7865_v59  ;;  %v904_v24 = vsub.f32 %v446_v54, %v5640_v21  ;;  %v899_v60 = vand.u32 4294901760, %v898_v1  ;;  %v279_v54 = vld [vmem:[%s5200_s26 + $0x198] sm:$0xff] }
 0x192   : > { %v765_v16 = vpop.f32.mrf.mxu0  ;;  %v1478_v14 = vpop.f32.mrf.mxu2 }
 0x193   : > { %8226 = vst [vmem:[#allocation48_spill] sm:$0xff] %v5638_v25  ;;  %v766_v57 = vadd.f32 %v5585_v3, %v765_v16  ;;  %v3419_v33 = vand.u32 4294901760, %v3418_v4  ;;  %v449_v25 = vsel %vm297_vm1, %v278_v41, 0  ;;  %v905_v59 = vand.u32 4294901760, %v904_v24 }
 0x194   : > { %v1848_v40 = vpop.f32.mrf.mxu3  ;;  %v5654_v19 = vand.u32 4294901760, %v449_v25 }
 0x195   : > { %v1175_v48 = vpop.f32.mrf.mxu1  ;;  %892 = vmatmul.f32.gmra.mxu0 %v891_v26  ;;  %v1172_v27 = vadd.f32 %v1171_v37, %v766_v57  ;;  %3420 = vmatpush.msrb.mxu3 %v3419_v33  ;;  %v906_v41 = vsub.f32 %v904_v24, %v905_v59 }
 0x196   : > { %8228 = vst [vmem:[#allocation50_spill] sm:$0xff] %v5654_v19  ;;  %v912_v33 = vsub.f32 %v449_v25, %v5654_v19 }
 0x197   : > { %v1479_v62 = vadd.f32 %v1478_v14, %v1172_v27  ;;  %1562 = vmatmul.f32.gmra.mxu2 %v896_v52 }
 0x198   : > { %1238 = vmatmul.f32.gmra.mxu1 %v5621_v61  ;;  %v913_v27 = vand.u32 4294901760, %v912_v33 }
 0x199   : > { %v5652_v16 = vadd.f32 %v1848_v40, %v1479_v62  ;;  %1949 = vmatmul.f32.gmra.mxu3 %v897_v36  ;;  %v452_v62 = vsel %vm297_vm1, %v279_v54, 0  ;;  %v907_v40 = vand.u32 4294901760, %v906_v41 }
 0x19a   : > { %v773_v37 = vpop.f32.mrf.mxu0  ;;  %v1483_v26 = vpop.f32.mrf.mxu2  ;;  %v5663_v1 = vand.u32 4294901760, %v452_v62  ;;  %v914_v54 = vsub.f32 %v912_v33, %v913_v27 }
 0x19b   : > { %v774_v57 = vadd.f32 %v5585_v3, %v773_v37 }
 0x19c   : > { %v1854_v17 = vpop.f32.mrf.mxu3  ;;  %8230 = vst [vmem:[#allocation52_spill] sm:$0xff] %v5663_v1  ;;  %v915_v41 = vand.u32 4294901760, %v914_v54 }
 0x19d   : > { %v1179_v4 = vpop.f32.mrf.mxu1  ;;  %900 = vmatmul.f32.gmra.mxu0 %v899_v60  ;;  %v1176_v14 = vadd.f32 %v1175_v48, %v774_v57  ;;  %v280_v57 = vld [vmem:[%s5200_s26 + $0x1a0] sm:$0xff] }
 0x19f   : > { %v1484_v52 = vadd.f32 %v1483_v26, %v1176_v14  ;;  %1567 = vmatmul.f32.gmra.mxu2 %v904_v24  ;;  %v920_v24 = vsub.f32 %v452_v62, %v5663_v1 }
 0x1a0   : > { %1242 = vmatmul.f32.gmra.mxu1 %v5640_v21 }
 0x1a1   : > { %v5661_v36 = vadd.f32 %v1854_v17, %v1484_v52  ;;  %1955 = vmatmul.f32.gmra.mxu3 %v905_v59  ;;  %v455_v17 = vsel %vm297_vm1, %v280_v57, 0  ;;  %v921_v52 = vand.u32 4294901760, %v920_v24 }
 0x1a2   : > { %v781_v37 = vpop.f32.mrf.mxu0  ;;  %v1488_v60 = vpop.f32.mrf.mxu2 }
 0x1a3   : > { %8229 = vst [vmem:[#allocation51_spill] sm:$0xff] %v5661_v36  ;;  %v782_v48 = vadd.f32 %v5585_v3, %v781_v37  ;;  %v5672_v37 = vand.u32 4294901760, %v455_v17  ;;  %v922_v57 = vsub.f32 %v920_v24, %v921_v52 }
 0x1a4   : > { %v1860_v25 = vpop.f32.mrf.mxu3 }
 0x1a5   : > { %v1183_v61 = vpop.f32.mrf.mxu1  ;;  %908 = vmatmul.f32.gmra.mxu0 %v907_v40  ;;  %v1180_v26 = vadd.f32 %v1179_v4, %v782_v48  ;;  %8232 = vst [vmem:[#allocation54_spill] sm:$0xff] %v5672_v37  ;;  %v281_v48 = vld [vmem:[%s5200_s26 + $0x1a8] sm:$0xff]  ;;  %v923_v54 = vand.u32 4294901760, %v922_v57 }
 0x1a7   : > { %v1489_v14 = vadd.f32 %v1488_v60, %v1180_v26  ;;  %1572 = vmatmul.f32.gmra.mxu2 %v912_v33  ;;  %v928_v33 = vsub.f32 %v455_v17, %v5672_v37 }
 0x1a8   : > { %1246 = vmatmul.f32.gmra.mxu1 %v5654_v19 }
 0x1a9   : > { %v5670_v59 = vadd.f32 %v1860_v25, %v1489_v14  ;;  %1961 = vmatmul.f32.gmra.mxu3 %v913_v27  ;;  %v458_v25 = vsel %vm297_vm1, %v281_v48, 0 }
 0x1aa   : > { %v789_v21 = vpop.f32.mrf.mxu0  ;;  %v1493_v40 = vpop.f32.mrf.mxu2  ;;  %v5681_v14 = vand.u32 4294901760, %v458_v25 }
 0x1ab   : > { %8231 = vst [vmem:[#allocation53_spill] sm:$0xff] %v5670_v59  ;;  %v790_v4 = vadd.f32 %v5585_v3, %v789_v21  ;;  %v929_v21 = vand.u32 4294901760, %v928_v33 }
 0x1ac   : > { %v1866_v62 = vpop.f32.mrf.mxu3  ;;  %8234 = vst [vmem:[#allocation56_spill] sm:$0xff] %v5681_v14 }
 0x1ad   : > { %v1187_v36 = vpop.f32.mrf.mxu1  ;;  %916 = vmatmul.f32.gmra.mxu0 %v915_v41  ;;  %v1184_v60 = vadd.f32 %v1183_v61, %v790_v4  ;;  %v282_v4 = vld [vmem:[%s5200_s26 + $0x1b0] sm:$0xff]  ;;  %v930_v48 = vsub.f32 %v928_v33, %v929_v21 }
 0x1af   : > { %v1494_v26 = vadd.f32 %v1493_v40, %v1184_v60  ;;  %1577 = vmatmul.f32.gmra.mxu2 %v920_v24  ;;  %v936_v24 = vsub.f32 %v458_v25, %v5681_v14  ;;  %v931_v57 = vand.u32 4294901760, %v930_v48 }
 0x1b0   : > { %1250 = vmatmul.f32.gmra.mxu1 %v5663_v1 }
 0x1b1   : > { %v5679_v27 = vadd.f32 %v1866_v62, %v1494_v26  ;;  %1967 = vmatmul.f32.gmra.mxu3 %v921_v52  ;;  %v461_v62 = vsel %vm297_vm1, %v282_v4, 0 }
 0x1b2   : > { %v797_v19 = vpop.f32.mrf.mxu0  ;;  %v1498_v41 = vpop.f32.mrf.mxu2  ;;  %v5690_v26 = vand.u32 4294901760, %v461_v62 }
 0x1b3   : > { %8233 = vst [vmem:[#allocation55_spill] sm:$0xff] %v5679_v27  ;;  %v798_v61 = vadd.f32 %v5585_v3, %v797_v19  ;;  %v937_v19 = vand.u32 4294901760, %v936_v24 }
 0x1b4   : > { %v1872_v17 = vpop.f32.mrf.mxu3  ;;  %8236 = vst [vmem:[#allocation58_spill] sm:$0xff] %v5690_v26 }
 0x1b5   : > { %v1191_v59 = vpop.f32.mrf.mxu1  ;;  %924 = vmatmul.f32.gmra.mxu0 %v923_v54  ;;  %v1188_v40 = vadd.f32 %v1187_v36, %v798_v61  ;;  %v283_v61 = vld [vmem:[%s5200_s26 + $0x1b8] sm:$0xff]  ;;  %v938_v4 = vsub.f32 %v936_v24, %v937_v19 }
 0x1b7   : > { %v1499_v60 = vadd.f32 %v1498_v41, %v1188_v40  ;;  %1582 = vmatmul.f32.gmra.mxu2 %v928_v33  ;;  %v944_v33 = vsub.f32 %v461_v62, %v5690_v26  ;;  %v939_v48 = vand.u32 4294901760, %v938_v4 }
 0x1b8   : > { %1254 = vmatmul.f32.gmra.mxu1 %v5672_v37 }
 0x1b9   : > { %v5688_v52 = vadd.f32 %v1872_v17, %v1499_v60  ;;  %1973 = vmatmul.f32.gmra.mxu3 %v929_v21  ;;  %v464_v17 = vsel %vm297_vm1, %v283_v61, 0 }
 0x1ba   : > { %v805_v1 = vpop.f32.mrf.mxu0  ;;  %v1503_v54 = vpop.f32.mrf.mxu2  ;;  %v5699_v60 = vand.u32 4294901760, %v464_v17 }
 0x1bb   : > { %8235 = vst [vmem:[#allocation57_spill] sm:$0xff] %v5688_v52  ;;  %v806_v36 = vadd.f32 %v5585_v3, %v805_v1  ;;  %v945_v1 = vand.u32 4294901760, %v944_v33 }
 0x1bc   : > { %v1878_v25 = vpop.f32.mrf.mxu3 }
 0x1bd   : > { %v1195_v27 = vpop.f32.mrf.mxu1  ;;  %932 = vmatmul.f32.gmra.mxu0 %v931_v57  ;;  %v1192_v41 = vadd.f32 %v1191_v59, %v806_v36  ;;  %v284_v36 = vld [vmem:[%s5200_s26 + $0x1c0] sm:$0xff]  ;;  %v946_v61 = vsub.f32 %v944_v33, %v945_v1 }
 0x1bf   : > { %v1504_v40 = vadd.f32 %v1503_v54, %v1192_v41  ;;  %1587 = vmatmul.f32.gmra.mxu2 %v936_v24  ;;  %v952_v24 = vsub.f32 %v464_v17, %v5699_v60  ;;  %v947_v4 = vand.u32 4294901760, %v946_v61 }
 0x1c0   : > { %1258 = vmatmul.f32.gmra.mxu1 %v5681_v14 }
 0x1c1   : > { %v5697_v21 = vadd.f32 %v1878_v25, %v1504_v40  ;;  %1979 = vmatmul.f32.gmra.mxu3 %v937_v19  ;;  %v467_v25 = vsel %vm297_vm1, %v284_v36, 0 }
 0x1c2   : > { %v813_v37 = vpop.f32.mrf.mxu0  ;;  %v1508_v57 = vpop.f32.mrf.mxu2  ;;  %v5708_v40 = vand.u32 4294901760, %v467_v25 }
 0x1c3   : > { %8237 = vst [vmem:[#allocation59_spill] sm:$0xff] %v5697_v21  ;;  %v814_v59 = vadd.f32 %v5585_v3, %v813_v37  ;;  %v953_v37 = vand.u32 4294901760, %v952_v24 }
 0x1c4   : > { %v1884_v62 = vpop.f32.mrf.mxu3  ;;  %8238 = vst [vmem:[#allocation60_spill] sm:$0xff] %v5708_v40 }
 0x1c5   : > { %v1199_v52 = vpop.f32.mrf.mxu1  ;;  %940 = vmatmul.f32.gmra.mxu0 %v939_v48  ;;  %v1196_v54 = vadd.f32 %v1195_v27, %v814_v59  ;;  %v285_v59 = vld [vmem:[%s5200_s26 + $0x1c8] sm:$0xff]  ;;  %v954_v36 = vsub.f32 %v952_v24, %v953_v37 }
 0x1c7   : > { %v1509_v41 = vadd.f32 %v1508_v57, %v1196_v54  ;;  %1592 = vmatmul.f32.gmra.mxu2 %v944_v33  ;;  %v960_v33 = vsub.f32 %v467_v25, %v5708_v40  ;;  %v955_v61 = vand.u32 4294901760, %v954_v36 }
 0x1c8   : > { %1262 = vmatmul.f32.gmra.mxu1 %v5690_v26 }
 0x1c9   : > { %v5706_v19 = vadd.f32 %v1884_v62, %v1509_v41  ;;  %1985 = vmatmul.f32.gmra.mxu3 %v945_v1  ;;  %v470_v62 = vsel %vm297_vm1, %v285_v59, 0 }
 0x1ca   : > { %v821_v14 = vpop.f32.mrf.mxu0  ;;  %v1513_v48 = vpop.f32.mrf.mxu2  ;;  %v5717_v41 = vand.u32 4294901760, %v470_v62 }
 0x1cb   : > { %v822_v27 = vadd.f32 %v5585_v3, %v821_v14  ;;  %v961_v14 = vand.u32 4294901760, %v960_v33 }
 0x1cc   : > { %v1890_v17 = vpop.f32.mrf.mxu3  ;;  %8239 = vst [vmem:[#allocation61_spill] sm:$0xff] %v5717_v41 }
 0x1cd   : > { %v1203_v21 = vpop.f32.mrf.mxu1  ;;  %948 = vmatmul.f32.gmra.mxu0 %v947_v4  ;;  %v1200_v57 = vadd.f32 %v1199_v52, %v822_v27  ;;  %v286_v52 = vld [vmem:[%s5200_s26 + $0x1d0] sm:$0xff]  ;;  %v962_v59 = vsub.f32 %v960_v33, %v961_v14 }
 0x1cf   : > { %v1514_v54 = vadd.f32 %v1513_v48, %v1200_v57  ;;  %1597 = vmatmul.f32.gmra.mxu2 %v952_v24  ;;  %v968_v24 = vsub.f32 %v470_v62, %v5717_v41  ;;  %v473_v57 = vsel %vm297_vm1, %v286_v52, 0 }
 0x1d0   : > { %1266 = vmatmul.f32.gmra.mxu1 %v5699_v60 }
 0x1d1   : > { %v5715_v1 = vadd.f32 %v1890_v17, %v1514_v54  ;;  %1991 = vmatmul.f32.gmra.mxu3 %v953_v37  ;;  %v5728_v54 = vand.u32 4294901760, %v473_v57 }
 0x1d2   : > { %v829_v26 = vpop.f32.mrf.mxu0  ;;  %v1518_v25 = vpop.f32.mrf.mxu2 }
 0x1d3   : > { %v830_v4 = vadd.f32 %v5585_v3, %v829_v26  ;;  %v963_v3 = vand.u32 4294901760, %v962_v59  ;;  %v969_v26 = vand.u32 4294901760, %v968_v24  ;;  %8240 = vst [vmem:[#allocation62_spill] sm:$0xff] %v5728_v54  ;;  %v976_v52 = vsub.f32 %v473_v57, %v5728_v54 }
 0x1d4   : > { %v1896_v17 = vpop.f32.mrf.mxu3 }
 0x1d5   : > { %v5721_v27 = vpop.f32.mrf.mxu1  ;;  %956 = vmatmul.f32.gmra.mxu0 %v955_v61  ;;  %v1204_v48 = vadd.f32 %v1203_v21, %v830_v4  ;;  %v287_v21 = vld [vmem:[%s5200_s26 + $0x1d8] sm:$0xff]  ;;  %v970_v62 = vsub.f32 %v968_v24, %v969_v26 }
 0x1d7   : > { %v1519_v37 = vadd.f32 %v1518_v25, %v1204_v48  ;;  %1602 = vmatmul.f32.gmra.mxu2 %v960_v33  ;;  %v476_v25 = vsel %vm297_vm1, %v287_v21, 0  ;;  %v971_v33 = vand.u32 4294901760, %v970_v62 }
 0x1d8   : > { %1270 = vmatmul.f32.gmra.mxu1 %v5708_v40  ;;  %v5738_v48 = vand.u32 4294901760, %v476_v25 }
 0x1d9   : > { %v5726_v36 = vadd.f32 %v1896_v17, %v1519_v37  ;;  %1997 = vmatmul.f32.gmra.mxu3 %v961_v14  ;;  %v977_v14 = vand.u32 4294901760, %v976_v52  ;;  %v288_v17 = vld [vmem:[%s5200_s26 + $0x1e0] sm:$0xff] }
 0x1da   : > { %v5730_v61 = vpop.f32.mrf.mxu0  ;;  %8242 = vst [vmem:[#allocation64_spill] sm:$0xff] %v5738_v48  ;;  %v984_v57 = vsub.f32 %v476_v25, %v5738_v48  ;;  %v479_v21 = vsel %vm297_vm1, %v288_v17, 0 }
 0x1db   : > { %v5748_v62 = vand.u32 4294901760, %v479_v21 }
 0x1dd   : > { %v5733_v4 = vpop.f32.mrf.mxu1  ;;  %964 = vmatmul.f32.gmra.mxu0 %v963_v3  ;;  %v978_v3 = vsub.f32 %v976_v52, %v977_v14  ;;  %8244 = vst [vmem:[#allocation66_spill] sm:$0xff] %v5748_v62  ;;  %v992_v25 = vsub.f32 %v479_v21, %v5748_v62 }
 0x1de   : > { %8241 = vst [vmem:[#allocation63_spill] sm:$0xff] %v5733_v4  ;;  %v289_v4 = vld [vmem:[%s5200_s26 + $0x1e8] sm:$0xff] }
 0x1df   : > { %1607 = vmatmul.f32.gmra.mxu2 %v968_v24  ;;  %v979_v24 = vand.u32 4294901760, %v978_v3  ;;  %v482_v17 = vsel %vm297_vm1, %v289_v4, 0 }
 0x1e0   : > { %1274 = vmatmul.f32.gmra.mxu1 %v5717_v41  ;;  %v5758_v3 = vand.u32 4294901760, %v482_v17 }
 0x1e1   : > { %2003 = vmatmul.f32.gmra.mxu3 %v969_v26  ;;  %v985_v26 = vand.u32 4294901760, %v984_v57 }
 0x1e2   : > { %v5740_v59 = vpop.f32.mrf.mxu0  ;;  %8247 = vst [vmem:[#allocation69_spill] sm:$0xff] %v5758_v3  ;;  %v1000_v21 = vsub.f32 %v482_v17, %v5758_v3 }
 0x1e5   : > { %v5743_v37 = vpop.f32.mrf.mxu1  ;;  %972 = vmatmul.f32.gmra.mxu0 %v971_v33  ;;  %v986_v33 = vsub.f32 %v984_v57, %v985_v26 }
 0x1e6   : > { %8243 = vst [vmem:[#allocation65_spill] sm:$0xff] %v5743_v37  ;;  %v290_v37 = vld [vmem:[%s5200_s26 + $0x1f0] sm:$0xff] }
 0x1e7   : > { %1612 = vmatmul.f32.gmra.mxu2 %v976_v52  ;;  %v987_v52 = vand.u32 4294901760, %v986_v33  ;;  %v485_v4 = vsel %vm297_vm1, %v290_v37, 0 }
 0x1e8   : > { %1278 = vmatmul.f32.gmra.mxu1 %v5728_v54  ;;  %v5768_v33 = vand.u32 4294901760, %v485_v4 }
 0x1e9   : > { %2009 = vmatmul.f32.gmra.mxu3 %v977_v14  ;;  %v993_v14 = vand.u32 4294901760, %v992_v25 }
 0x1ea   : > { %v5750_v41 = vpop.f32.mrf.mxu0  ;;  %8250 = vst [vmem:[#allocation72_spill] sm:$0xff] %v5768_v33 }
 0x1eb   : > { %8245 = vst [vmem:[#allocation67_spill] sm:$0xff] %v5750_v41 }
 0x1ed   : > { %v5753_v40 = vpop.f32.mrf.mxu1  ;;  %980 = vmatmul.f32.gmra.mxu0 %v979_v24  ;;  %v994_v24 = vsub.f32 %v992_v25, %v993_v14 }
 0x1ee   : > { %8246 = vst [vmem:[#allocation68_spill] sm:$0xff] %v5753_v40  ;;  %v291_v40 = vld [vmem:[%s5200_s26 + $0x1f8] sm:$0xff] }
 0x1ef   : > { %1617 = vmatmul.f32.gmra.mxu2 %v984_v57  ;;  %v995_v57 = vand.u32 4294901760, %v994_v24  ;;  %v488_v17 = vsel %vm297_vm1, %v291_v40, 0 }
 0x1f0   : > { %1282 = vmatmul.f32.gmra.mxu1 %v5738_v48 }
 0x1f1   : > { %2015 = vmatmul.f32.gmra.mxu3 %v985_v26  ;;  %v1001_v26 = vand.u32 4294901760, %v1000_v21 }
 0x1f2   : > { %v5760_v54 = vpop.f32.mrf.mxu0 }
 0x1f3   : > { %8248 = vst [vmem:[#allocation70_spill] sm:$0xff] %v5760_v54 }
 0x1f5   : > { %v5763_v41 = vpop.f32.mrf.mxu1  ;;  %988 = vmatmul.f32.gmra.mxu0 %v987_v52  ;;  %v1002_v52 = vsub.f32 %v1000_v21, %v1001_v26 }
 0x1f6   : > { %8249 = vst [vmem:[#allocation71_spill] sm:$0xff] %v5763_v41  ;;  %v1008_v41 = vsub.f32 %v485_v4, %v5768_v33 }
 0x1f7   : > { %1622 = vmatmul.f32.gmra.mxu2 %v992_v25  ;;  %v1003_v37 = vand.u32 4294901760, %v1002_v52  ;;  %v2657_v52 = vld [vmem:[%s7816_s3] sm:$0xff] }
 0x1f8   : > { %1286 = vmatmul.f32.gmra.mxu1 %v5748_v62  ;;  %v1009_v25 = vand.u32 4294901760, %v1008_v41 }
 0x1f9   : > { %2021 = vmatmul.f32.gmra.mxu3 %v993_v14  ;;  %v5778_v14 = vand.u32 4294901760, %v488_v17 }
 0x1fa   : > { %v5770_v48 = vpop.f32.mrf.mxu0 }
 0x1fd   : > { %v5773_v54 = vpop.f32.mrf.mxu1  ;;  %996 = vmatmul.f32.gmra.mxu0 %v995_v57  ;;  %v1016_v57 = vsub.f32 %v488_v17, %v5778_v14 }
 0x1fe   : > { %8251 = vst [vmem:[#allocation73_spill] sm:$0xff] %v5773_v54  ;;  %v1010_v54 = vsub.f32 %v1008_v41, %v1009_v25 }
 0x1ff   : > { %1627 = vmatmul.f32.gmra.mxu2 %v1000_v21  ;;  %v1017_v4 = vand.u32 4294901760, %v1016_v57 }
 0x200   : > { %1290 = vmatmul.f32.gmra.mxu1 %v5758_v3  ;;  %v1011_v40 = vand.u32 4294901760, %v1010_v54 }
 0x201   : > { %2027 = vmatmul.f32.gmra.mxu3 %v1001_v26 }
 0x202   : > { %v5780_v24 = vpop.f32.mrf.mxu0 }
 0x205   : > { %v5782_v62 = vpop.f32.mrf.mxu1  ;;  %1004 = vmatmul.f32.gmra.mxu0 %v1003_v37  ;;  %v2876_v37 = vand.u32 4294901760, %v2657_v52 }
 0x206   : > { %8252 = vst [vmem:[#allocation74_spill] sm:$0xff] %v5782_v62  ;;  %v1018_v62 = vsub.f32 %v1016_v57, %v1017_v4 }
 0x207   : > { %1632 = vmatmul.f32.gmra.mxu2 %v1008_v41  ;;  %v3422_v17 = vsub.f32 %v2657_v52, %v2876_v37  ;;  %4048 = vmatpush.msra.mxu1 %v2876_v37  ;;  %v8256_v52 = vand.u32 4294901760, %v5634_v38 }
 0x208   : > { %1294 = vmatmul.f32.gmra.mxu1 %v5768_v33  ;;  %2877 = vmatpush.msrb.mxu2 %v2876_v37  ;;  %v1019_v41 = vand.u32 4294901760, %v1018_v62 }
 0x209   : > { %2033 = vmatmul.f32.gmra.mxu3 %v1009_v25  ;;  %v3423_v54 = vand.u32 4294901760, %v3422_v17  ;;  %v8254_v25 = vand.u32 4294901760, %v5311_v8  ;;  %3707 = vmatpush.msra.mxu0 %v3422_v17 }
 0x20a   : > { %v5786_v21 = vpop.f32.mrf.mxu0 }
 0x20b   : > { %4449 = vmatpush.msra.mxu2 %v8254_v25  ;;  %v3424_v33 = vsub.f32 %v3422_v17, %v3423_v54 }
 0x20d   : > { %v5788_v26 = vpop.f32.mrf.mxu1  ;;  %1012 = vmatmul.f32.gmra.mxu0 %v1011_v40  ;;  %v8255_v40 = vand.u32 4294901760, %v5470_v46 }
 0x20e   : > { %8253 = vst [vmem:[#allocation75_spill] sm:$0xff] %v5788_v26 }
 0x20f   : > { %1637 = vmatmul.f32.gmra.mxu2 %v1016_v57  ;;  %v3425_v57 = vand.u32 4294901760, %v3424_v33  ;;  %v5832_v33 = vpop.f32.mrf.mxu3 }
 0x210   : > { %1298 = vmatmul.f32.gmra.mxu1 %v5778_v14  ;;  %4453 = vmatpush.msra.mxu2 %v8255_v40 }
 0x211   : > { %2039 = vmatmul.f32.gmra.mxu3 %v1017_v4 }
 0x212   : > { %v5796_v26 = vpop.f32.mrf.mxu0  ;;  %4457 = vmatpush.msra.mxu2 %v8256_v52  ;;  %3426 = vmatpush.msrb.mxu3 %v3425_v57 }
 0x214   : > { %4732 = vmatpush.msra.mxu3 %v5306_v5  ;;  %4461 = vmatpush.msra.mxu2 %v3423_v54 }
 0x215   : > { %v5800_v3 = vpop.f32.mrf.mxu1  ;;  %1020 = vmatmul.f32.gmra.mxu0 %v1019_v41 }
 0x216   : > { %4734 = vmatpush.msra.mxu3 %v5465_v9 }
 0x217   : > { %v5844_v17 = vpop.f32.mrf.mxu3 }
 0x218   : > { %2337 = vmatmul.f32.vlgmr.msrb.gmra.mxu1 %v5206_v10  ;;  %4736 = vmatpush.msra.mxu3 %v5629_v32 }
 0x21a   : > { %v5806_v8 = vpop.f32.mrf.mxu0  ;;  %4738 = vmatpush.msra.mxu3 %v2876_v37 }
 0x21d   : > { %v5809_v62 = vpop.f32.mrf.mxu1  ;;  %2063 = vmatmul.f32.vlgmr.msrb.gmra.mxu0 %v5206_v10 }
 0x220   : > { %2341 = vmatmul.f32.gmra.mxu1 %v5208_v11 }
 0x222   : > { %v5814_v46 = vpop.f32.mrf.mxu0 }
 0x225   : > { %v5816_v38 = vpop.f32.mrf.mxu1  ;;  %2067 = vmatmul.f32.gmra.mxu0 %v5208_v11 }
 0x226   : > { %8257 = vst [vmem:[#allocation76_spill] sm:$0xff] %v5816_v38 }
 0x228   : > { %2345 = vmatmul.f32.gmra.mxu1 %v5215_v20 }
 0x22a   : > { %v5820_v5 = vpop.f32.mrf.mxu0 }
 0x22b   : > { %8258 = vst [vmem:[#allocation77_spill] sm:$0xff] %v5820_v5 }
 0x22d   : > { %v5822_v9 = vpop.f32.mrf.mxu1  ;;  %2071 = vmatmul.f32.gmra.mxu0 %v5215_v20  ;;  %v5840_v20 = vpop.f32.mrf.mxu2 }
 0x22e   : > { %8259 = vst [vmem:[#allocation78_spill] sm:$0xff] %v5822_v9 }
 0x230   : > { %2349 = vmatmul.f32.gmra.mxu1 %v5221_v28 }
 0x232   : > { %v5826_v10 = vpop.f32.mrf.mxu0 }
 0x233   : > { %8260 = vst [vmem:[#allocation79_spill] sm:$0xff] %v5826_v10 }
 0x235   : > { %v5828_v32 = vpop.f32.mrf.mxu1  ;;  %2075 = vmatmul.f32.gmra.mxu0 %v5221_v28  ;;  %v5852_v54 = vpop.f32.mrf.mxu2 }
 0x236   : > { %8261 = vst [vmem:[#allocation80_spill] sm:$0xff] %v5828_v32 }
 0x238   : > { %2353 = vmatmul.f32.gmra.mxu1 %v5227_v35 }
 0x23a   : > { %v5834_v11 = vpop.f32.mrf.mxu0 }
 0x23b   : > { %8262 = vst [vmem:[#allocation81_spill] sm:$0xff] %v5834_v11 }
 0x23d   : > { %v5836_v4 = vpop.f32.mrf.mxu1  ;;  %2079 = vmatmul.f32.gmra.mxu0 %v5227_v35  ;;  %v5856_v35 = vpop.f32.mrf.mxu3 }
 0x23e   : > { %8263 = vst [vmem:[#allocation82_spill] sm:$0xff] %v5836_v4  ;;  %v5864_v52 = vpop.f32.mrf.mxu2 }
 0x240   : > { %2357 = vmatmul.f32.gmra.mxu1 %v5233_v42 }
 0x242   : > { %v5842_v37 = vpop.f32.mrf.mxu0 }
 0x243   : > { %8264 = vst [vmem:[#allocation83_spill] sm:$0xff] %v5842_v37 }
 0x245   : > { %v5846_v41 = vpop.f32.mrf.mxu1  ;;  %2083 = vmatmul.f32.gmra.mxu0 %v5233_v42  ;;  %v5867_v42 = vpop.f32.mrf.mxu3 }
 0x246   : > { %8265 = vst [vmem:[#allocation84_spill] sm:$0xff] %v5846_v41 }
 0x248   : > { %2361 = vmatmul.f32.gmra.mxu1 %v5239_v49 }
 0x24a   : > { %v5850_v28 = vpop.f32.mrf.mxu0 }
 0x24b   : > { %8266 = vst [vmem:[#allocation85_spill] sm:$0xff] %v5850_v28 }
 0x24d   : > { %v5854_v25 = vpop.f32.mrf.mxu1  ;;  %2087 = vmatmul.f32.gmra.mxu0 %v5239_v49  ;;  %v5875_v49 = vpop.f32.mrf.mxu2 }
 0x24e   : > { %8267 = vst [vmem:[#allocation86_spill] sm:$0xff] %v5854_v25 }
 0x250   : > { %2365 = vmatmul.f32.gmra.mxu1 %v5245_v56 }
 0x252   : > { %v5860_v40 = vpop.f32.mrf.mxu0 }
 0x253   : > { %8268 = vst [vmem:[#allocation87_spill] sm:$0xff] %v5860_v40  ;;  %v5878_v40 = vpop.f32.mrf.mxu3 }
 0x255   : > { %v5862_v57 = vpop.f32.mrf.mxu1  ;;  %2091 = vmatmul.f32.gmra.mxu0 %v5245_v56  ;;  %v5886_v56 = vpop.f32.mrf.mxu2 }
 0x256   : > { %8269 = vst [vmem:[#allocation88_spill] sm:$0xff] %v5862_v57 }
 0x258   : > { %2369 = vmatmul.f32.gmra.mxu1 %v5251_v63 }
 0x25a   : > { %v5870_v41 = vpop.f32.mrf.mxu0 }
 0x25b   : > { %8270 = vst [vmem:[#allocation89_spill] sm:$0xff] %v5870_v41 }
 0x25d   : > { %v5872_v25 = vpop.f32.mrf.mxu1  ;;  %2095 = vmatmul.f32.gmra.mxu0 %v5251_v63 }
 0x25e   : > { %8271 = vst [vmem:[#allocation90_spill] sm:$0xff] %v5872_v25  ;;  %v5890_v25 = vpop.f32.mrf.mxu3 }
 0x260   : > { %2373 = vmatmul.f32.gmra.mxu1 %v5257_v6 }
 0x262   : > { %v5880_v57 = vpop.f32.mrf.mxu0 }
 0x263   : > { %8272 = vst [vmem:[#allocation91_spill] sm:$0xff] %v5880_v57  ;;  %v5898_v57 = vpop.f32.mrf.mxu2 }
 0x265   : > { %v5882_v28 = vpop.f32.mrf.mxu1  ;;  %2099 = vmatmul.f32.gmra.mxu0 %v5257_v6 }
 0x266   : > { %8273 = vst [vmem:[#allocation92_spill] sm:$0xff] %v5882_v28  ;;  %v5902_v6 = vpop.f32.mrf.mxu3 }
 0x268   : > { %2377 = vmatmul.f32.gmra.mxu1 %v5263_v15 }
 0x26a   : > { %v5888_v41 = vpop.f32.mrf.mxu0 }
 0x26b   : > { %8274 = vst [vmem:[#allocation93_spill] sm:$0xff] %v5888_v41 }
 0x26d   : > { %v5892_v63 = vpop.f32.mrf.mxu1  ;;  %2103 = vmatmul.f32.gmra.mxu0 %v5263_v15 }
 0x26e   : > { %8275 = vst [vmem:[#allocation94_spill] sm:$0xff] %v5892_v63  ;;  %v5910_v63 = vpop.f32.mrf.mxu2  ;;  %v5913_v15 = vpop.f32.mrf.mxu3 }
 0x270   : > { %2381 = vmatmul.f32.gmra.mxu1 %v5269_v23 }
 0x272   : > { %v5896_v4 = vpop.f32.mrf.mxu0 }
 0x273   : > { %8276 = vst [vmem:[#allocation95_spill] sm:$0xff] %v5896_v4 }
 0x275   : > { %v5900_v28 = vpop.f32.mrf.mxu1  ;;  %2107 = vmatmul.f32.gmra.mxu0 %v5269_v23 }
 0x276   : > { %8277 = vst [vmem:[#allocation96_spill] sm:$0xff] %v5900_v28  ;;  %v5921_v23 = vpop.f32.mrf.mxu2 }
 0x278   : > { %2385 = vmatmul.f32.gmra.mxu1 %v5275_v31 }
 0x27a   : > { %v5906_v41 = vpop.f32.mrf.mxu0 }
 0x27b   : > { %8278 = vst [vmem:[#allocation97_spill] sm:$0xff] %v5906_v41  ;;  %v5924_v41 = vpop.f32.mrf.mxu3 }
 0x27d   : > { %v5908_v37 = vpop.f32.mrf.mxu1  ;;  %2111 = vmatmul.f32.gmra.mxu0 %v5275_v31 }
 0x27e   : > { %8279 = vst [vmem:[#allocation98_spill] sm:$0xff] %v5908_v37  ;;  %v5932_v31 = vpop.f32.mrf.mxu2 }
 0x280   : > { %2389 = vmatmul.f32.gmra.mxu1 %v5281_v39 }
 0x282   : > { %v5916_v4 = vpop.f32.mrf.mxu0 }
 0x283   : > { %8280 = vst [vmem:[#allocation99_spill] sm:$0xff] %v5916_v4 }
 0x285   : > { %v5918_v28 = vpop.f32.mrf.mxu1  ;;  %2115 = vmatmul.f32.gmra.mxu0 %v5281_v39 }
 0x286   : > { %8281 = vst [vmem:[#allocation100_spill] sm:$0xff] %v5918_v28  ;;  %v5936_v28 = vpop.f32.mrf.mxu3  ;;  %v5940_v9 = vpop.f32.mrf.mxu2 }
 0x287   : > { %8285 = vst [vmem:[#allocation104_spill] sm:$0xff] %v5936_v28 }
 0x288   : > { %2393 = vmatmul.f32.gmra.mxu1 %v5287_v47  ;;  %8286 = vst [vmem:[#allocation105_spill] sm:$0xff] %v5940_v9 }
 0x28a   : > { %v5926_v37 = vpop.f32.mrf.mxu0 }
 0x28b   : > { %8282 = vst [vmem:[#allocation101_spill] sm:$0xff] %v5926_v37 }
 0x28d   : > { %v5928_v32 = vpop.f32.mrf.mxu1  ;;  %2119 = vmatmul.f32.gmra.mxu0 %v5287_v47 }
 0x28e   : > { %8283 = vst [vmem:[#allocation102_spill] sm:$0xff] %v5928_v32  ;;  %v5943_v47 = vpop.f32.mrf.mxu3 }
 0x290   : > { %2397 = vmatmul.f32.gmra.mxu1 %v5293_v55 }
 0x292   : > { %v5934_v4 = vpop.f32.mrf.mxu0 }
 0x293   : > { %8284 = vst [vmem:[#allocation103_spill] sm:$0xff] %v5934_v4 }
 0x295   : > { %v2338_v39 = vpop.f32.mrf.mxu1  ;;  %2123 = vmatmul.f32.gmra.mxu0 %v5293_v55 }
 0x298   : > { %2401 = vmatmul.f32.gmra.mxu1 %v5299_v0 }
 0x29a   : > { %v2064_v11 = vpop.f32.mrf.mxu0 }
 0x29b   : > { %v2065_v32 = vadd.f32 %v2064_v11, %v5338_v45  ;;  %v5959_v11 = vpop.f32.mrf.mxu3 }
 0x29c   : > { %8288 = vst [vmem:[#allocation107_spill] sm:$0xff] %v5959_v11 }
 0x29d   : > { %v2342_v37 = vpop.f32.mrf.mxu1  ;;  %v2339_v10 = vadd.f32 %v2338_v39, %v2065_v32  ;;  %2127 = vmatmul.f32.gmra.mxu0 %v5299_v0  ;;  %v5955_v32 = vpop.f32.mrf.mxu2 }
 0x29f   : > { %v2593_v4 = vmax.f32 %v2339_v10, 0.0 }
 0x2a0   : > { %2405 = vmatmul.f32.gmra.mxu1 %v5315_v13 }
 0x2a1   : > { %v2667_v38 = vsel %vm2665_vm2, %v2593_v4, 0 }
 0x2a2   : > { %v5948_v55 = vand.u32 4294901760, %v2667_v38  ;;  %v2068_v28 = vpop.f32.mrf.mxu0 }
 0x2a3   : > { %v2069_v5 = vadd.f32 %v2068_v28, %v5347_v2 }
 0x2a4   : > { %8287 = vst [vmem:[#allocation106_spill] sm:$0xff] %v5948_v55  ;;  %v5952_v9 = vsub.f32 %v2667_v38, %v5948_v55  ;;  %3428 = vmatmul.f32.vlgmr.msrb.gmra.mxu3 %v5948_v55 }
 0x2a5   : > { %v2346_v45 = vpop.f32.mrf.mxu1  ;;  %v2343_v0 = vadd.f32 %v2342_v37, %v2069_v5  ;;  %2131 = vmatmul.f32.gmra.mxu0 %v5315_v13  ;;  %v5975_v11 = vpop.f32.mrf.mxu2 }
 0x2a6   : > { %v7898_v10 = vand.u32 4294901760, %v5952_v9 }
 0x2a7   : > { %v2594_v4 = vmax.f32 %v2343_v0, 0.0 }
 0x2a8   : > { %2409 = vmatmul.f32.gmra.mxu1 %v5331_v29  ;;  %v2881_v2 = vsub.f32 %v5952_v9, %v7898_v10 }
 0x2a9   : > { %v2670_v38 = vsel %vm2665_vm2, %v2594_v4, 0 }
 0x2aa   : > { %v5966_v28 = vand.u32 4294901760, %v2670_v38  ;;  %v2072_v39 = vpop.f32.mrf.mxu0  ;;  %v2882_v55 = vand.u32 4294901760, %v2881_v2  ;;  %v5981_v2 = vpop.f32.mrf.mxu3 }
 0x2ab   : > { %v2073_v5 = vadd.f32 %v2072_v39, %v5356_v30  ;;  %8290 = vst [vmem:[#allocation109_spill] sm:$0xff] %v5981_v2 }
 0x2ac   : > { %8289 = vst [vmem:[#allocation108_spill] sm:$0xff] %v5966_v28  ;;  %v5970_v13 = vsub.f32 %v2670_v38, %v5966_v28  ;;  %2883 = vmatmul.f32.vlgmr.msrb.gmra.mxu2 %v2882_v55  ;;  %3432 = vmatmul.f32.gmra.mxu3 %v5966_v28 }
 0x2ad   : > { %v2350_v37 = vpop.f32.mrf.mxu1  ;;  %v2347_v0 = vadd.f32 %v2346_v45, %v2073_v5  ;;  %2135 = vmatmul.f32.gmra.mxu0 %v5331_v29 }
 0x2ae   : > { %v7901_v10 = vand.u32 4294901760, %v5970_v13 }
 0x2af   : > { %v2595_v4 = vmax.f32 %v2347_v0, 0.0 }
 0x2b0   : > { %2413 = vmatmul.f32.gmra.mxu1 %v5340_v50  ;;  %v2889_v30 = vsub.f32 %v5970_v13, %v7901_v10 }
 0x2b1   : > { %v2673_v55 = vsel %vm2665_vm2, %v2595_v4, 0 }
 0x2b2   : > { %v5984_v38 = vand.u32 4294901760, %v2673_v55  ;;  %v2076_v45 = vpop.f32.mrf.mxu0  ;;  %v2890_v39 = vand.u32 4294901760, %v2889_v30 }
 0x2b3   : > { %v2077_v29 = vadd.f32 %v2076_v45, %v5365_v53  ;;  %v5997_v53 = vpop.f32.mrf.mxu2 }
 0x2b4   : > { %8291 = vst [vmem:[#allocation110_spill] sm:$0xff] %v5984_v38  ;;  %v5988_v5 = vsub.f32 %v2673_v55, %v5984_v38  ;;  %2891 = vmatmul.f32.gmra.mxu2 %v2890_v39  ;;  %3436 = vmatmul.f32.gmra.mxu3 %v5984_v38 }
 0x2b5   : > { %v2354_v0 = vpop.f32.mrf.mxu1  ;;  %v2351_v28 = vadd.f32 %v2350_v37, %v2077_v29  ;;  %2139 = vmatmul.f32.gmra.mxu0 %v5340_v50  ;;  %v6002_v37 = vpop.f32.mrf.mxu3 }
 0x2b6   : > { %v7902_v10 = vand.u32 4294901760, %v5988_v5  ;;  %8293 = vst [vmem:[#allocation112_spill] sm:$0xff] %v6002_v37 }
 0x2b7   : > { %v2596_v2 = vmax.f32 %v2351_v28, 0.0 }
 0x2b8   : > { %2417 = vmatmul.f32.gmra.mxu1 %v5349_v7  ;;  %v2897_v4 = vsub.f32 %v5988_v5, %v7902_v10 }
 0x2b9   : > { %v2676_v30 = vsel %vm2665_vm2, %v2596_v2, 0 }
 0x2ba   : > { %v6000_v55 = vand.u32 4294901760, %v2676_v30  ;;  %v2080_v45 = vpop.f32.mrf.mxu0  ;;  %v2898_v39 = vand.u32 4294901760, %v2897_v4 }
 0x2bb   : > { %v2081_v50 = vadd.f32 %v2080_v45, %v5374_v18  ;;  %v6018_v37 = vpop.f32.mrf.mxu2 }
 0x2bc   : > { %8292 = vst [vmem:[#allocation111_spill] sm:$0xff] %v6000_v55  ;;  %v6006_v28 = vsub.f32 %v2676_v30, %v6000_v55  ;;  %2899 = vmatmul.f32.gmra.mxu2 %v2898_v39  ;;  %3440 = vmatmul.f32.gmra.mxu3 %v6000_v55 }
 0x2bd   : > { %v2358_v29 = vpop.f32.mrf.mxu1  ;;  %v2355_v10 = vadd.f32 %v2354_v0, %v2081_v50  ;;  %2143 = vmatmul.f32.gmra.mxu0 %v5349_v7  ;;  %8295 = vst [vmem:[#allocation114_spill] sm:$0xff] %v6018_v37  ;;  %v6025_v50 = vpop.f32.mrf.mxu3 }
 0x2be   : > { %v7905_v2 = vand.u32 4294901760, %v6006_v28  ;;  %8296 = vst [vmem:[#allocation115_spill] sm:$0xff] %v6025_v50 }
 0x2bf   : > { %v2597_v38 = vmax.f32 %v2355_v10, 0.0 }
 0x2c0   : > { %2421 = vmatmul.f32.gmra.mxu1 %v5358_v34  ;;  %v2905_v4 = vsub.f32 %v6006_v28, %v7905_v2 }
 0x2c1   : > { %v2679_v18 = vsel %vm2665_vm2, %v2597_v38, 0 }
 0x2c2   : > { %v6016_v30 = vand.u32 4294901760, %v2679_v18  ;;  %v2084_v45 = vpop.f32.mrf.mxu0  ;;  %v2906_v39 = vand.u32 4294901760, %v2905_v4 }
 0x2c3   : > { %v2085_v0 = vadd.f32 %v2084_v45, %v5383_v44 }
 0x2c4   : > { %8294 = vst [vmem:[#allocation113_spill] sm:$0xff] %v6016_v30  ;;  %v6022_v7 = vsub.f32 %v2679_v18, %v6016_v30  ;;  %2907 = vmatmul.f32.gmra.mxu2 %v2906_v39  ;;  %3444 = vmatmul.f32.gmra.mxu3 %v6016_v30 }
 0x2c5   : > { %v2362_v10 = vpop.f32.mrf.mxu1  ;;  %v2359_v2 = vadd.f32 %v2358_v29, %v2085_v0  ;;  %2147 = vmatmul.f32.gmra.mxu0 %v5358_v34 }
 0x2c6   : > { %v7910_v38 = vand.u32 4294901760, %v6022_v7 }
 0x2c7   : > { %v2598_v55 = vmax.f32 %v2359_v2, 0.0  ;;  %v6041_v2 = vpop.f32.mrf.mxu2 }
 0x2c8   : > { %2425 = vmatmul.f32.gmra.mxu1 %v5367_v58  ;;  %v2913_v44 = vsub.f32 %v6022_v7, %v7910_v38  ;;  %8299 = vst [vmem:[#allocation118_spill] sm:$0xff] %v6041_v2  ;;  %v6045_v38 = vpop.f32.mrf.mxu3  ;;  %v8366_v2 = vld [vmem:[#allocation26_spill] sm:$0xff] }
 0x2c9   : > { %v2682_v4 = vsel %vm2665_vm2, %v2598_v55, 0  ;;  %8300 = vst [vmem:[#allocation119_spill] sm:$0xff] %v6045_v38 }
 0x2ca   : > { %v6034_v18 = vand.u32 4294901760, %v2682_v4  ;;  %v2088_v45 = vpop.f32.mrf.mxu0  ;;  %v2914_v39 = vand.u32 4294901760, %v2913_v44 }
 0x2cb   : > { %v2089_v30 = vadd.f32 %v2088_v45, %v5392_v12 }
 0x2cc   : > { %8297 = vst [vmem:[#allocation116_spill] sm:$0xff] %v6034_v18  ;;  %v6038_v29 = vsub.f32 %v2682_v4, %v6034_v18  ;;  %2915 = vmatmul.f32.gmra.mxu2 %v2914_v39  ;;  %3448 = vmatmul.f32.gmra.mxu3 %v6034_v18 }
 0x2cd   : > { %v2366_v34 = vpop.f32.mrf.mxu1  ;;  %v2363_v0 = vadd.f32 %v2362_v10, %v2089_v30  ;;  %2151 = vmatmul.f32.gmra.mxu0 %v5367_v58 }
 0x2ce   : > { %8298 = vst [vmem:[#allocation117_spill] sm:$0xff] %v6038_v29  ;;  %v7911_v55 = vand.u32 4294901760, %v6038_v29 }
 0x2cf   : > { %v2599_v50 = vmax.f32 %v2363_v0, 0.0  ;;  %v6061_v18 = vpop.f32.mrf.mxu2 }
 0x2d0   : > { %2429 = vmatmul.f32.gmra.mxu1 %v5376_v22  ;;  %v2921_v12 = vsub.f32 %v6038_v29, %v7911_v55  ;;  %8303 = vst [vmem:[#allocation122_spill] sm:$0xff] %v6061_v18 }
 0x2d1   : > { %v2685_v44 = vsel %vm2665_vm2, %v2599_v50, 0 }
 0x2d2   : > { %v6052_v4 = vand.u32 4294901760, %v2685_v44  ;;  %v2092_v45 = vpop.f32.mrf.mxu0  ;;  %v2922_v39 = vand.u32 4294901760, %v2921_v12  ;;  %v6067_v12 = vpop.f32.mrf.mxu3 }
 0x2d3   : > { %v2093_v30 = vadd.f32 %v2092_v45, %v5401_v43  ;;  %8304 = vst [vmem:[#allocation123_spill] sm:$0xff] %v6067_v12 }
 0x2d4   : > { %8301 = vst [vmem:[#allocation120_spill] sm:$0xff] %v6052_v4  ;;  %v6056_v58 = vsub.f32 %v2685_v44, %v6052_v4  ;;  %2923 = vmatmul.f32.gmra.mxu2 %v2922_v39  ;;  %3452 = vmatmul.f32.gmra.mxu3 %v6052_v4 }
 0x2d5   : > { %v2370_v10 = vpop.f32.mrf.mxu1  ;;  %v2367_v0 = vadd.f32 %v2366_v34, %v2093_v30  ;;  %2155 = vmatmul.f32.gmra.mxu0 %v5376_v22  ;;  %v8306_v22 = vld [vmem:[#allocation4_spill] sm:$0xff] }
 0x2d6   : > { %8302 = vst [vmem:[#allocation121_spill] sm:$0xff] %v6056_v58  ;;  %v7916_v55 = vand.u32 4294901760, %v6056_v58 }
 0x2d7   : > { %v2600_v50 = vmax.f32 %v2367_v0, 0.0 }
 0x2d8   : > { %2433 = vmatmul.f32.gmra.mxu1 %v5385_v51  ;;  %v2929_v43 = vsub.f32 %v6056_v58, %v7916_v55 }
 0x2d9   : > { %v2688_v44 = vsel %vm2665_vm2, %v2600_v50, 0  ;;  %v8308_v50 = vld [vmem:[#allocation2_spill] sm:$0xff] }
 0x2da   : > { %v6070_v45 = vand.u32 4294901760, %v2688_v44  ;;  %v2096_v34 = vpop.f32.mrf.mxu0  ;;  %v2930_v39 = vand.u32 4294901760, %v2929_v43 }
 0x2db   : > { %v2097_v30 = vadd.f32 %v2096_v34, %v8306_v22  ;;  %v6083_v34 = vpop.f32.mrf.mxu2 }
 0x2dc   : > { %8305 = vst [vmem:[#allocation124_spill] sm:$0xff] %v6070_v45  ;;  %v6074_v4 = vsub.f32 %v2688_v44, %v6070_v45  ;;  %2931 = vmatmul.f32.gmra.mxu2 %v2930_v39  ;;  %3456 = vmatmul.f32.gmra.mxu3 %v6070_v45 }
 0x2dd   : > { %v2374_v0 = vpop.f32.mrf.mxu1  ;;  %v2371_v38 = vadd.f32 %v2370_v10, %v2097_v30  ;;  %2159 = vmatmul.f32.gmra.mxu0 %v5385_v51  ;;  %8309 = vst [vmem:[#allocation2_spill] sm:$0xff] %v6083_v34  ;;  %v6088_v10 = vpop.f32.mrf.mxu3  ;;  %v8312_v51 = vld [vmem:[#allocation6_spill] sm:$0xff] }
 0x2de   : > { %8307 = vst [vmem:[#allocation4_spill] sm:$0xff] %v6074_v4  ;;  %v7919_v55 = vand.u32 4294901760, %v6074_v4 }
 0x2df   : > { %v2601_v12 = vmax.f32 %v2371_v38, 0.0  ;;  %8311 = vst [vmem:[#allocation126_spill] sm:$0xff] %v6088_v10 }
 0x2e0   : > { %2437 = vmatmul.f32.gmra.mxu1 %v8308_v50  ;;  %v2937_v43 = vsub.f32 %v6074_v4, %v7919_v55  ;;  %v8314_v4 = vld [vmem:[#allocation3_spill] sm:$0xff] }
 0x2e1   : > { %v2691_v44 = vsel %vm2665_vm2, %v2601_v12, 0 }
 0x2e2   : > { %v6086_v22 = vand.u32 4294901760, %v2691_v44  ;;  %v2100_v39 = vpop.f32.mrf.mxu0  ;;  %v2938_v45 = vand.u32 4294901760, %v2937_v43 }
 0x2e3   : > { %v2101_v30 = vadd.f32 %v2100_v39, %v8312_v51  ;;  %v6104_v10 = vpop.f32.mrf.mxu2 }
 0x2e4   : > { %8310 = vst [vmem:[#allocation125_spill] sm:$0xff] %v6086_v22  ;;  %v6092_v38 = vsub.f32 %v2691_v44, %v6086_v22  ;;  %2939 = vmatmul.f32.gmra.mxu2 %v2938_v45  ;;  %3460 = vmatmul.f32.gmra.mxu3 %v6086_v22 }
 0x2e5   : > { %v2378_v18 = vpop.f32.mrf.mxu1  ;;  %v2375_v55 = vadd.f32 %v2374_v0, %v2101_v30  ;;  %2163 = vmatmul.f32.gmra.mxu0 %v8308_v50  ;;  %8316 = vst [vmem:[#allocation127_spill] sm:$0xff] %v6104_v10  ;;  %v8317_v0 = vld [vmem:[#allocation8_spill] sm:$0xff]  ;;  %v6111_v22 = vpop.f32.mrf.mxu3  ;;  %v8322_v10 = vld [vmem:[#allocation10_spill] sm:$0xff] }
 0x2e6   : > { %8313 = vst [vmem:[#allocation6_spill] sm:$0xff] %v6092_v38  ;;  %v7924_v12 = vand.u32 4294901760, %v6092_v38 }
 0x2e7   : > { %v2602_v34 = vmax.f32 %v2375_v55, 0.0  ;;  %8319 = vst [vmem:[#allocation128_spill] sm:$0xff] %v6111_v22 }
 0x2e8   : > { %2441 = vmatmul.f32.gmra.mxu1 %v8314_v4  ;;  %v2945_v43 = vsub.f32 %v6092_v38, %v7924_v12 }
 0x2e9   : > { %v2694_v39 = vsel %vm2665_vm2, %v2602_v34, 0 }
 0x2ea   : > { %v6102_v44 = vand.u32 4294901760, %v2694_v39  ;;  %v2104_v51 = vpop.f32.mrf.mxu0  ;;  %v2946_v45 = vand.u32 4294901760, %v2945_v43  ;;  %v8320_v43 = vld [vmem:[#allocation5_spill] sm:$0xff] }
 0x2eb   : > { %v2105_v30 = vadd.f32 %v2104_v51, %v8317_v0 }
 0x2ec   : > { %8315 = vst [vmem:[#allocation3_spill] sm:$0xff] %v6102_v44  ;;  %v6108_v50 = vsub.f32 %v2694_v39, %v6102_v44  ;;  %2947 = vmatmul.f32.gmra.mxu2 %v2946_v45  ;;  %3464 = vmatmul.f32.gmra.mxu3 %v6102_v44 }
 0x2ed   : > { %v2382_v55 = vpop.f32.mrf.mxu1  ;;  %v2379_v12 = vadd.f32 %v2378_v18, %v2105_v30  ;;  %2167 = vmatmul.f32.gmra.mxu0 %v8314_v4 }
 0x2ee   : > { %8318 = vst [vmem:[#allocation8_spill] sm:$0xff] %v6108_v50  ;;  %v7929_v34 = vand.u32 4294901760, %v6108_v50 }
 0x2ef   : > { %v2603_v38 = vmax.f32 %v2379_v12, 0.0  ;;  %v6127_v12 = vpop.f32.mrf.mxu2 }
 0x2f0   : > { %2445 = vmatmul.f32.gmra.mxu1 %v8320_v43  ;;  %v2953_v51 = vsub.f32 %v6108_v50, %v7929_v34  ;;  %8324 = vst [vmem:[#allocation129_spill] sm:$0xff] %v6127_v12  ;;  %v6131_v34 = vpop.f32.mrf.mxu3 }
 0x2f1   : > { %v2697_v39 = vsel %vm2665_vm2, %v2603_v38, 0  ;;  %8325 = vst [vmem:[#allocation130_spill] sm:$0xff] %v6131_v34 }
 0x2f2   : > { %v6120_v0 = vand.u32 4294901760, %v2697_v39  ;;  %v2108_v45 = vpop.f32.mrf.mxu0  ;;  %v2954_v44 = vand.u32 4294901760, %v2953_v51  ;;  %v8326_v51 = vld [vmem:[#allocation7_spill] sm:$0xff] }
 0x2f3   : > { %v2109_v22 = vadd.f32 %v2108_v45, %v8322_v10 }
 0x2f4   : > { %8321 = vst [vmem:[#allocation5_spill] sm:$0xff] %v6120_v0  ;;  %v6124_v18 = vsub.f32 %v2697_v39, %v6120_v0  ;;  %2955 = vmatmul.f32.gmra.mxu2 %v2954_v44  ;;  %3468 = vmatmul.f32.gmra.mxu3 %v6120_v0 }
 0x2f5   : > { %v2386_v4 = vpop.f32.mrf.mxu1  ;;  %v2383_v30 = vadd.f32 %v2382_v55, %v2109_v22  ;;  %2171 = vmatmul.f32.gmra.mxu0 %v8320_v43  ;;  %v8328_v22 = vld [vmem:[#allocation13_spill] sm:$0xff] }
 0x2f6   : > { %8323 = vst [vmem:[#allocation10_spill] sm:$0xff] %v6124_v18  ;;  %v7934_v38 = vand.u32 4294901760, %v6124_v18 }
 0x2f7   : > { %v2604_v50 = vmax.f32 %v2383_v30, 0.0  ;;  %v6147_v34 = vpop.f32.mrf.mxu2 }
 0x2f8   : > { %2449 = vmatmul.f32.gmra.mxu1 %v8326_v51  ;;  %v2961_v10 = vsub.f32 %v6124_v18, %v7934_v38  ;;  %8330 = vst [vmem:[#allocation131_spill] sm:$0xff] %v6147_v34  ;;  %v8331_v18 = vld [vmem:[#allocation9_spill] sm:$0xff] }
 0x2f9   : > { %v2700_v44 = vsel %vm2665_vm2, %v2604_v50, 0 }
 0x2fa   : > { %v6138_v39 = vand.u32 4294901760, %v2700_v44  ;;  %v2112_v45 = vpop.f32.mrf.mxu0  ;;  %v2962_v0 = vand.u32 4294901760, %v2961_v10 }
 0x2fb   : > { %v2113_v55 = vadd.f32 %v2112_v45, %v8328_v22 }
 0x2fc   : > { %8327 = vst [vmem:[#allocation7_spill] sm:$0xff] %v6138_v39  ;;  %v6142_v43 = vsub.f32 %v2700_v44, %v6138_v39  ;;  %2963 = vmatmul.f32.gmra.mxu2 %v2962_v0  ;;  %3472 = vmatmul.f32.gmra.mxu3 %v6138_v39  ;;  %v6153_v44 = vpop.f32.mrf.mxu3 }
 0x2fd   : > { %v2390_v12 = vpop.f32.mrf.mxu1  ;;  %v2387_v30 = vadd.f32 %v2386_v4, %v2113_v55  ;;  %2175 = vmatmul.f32.gmra.mxu0 %v8326_v51  ;;  %8332 = vst [vmem:[#allocation9_spill] sm:$0xff] %v6153_v44  ;;  %v8334_v51 = vld [vmem:[#allocation14_spill] sm:$0xff] }
 0x2fe   : > { %8329 = vst [vmem:[#allocation13_spill] sm:$0xff] %v6142_v43  ;;  %v7939_v38 = vand.u32 4294901760, %v6142_v43 }
 0x2ff   : > { %v2605_v50 = vmax.f32 %v2387_v30, 0.0 }
 0x300   : > { %2453 = vmatmul.f32.gmra.mxu1 %v8331_v18  ;;  %v2969_v10 = vsub.f32 %v6142_v43, %v7939_v38 }
 0x301   : > { %v2703_v0 = vsel %vm2665_vm2, %v2605_v50, 0  ;;  %v8336_v50 = vld [vmem:[#allocation11_spill] sm:$0xff] }
 0x302   : > { %v6156_v45 = vand.u32 4294901760, %v2703_v0  ;;  %v2116_v4 = vpop.f32.mrf.mxu0  ;;  %v2970_v22 = vand.u32 4294901760, %v2969_v10 }
 0x303   : > { %v2117_v55 = vadd.f32 %v2116_v4, %v8334_v51  ;;  %v6169_v4 = vpop.f32.mrf.mxu2 }
 0x304   : > { %8333 = vst [vmem:[#allocation132_spill] sm:$0xff] %v6156_v45  ;;  %v6160_v39 = vsub.f32 %v2703_v0, %v6156_v45  ;;  %2971 = vmatmul.f32.gmra.mxu2 %v2970_v22  ;;  %3476 = vmatmul.f32.gmra.mxu3 %v6156_v45 }
 0x305   : > { %v2394_v30 = vpop.f32.mrf.mxu1  ;;  %v2391_v34 = vadd.f32 %v2390_v12, %v2117_v55  ;;  %2179 = vmatmul.f32.gmra.mxu0 %v8331_v18  ;;  %8337 = vst [vmem:[#allocation11_spill] sm:$0xff] %v6169_v4  ;;  %v6174_v12 = vpop.f32.mrf.mxu3  ;;  %v8340_v18 = vld [vmem:[#allocation16_spill] sm:$0xff] }
 0x306   : > { %8335 = vst [vmem:[#allocation14_spill] sm:$0xff] %v6160_v39  ;;  %v7944_v38 = vand.u32 4294901760, %v6160_v39  ;;  %v8342_v4 = vld [vmem:[#allocation12_spill] sm:$0xff] }
 0x307   : > { %v2606_v44 = vmax.f32 %v2391_v34, 0.0  ;;  %8339 = vst [vmem:[#allocation134_spill] sm:$0xff] %v6174_v12 }
 0x308   : > { %2457 = vmatmul.f32.gmra.mxu1 %v8336_v50  ;;  %v2977_v10 = vsub.f32 %v6160_v39, %v7944_v38 }
 0x309   : > { %v2706_v0 = vsel %vm2665_vm2, %v2606_v44, 0 }
 0x30a   : > { %v6172_v51 = vand.u32 4294901760, %v2706_v0  ;;  %v2120_v22 = vpop.f32.mrf.mxu0  ;;  %v2978_v45 = vand.u32 4294901760, %v2977_v10 }
 0x30b   : > { %v2121_v55 = vadd.f32 %v2120_v22, %v8340_v18  ;;  %v6190_v12 = vpop.f32.mrf.mxu2 }
 0x30c   : > { %8338 = vst [vmem:[#allocation133_spill] sm:$0xff] %v6172_v51  ;;  %v6178_v34 = vsub.f32 %v2706_v0, %v6172_v51  ;;  %2979 = vmatmul.f32.gmra.mxu2 %v2978_v45  ;;  %3480 = vmatmul.f32.gmra.mxu3 %v6172_v51 }
 0x30d   : > { %v2398_v43 = vpop.f32.mrf.mxu1  ;;  %v2395_v38 = vadd.f32 %v2394_v30, %v2121_v55  ;;  %2183 = vmatmul.f32.gmra.mxu0 %v8336_v50  ;;  %8344 = vst [vmem:[#allocation135_spill] sm:$0xff] %v6190_v12  ;;  %v8345_v30 = vld [vmem:[#allocation18_spill] sm:$0xff]  ;;  %v6197_v51 = vpop.f32.mrf.mxu3  ;;  %v8350_v12 = vld [vmem:[#allocation20_spill] sm:$0xff] }
 0x30e   : > { %8341 = vst [vmem:[#allocation16_spill] sm:$0xff] %v6178_v34  ;;  %v7949_v44 = vand.u32 4294901760, %v6178_v34 }
 0x30f   : > { %v2607_v39 = vmax.f32 %v2395_v38, 0.0  ;;  %8347 = vst [vmem:[#allocation136_spill] sm:$0xff] %v6197_v51 }
 0x310   : > { %2461 = vmatmul.f32.gmra.mxu1 %v8342_v4  ;;  %v2985_v10 = vsub.f32 %v6178_v34, %v7949_v44 }
 0x311   : > { %v2709_v22 = vsel %vm2665_vm2, %v2607_v39, 0 }
 0x312   : > { %v6188_v0 = vand.u32 4294901760, %v2709_v22  ;;  %v2124_v18 = vpop.f32.mrf.mxu0  ;;  %v2986_v45 = vand.u32 4294901760, %v2985_v10  ;;  %v8348_v10 = vld [vmem:[#allocation15_spill] sm:$0xff] }
 0x313   : > { %v2125_v55 = vadd.f32 %v2124_v18, %v8345_v30 }
 0x314   : > { %8343 = vst [vmem:[#allocation12_spill] sm:$0xff] %v6188_v0  ;;  %v6194_v50 = vsub.f32 %v2709_v22, %v6188_v0  ;;  %2987 = vmatmul.f32.gmra.mxu2 %v2986_v45  ;;  %3484 = vmatmul.f32.gmra.mxu3 %v6188_v0 }
 0x315   : > { %v2402_v38 = vpop.f32.mrf.mxu1  ;;  %v2399_v44 = vadd.f32 %v2398_v43, %v2125_v55  ;;  %2187 = vmatmul.f32.gmra.mxu0 %v8342_v4 }
 0x316   : > { %8346 = vst [vmem:[#allocation18_spill] sm:$0xff] %v6194_v50  ;;  %v7954_v39 = vand.u32 4294901760, %v6194_v50 }
 0x317   : > { %v2608_v34 = vmax.f32 %v2399_v44, 0.0  ;;  %v6213_v44 = vpop.f32.mrf.mxu2 }
 0x318   : > { %2465 = vmatmul.f32.gmra.mxu1 %v8348_v10  ;;  %v2993_v18 = vsub.f32 %v6194_v50, %v7954_v39  ;;  %8352 = vst [vmem:[#allocation137_spill] sm:$0xff] %v6213_v44  ;;  %v6217_v39 = vpop.f32.mrf.mxu3 }
 0x319   : > { %v2712_v22 = vsel %vm2665_vm2, %v2608_v34, 0  ;;  %8353 = vst [vmem:[#allocation138_spill] sm:$0xff] %v6217_v39 }
 0x31a   : > { %v6206_v30 = vand.u32 4294901760, %v2712_v22  ;;  %v2128_v45 = vpop.f32.mrf.mxu0  ;;  %v2994_v0 = vand.u32 4294901760, %v2993_v18  ;;  %v8354_v18 = vld [vmem:[#allocation17_spill] sm:$0xff] }
 0x31b   : > { %v2129_v51 = vadd.f32 %v2128_v45, %v8350_v12 }
 0x31c   : > { %8349 = vst [vmem:[#allocation15_spill] sm:$0xff] %v6206_v30  ;;  %v6210_v43 = vsub.f32 %v2712_v22, %v6206_v30  ;;  %2995 = vmatmul.f32.gmra.mxu2 %v2994_v0  ;;  %3488 = vmatmul.f32.gmra.mxu3 %v6206_v30 }
 0x31d   : > { %v2406_v4 = vpop.f32.mrf.mxu1  ;;  %v2403_v55 = vadd.f32 %v2402_v38, %v2129_v51  ;;  %2191 = vmatmul.f32.gmra.mxu0 %v8348_v10  ;;  %v8356_v51 = vld [vmem:[#allocation22_spill] sm:$0xff] }
 0x31e   : > { %8351 = vst [vmem:[#allocation20_spill] sm:$0xff] %v6210_v43  ;;  %v7959_v34 = vand.u32 4294901760, %v6210_v43 }
 0x31f   : > { %v2609_v50 = vmax.f32 %v2403_v55, 0.0  ;;  %v6233_v39 = vpop.f32.mrf.mxu2 }
 0x320   : > { %2469 = vmatmul.f32.gmra.mxu1 %v8354_v18  ;;  %v3001_v12 = vsub.f32 %v6210_v43, %v7959_v34  ;;  %8358 = vst [vmem:[#allocation139_spill] sm:$0xff] %v6233_v39  ;;  %v8359_v43 = vld [vmem:[#allocation19_spill] sm:$0xff] }
 0x321   : > { %v2715_v0 = vsel %vm2665_vm2, %v2609_v50, 0 }
 0x322   : > { %v6224_v22 = vand.u32 4294901760, %v2715_v0  ;;  %v2132_v45 = vpop.f32.mrf.mxu0  ;;  %v3002_v30 = vand.u32 4294901760, %v3001_v12 }
 0x323   : > { %v2133_v38 = vadd.f32 %v2132_v45, %v8356_v51 }
 0x324   : > { %8355 = vst [vmem:[#allocation17_spill] sm:$0xff] %v6224_v22  ;;  %v6228_v10 = vsub.f32 %v2715_v0, %v6224_v22  ;;  %3003 = vmatmul.f32.gmra.mxu2 %v3002_v30  ;;  %3492 = vmatmul.f32.gmra.mxu3 %v6224_v22 }
 0x325   : > { %v2410_v44 = vpop.f32.mrf.mxu1  ;;  %v2407_v55 = vadd.f32 %v2406_v4, %v2133_v38  ;;  %2195 = vmatmul.f32.gmra.mxu0 %v8354_v18  ;;  %v8361_v38 = vld [vmem:[#allocation24_spill] sm:$0xff] }
 0x326   : > { %8357 = vst [vmem:[#allocation22_spill] sm:$0xff] %v6228_v10  ;;  %v7964_v34 = vand.u32 4294901760, %v6228_v10 }
 0x327   : > { %v2610_v50 = vmax.f32 %v2407_v55, 0.0  ;;  %v3429_v12 = vpop.f32.mrf.mxu3  ;;  %v6250_v55 = vld [vmem:[%s7817_s4] ss:$0 sm:$0xff] }
 0x328   : > { %2473 = vmatmul.f32.gmra.mxu1 %v8359_v43  ;;  %v3009_v0 = vsub.f32 %v6228_v10, %v7964_v34  ;;  %v8363_v10 = vld [vmem:[#allocation21_spill] sm:$0xff] }
 0x329   : > { %v2718_v45 = vsel %vm2665_vm2, %v2610_v50, 0 }
 0x32a   : > { %v6240_v30 = vand.u32 4294901760, %v2718_v45  ;;  %v2136_v51 = vpop.f32.mrf.mxu0  ;;  %v3010_v4 = vand.u32 4294901760, %v3009_v0 }
 0x32b   : > { %v2137_v18 = vadd.f32 %v2136_v51, %v8361_v38 }
 0x32c   : > { %8360 = vst [vmem:[#allocation19_spill] sm:$0xff] %v6240_v30  ;;  %v6244_v22 = vsub.f32 %v2718_v45, %v6240_v30  ;;  %3011 = vmatmul.f32.gmra.mxu2 %v3010_v4  ;;  %3496 = vmatmul.f32.gmra.mxu3 %v6240_v30 }
 0x32d   : > { %v2414_v39 = vpop.f32.mrf.mxu1  ;;  %v2411_v34 = vadd.f32 %v2410_v44, %v2137_v18  ;;  %2199 = vmatmul.f32.gmra.mxu0 %v8359_v43 }
 0x32e   : > { %8362 = vst [vmem:[#allocation24_spill] sm:$0xff] %v6244_v22  ;;  %v7973_v50 = vand.u32 4294901760, %v6244_v22 }
 0x32f   : > { %v2611_v0 = vmax.f32 %v2411_v34, 0.0  ;;  %v2884_v51 = vpop.f32.mrf.mxu2  ;;  %v3433_v45 = vpop.f32.mrf.mxu3 }
 0x330   : > { %2477 = vmatmul.f32.gmra.mxu1 %v8363_v10  ;;  %v2885_v38 = vadd.f32 %v6250_v55, %v2884_v51  ;;  %v3017_v4 = vsub.f32 %v6244_v22, %v7973_v50  ;;  %v8368_v22 = vld [vmem:[#allocation23_spill] sm:$0xff] }
 0x331   : > { %v2721_v30 = vsel %vm2665_vm2, %v2611_v0, 0 }
 0x332   : > { %v6260_v58 = vand.u32 4294901760, %v2721_v30  ;;  %v2140_v44 = vpop.f32.mrf.mxu0  ;;  %v3018_v18 = vand.u32 4294901760, %v3017_v4  ;;  %v6262_v43 = vadd.f32 %v3429_v12, %v2885_v38 }
 0x333   : > { %v2141_v34 = vadd.f32 %v2140_v44, %v8366_v2 }
 0x334   : > { %8364 = vst [vmem:[#allocation21_spill] sm:$0xff] %v6260_v58  ;;  %v6266_v29 = vsub.f32 %v2721_v30, %v6260_v58  ;;  %3019 = vmatmul.f32.gmra.mxu2 %v3018_v18  ;;  %3500 = vmatmul.f32.gmra.mxu3 %v6260_v58 }
 0x335   : > { %8365 = vst [vmem:[#allocation140_spill] sm:$0xff] %v6262_v43  ;;  %v2418_v37 = vpop.f32.mrf.mxu1  ;;  %v2415_v51 = vadd.f32 %v2414_v39, %v2141_v34  ;;  %2203 = vmatmul.f32.gmra.mxu0 %v8363_v10  ;;  %v8371_v34 = vld [vmem:[#allocation28_spill] sm:$0xff] }
 0x336   : > { %8367 = vst [vmem:[#allocation26_spill] sm:$0xff] %v6266_v29  ;;  %v7978_v0 = vand.u32 4294901760, %v6266_v29 }
 0x337   : > { %v2612_v50 = vmax.f32 %v2415_v51, 0.0  ;;  %v2892_v4 = vpop.f32.mrf.mxu2  ;;  %v3437_v12 = vpop.f32.mrf.mxu3 }
 0x338   : > { %2481 = vmatmul.f32.gmra.mxu1 %v8368_v22  ;;  %v2893_v38 = vadd.f32 %v6250_v55, %v2892_v4  ;;  %v3025_v2 = vsub.f32 %v6266_v29, %v7978_v0  ;;  %v8373_v29 = vld [vmem:[#allocation25_spill] sm:$0xff] }
 0x339   : > { %v2724_v30 = vsel %vm2665_vm2, %v2612_v50, 0 }
 0x33a   : > { %v6277_v44 = vand.u32 4294901760, %v2724_v30  ;;  %v2144_v39 = vpop.f32.mrf.mxu0  ;;  %v3026_v18 = vand.u32 4294901760, %v3025_v2  ;;  %v6279_v10 = vadd.f32 %v3433_v45, %v2893_v38 }
 0x33b   : > { %v2145_v51 = vadd.f32 %v2144_v39, %v8371_v34 }
 0x33c   : > { %8369 = vst [vmem:[#allocation23_spill] sm:$0xff] %v6277_v44  ;;  %v6283_v58 = vsub.f32 %v2724_v30, %v6277_v44  ;;  %3027 = vmatmul.f32.gmra.mxu2 %v3026_v18  ;;  %3504 = vmatmul.f32.gmra.mxu3 %v6277_v44 }
 0x33d   : > { %8370 = vst [vmem:[#allocation141_spill] sm:$0xff] %v6279_v10  ;;  %v2422_v43 = vpop.f32.mrf.mxu1  ;;  %v2419_v4 = vadd.f32 %v2418_v37, %v2145_v51  ;;  %2207 = vmatmul.f32.gmra.mxu0 %v8368_v22  ;;  %v8376_v51 = vld [vmem:[#allocation30_spill] sm:$0xff] }
 0x33e   : > { %8372 = vst [vmem:[#allocation28_spill] sm:$0xff] %v6283_v58  ;;  %v7983_v50 = vand.u32 4294901760, %v6283_v58 }
 0x33f   : > { %v2613_v0 = vmax.f32 %v2419_v4, 0.0  ;;  %v2900_v2 = vpop.f32.mrf.mxu2  ;;  %v3441_v45 = vpop.f32.mrf.mxu3 }
 0x340   : > { %2485 = vmatmul.f32.gmra.mxu1 %v8373_v29  ;;  %v2901_v38 = vadd.f32 %v6250_v55, %v2900_v2  ;;  %v3033_v30 = vsub.f32 %v6283_v58, %v7983_v50  ;;  %v8378_v58 = vld [vmem:[#allocation27_spill] sm:$0xff] }
 0x341   : > { %v2727_v39 = vsel %vm2665_vm2, %v2613_v0, 0 }
 0x342   : > { %v6294_v18 = vand.u32 4294901760, %v2727_v39  ;;  %v2148_v37 = vpop.f32.mrf.mxu0  ;;  %v3034_v34 = vand.u32 4294901760, %v3033_v30  ;;  %v6296_v22 = vadd.f32 %v3437_v12, %v2901_v38 }
 0x343   : > { %v2149_v4 = vadd.f32 %v2148_v37, %v8376_v51 }
 0x344   : > { %8374 = vst [vmem:[#allocation25_spill] sm:$0xff] %v6294_v18  ;;  %v6300_v44 = vsub.f32 %v2727_v39, %v6294_v18  ;;  %3035 = vmatmul.f32.gmra.mxu2 %v3034_v34  ;;  %3508 = vmatmul.f32.gmra.mxu3 %v6294_v18 }
 0x345   : > { %8375 = vst [vmem:[#allocation142_spill] sm:$0xff] %v6296_v22  ;;  %v2426_v10 = vpop.f32.mrf.mxu1  ;;  %v2423_v2 = vadd.f32 %v2422_v43, %v2149_v4  ;;  %2211 = vmatmul.f32.gmra.mxu0 %v8373_v29  ;;  %v8381_v4 = vld [vmem:[#allocation32_spill] sm:$0xff] }
 0x346   : > { %8377 = vst [vmem:[#allocation30_spill] sm:$0xff] %v6300_v44  ;;  %v7988_v0 = vand.u32 4294901760, %v6300_v44 }
 0x347   : > { %v2614_v50 = vmax.f32 %v2423_v2, 0.0  ;;  %v2908_v30 = vpop.f32.mrf.mxu2  ;;  %v3445_v12 = vpop.f32.mrf.mxu3 }
 0x348   : > { %2489 = vmatmul.f32.gmra.mxu1 %v8378_v58  ;;  %v2909_v38 = vadd.f32 %v6250_v55, %v2908_v30  ;;  %v3041_v39 = vsub.f32 %v6300_v44, %v7988_v0  ;;  %v8383_v44 = vld [vmem:[#allocation29_spill] sm:$0xff] }
 0x349   : > { %v2730_v37 = vsel %vm2665_vm2, %v2614_v50, 0 }
 0x34a   : > { %v6311_v34 = vand.u32 4294901760, %v2730_v37  ;;  %v2152_v43 = vpop.f32.mrf.mxu0  ;;  %v3042_v51 = vand.u32 4294901760, %v3041_v39  ;;  %v6313_v29 = vadd.f32 %v3441_v45, %v2909_v38 }
 0x34b   : > { %v2153_v2 = vadd.f32 %v2152_v43, %v8381_v4 }
 0x34c   : > { %8379 = vst [vmem:[#allocation27_spill] sm:$0xff] %v6311_v34  ;;  %v6317_v18 = vsub.f32 %v2730_v37, %v6311_v34  ;;  %3043 = vmatmul.f32.gmra.mxu2 %v3042_v51  ;;  %3512 = vmatmul.f32.gmra.mxu3 %v6311_v34 }
 0x34d   : > { %8380 = vst [vmem:[#allocation143_spill] sm:$0xff] %v6313_v29  ;;  %v2430_v22 = vpop.f32.mrf.mxu1  ;;  %v2427_v30 = vadd.f32 %v2426_v10, %v2153_v2  ;;  %2215 = vmatmul.f32.gmra.mxu0 %v8378_v58  ;;  %v8386_v2 = vld [vmem:[#allocation34_spill] sm:$0xff] }
 0x34e   : > { %8382 = vst [vmem:[#allocation32_spill] sm:$0xff] %v6317_v18  ;;  %v7993_v50 = vand.u32 4294901760, %v6317_v18 }
 0x34f   : > { %v2615_v0 = vmax.f32 %v2427_v30, 0.0  ;;  %v2916_v39 = vpop.f32.mrf.mxu2  ;;  %v3449_v45 = vpop.f32.mrf.mxu3 }
 0x350   : > { %2493 = vmatmul.f32.gmra.mxu1 %v8383_v44  ;;  %v2917_v38 = vadd.f32 %v6250_v55, %v2916_v39  ;;  %v3049_v37 = vsub.f32 %v6317_v18, %v7993_v50  ;;  %v8388_v18 = vld [vmem:[#allocation31_spill] sm:$0xff] }
 0x351   : > { %v2733_v43 = vsel %vm2665_vm2, %v2615_v0, 0 }
 0x352   : > { %v6328_v51 = vand.u32 4294901760, %v2733_v43  ;;  %v2156_v10 = vpop.f32.mrf.mxu0  ;;  %v3050_v4 = vand.u32 4294901760, %v3049_v37  ;;  %v6330_v58 = vadd.f32 %v3445_v12, %v2917_v38 }
 0x353   : > { %v2157_v30 = vadd.f32 %v2156_v10, %v8386_v2 }
 0x354   : > { %8384 = vst [vmem:[#allocation29_spill] sm:$0xff] %v6328_v51  ;;  %v6334_v34 = vsub.f32 %v2733_v43, %v6328_v51  ;;  %3051 = vmatmul.f32.gmra.mxu2 %v3050_v4  ;;  %3516 = vmatmul.f32.gmra.mxu3 %v6328_v51 }
 0x355   : > { %8385 = vst [vmem:[#allocation144_spill] sm:$0xff] %v6330_v58  ;;  %v2434_v29 = vpop.f32.mrf.mxu1  ;;  %v2431_v39 = vadd.f32 %v2430_v22, %v2157_v30  ;;  %2219 = vmatmul.f32.gmra.mxu0 %v8383_v44  ;;  %v8391_v30 = vld [vmem:[#allocation36_spill] sm:$0xff] }
 0x356   : > { %8387 = vst [vmem:[#allocation34_spill] sm:$0xff] %v6334_v34  ;;  %v7998_v0 = vand.u32 4294901760, %v6334_v34 }
 0x357   : > { %v2616_v50 = vmax.f32 %v2431_v39, 0.0  ;;  %v2924_v37 = vpop.f32.mrf.mxu2  ;;  %v3453_v12 = vpop.f32.mrf.mxu3 }
 0x358   : > { %2497 = vmatmul.f32.gmra.mxu1 %v8388_v18  ;;  %v2925_v38 = vadd.f32 %v6250_v55, %v2924_v37  ;;  %v3057_v43 = vsub.f32 %v6334_v34, %v7998_v0  ;;  %v8393_v34 = vld [vmem:[#allocation33_spill] sm:$0xff] }
 0x359   : > { %v2736_v10 = vsel %vm2665_vm2, %v2616_v50, 0 }
 0x35a   : > { %v6345_v4 = vand.u32 4294901760, %v2736_v10  ;;  %v2160_v22 = vpop.f32.mrf.mxu0  ;;  %v3058_v2 = vand.u32 4294901760, %v3057_v43  ;;  %v6347_v44 = vadd.f32 %v3449_v45, %v2925_v38 }
 0x35b   : > { %v2161_v39 = vadd.f32 %v2160_v22, %v8391_v30 }
 0x35c   : > { %8389 = vst [vmem:[#allocation31_spill] sm:$0xff] %v6345_v4  ;;  %v6351_v51 = vsub.f32 %v2736_v10, %v6345_v4  ;;  %3059 = vmatmul.f32.gmra.mxu2 %v3058_v2  ;;  %3520 = vmatmul.f32.gmra.mxu3 %v6345_v4 }
 0x35d   : > { %8390 = vst [vmem:[#allocation145_spill] sm:$0xff] %v6347_v44  ;;  %v2438_v58 = vpop.f32.mrf.mxu1  ;;  %v2435_v37 = vadd.f32 %v2434_v29, %v2161_v39  ;;  %2223 = vmatmul.f32.gmra.mxu0 %v8388_v18  ;;  %v8396_v39 = vld [vmem:[#allocation38_spill] sm:$0xff] }
 0x35e   : > { %8392 = vst [vmem:[#allocation36_spill] sm:$0xff] %v6351_v51  ;;  %v8003_v50 = vand.u32 4294901760, %v6351_v51 }
 0x35f   : > { %v2617_v0 = vmax.f32 %v2435_v37, 0.0  ;;  %v2932_v43 = vpop.f32.mrf.mxu2  ;;  %v3457_v45 = vpop.f32.mrf.mxu3 }
 0x360   : > { %2501 = vmatmul.f32.gmra.mxu1 %v8393_v34  ;;  %v2933_v38 = vadd.f32 %v6250_v55, %v2932_v43  ;;  %v3065_v10 = vsub.f32 %v6351_v51, %v8003_v50  ;;  %v8398_v51 = vld [vmem:[#allocation35_spill] sm:$0xff] }
 0x361   : > { %v2739_v22 = vsel %vm2665_vm2, %v2617_v0, 0 }
 0x362   : > { %v6362_v2 = vand.u32 4294901760, %v2739_v22  ;;  %v2164_v29 = vpop.f32.mrf.mxu0  ;;  %v3066_v30 = vand.u32 4294901760, %v3065_v10  ;;  %v6364_v18 = vadd.f32 %v3453_v12, %v2933_v38 }
 0x363   : > { %v2165_v37 = vadd.f32 %v2164_v29, %v8396_v39 }
 0x364   : > { %8394 = vst [vmem:[#allocation33_spill] sm:$0xff] %v6362_v2  ;;  %v6368_v4 = vsub.f32 %v2739_v22, %v6362_v2  ;;  %3067 = vmatmul.f32.gmra.mxu2 %v3066_v30  ;;  %3524 = vmatmul.f32.gmra.mxu3 %v6362_v2 }
 0x365   : > { %8395 = vst [vmem:[#allocation146_spill] sm:$0xff] %v6364_v18  ;;  %v2442_v44 = vpop.f32.mrf.mxu1  ;;  %v2439_v43 = vadd.f32 %v2438_v58, %v2165_v37  ;;  %2227 = vmatmul.f32.gmra.mxu0 %v8393_v34  ;;  %v8401_v37 = vld [vmem:[#allocation40_spill] sm:$0xff] }
 0x366   : > { %8397 = vst [vmem:[#allocation38_spill] sm:$0xff] %v6368_v4  ;;  %v8008_v0 = vand.u32 4294901760, %v6368_v4 }
 0x367   : > { %v2618_v50 = vmax.f32 %v2439_v43, 0.0  ;;  %v2940_v10 = vpop.f32.mrf.mxu2  ;;  %v3461_v12 = vpop.f32.mrf.mxu3 }
 0x368   : > { %2505 = vmatmul.f32.gmra.mxu1 %v8398_v51  ;;  %v2941_v38 = vadd.f32 %v6250_v55, %v2940_v10  ;;  %v3073_v22 = vsub.f32 %v6368_v4, %v8008_v0  ;;  %v8403_v4 = vld [vmem:[#allocation37_spill] sm:$0xff] }
 0x369   : > { %v2742_v29 = vsel %vm2665_vm2, %v2618_v50, 0 }
 0x36a   : > { %v6379_v30 = vand.u32 4294901760, %v2742_v29  ;;  %v2168_v58 = vpop.f32.mrf.mxu0  ;;  %v3074_v39 = vand.u32 4294901760, %v3073_v22  ;;  %v6381_v34 = vadd.f32 %v3457_v45, %v2941_v38 }
 0x36b   : > { %v2169_v43 = vadd.f32 %v2168_v58, %v8401_v37 }
 0x36c   : > { %8399 = vst [vmem:[#allocation35_spill] sm:$0xff] %v6379_v30  ;;  %v6385_v2 = vsub.f32 %v2742_v29, %v6379_v30  ;;  %3075 = vmatmul.f32.gmra.mxu2 %v3074_v39  ;;  %3528 = vmatmul.f32.gmra.mxu3 %v6379_v30 }
 0x36d   : > { %8400 = vst [vmem:[#allocation147_spill] sm:$0xff] %v6381_v34  ;;  %v2446_v18 = vpop.f32.mrf.mxu1  ;;  %v2443_v10 = vadd.f32 %v2442_v44, %v2169_v43  ;;  %2231 = vmatmul.f32.gmra.mxu0 %v8398_v51  ;;  %v8406_v43 = vld [vmem:[#allocation42_spill] sm:$0xff] }
 0x36e   : > { %8402 = vst [vmem:[#allocation40_spill] sm:$0xff] %v6385_v2  ;;  %v8013_v50 = vand.u32 4294901760, %v6385_v2 }
 0x36f   : > { %v2619_v0 = vmax.f32 %v2443_v10, 0.0  ;;  %v2948_v22 = vpop.f32.mrf.mxu2  ;;  %v3465_v45 = vpop.f32.mrf.mxu3 }
 0x370   : > { %2509 = vmatmul.f32.gmra.mxu1 %v8403_v4  ;;  %v2949_v38 = vadd.f32 %v6250_v55, %v2948_v22  ;;  %v3081_v29 = vsub.f32 %v6385_v2, %v8013_v50  ;;  %v8408_v2 = vld [vmem:[#allocation39_spill] sm:$0xff] }
 0x371   : > { %v2745_v58 = vsel %vm2665_vm2, %v2619_v0, 0 }
 0x372   : > { %v6396_v39 = vand.u32 4294901760, %v2745_v58  ;;  %v2172_v44 = vpop.f32.mrf.mxu0  ;;  %v3082_v37 = vand.u32 4294901760, %v3081_v29  ;;  %v6398_v51 = vadd.f32 %v3461_v12, %v2949_v38 }
 0x373   : > { %v2173_v10 = vadd.f32 %v2172_v44, %v8406_v43 }
 0x374   : > { %8404 = vst [vmem:[#allocation37_spill] sm:$0xff] %v6396_v39  ;;  %v6402_v30 = vsub.f32 %v2745_v58, %v6396_v39  ;;  %3083 = vmatmul.f32.gmra.mxu2 %v3082_v37  ;;  %3532 = vmatmul.f32.gmra.mxu3 %v6396_v39 }
 0x375   : > { %8405 = vst [vmem:[#allocation148_spill] sm:$0xff] %v6398_v51  ;;  %v2450_v34 = vpop.f32.mrf.mxu1  ;;  %v2447_v22 = vadd.f32 %v2446_v18, %v2173_v10  ;;  %2235 = vmatmul.f32.gmra.mxu0 %v8403_v4  ;;  %v8411_v10 = vld [vmem:[#allocation45_spill] sm:$0xff] }
 0x376   : > { %8407 = vst [vmem:[#allocation42_spill] sm:$0xff] %v6402_v30  ;;  %v8018_v0 = vand.u32 4294901760, %v6402_v30 }
 0x377   : > { %v2620_v50 = vmax.f32 %v2447_v22, 0.0  ;;  %v2956_v29 = vpop.f32.mrf.mxu2  ;;  %v3469_v12 = vpop.f32.mrf.mxu3 }
 0x378   : > { %2513 = vmatmul.f32.gmra.mxu1 %v8408_v2  ;;  %v2957_v38 = vadd.f32 %v6250_v55, %v2956_v29  ;;  %v3089_v58 = vsub.f32 %v6402_v30, %v8018_v0  ;;  %v8413_v30 = vld [vmem:[#allocation41_spill] sm:$0xff] }
 0x379   : > { %v2748_v44 = vsel %vm2665_vm2, %v2620_v50, 0 }
 0x37a   : > { %v6413_v37 = vand.u32 4294901760, %v2748_v44  ;;  %v2176_v18 = vpop.f32.mrf.mxu0  ;;  %v3090_v43 = vand.u32 4294901760, %v3089_v58  ;;  %v6415_v4 = vadd.f32 %v3465_v45, %v2957_v38 }
 0x37b   : > { %v2177_v22 = vadd.f32 %v2176_v18, %v8411_v10 }
 0x37c   : > { %8409 = vst [vmem:[#allocation39_spill] sm:$0xff] %v6413_v37  ;;  %v6419_v39 = vsub.f32 %v2748_v44, %v6413_v37  ;;  %3091 = vmatmul.f32.gmra.mxu2 %v3090_v43  ;;  %3536 = vmatmul.f32.gmra.mxu3 %v6413_v37 }
 0x37d   : > { %8410 = vst [vmem:[#allocation149_spill] sm:$0xff] %v6415_v4  ;;  %v2454_v51 = vpop.f32.mrf.mxu1  ;;  %v2451_v29 = vadd.f32 %v2450_v34, %v2177_v22  ;;  %2239 = vmatmul.f32.gmra.mxu0 %v8408_v2  ;;  %v8416_v22 = vld [vmem:[#allocation46_spill] sm:$0xff] }
 0x37e   : > { %8412 = vst [vmem:[#allocation45_spill] sm:$0xff] %v6419_v39  ;;  %v8023_v50 = vand.u32 4294901760, %v6419_v39 }
 0x37f   : > { %v2621_v0 = vmax.f32 %v2451_v29, 0.0  ;;  %v2964_v58 = vpop.f32.mrf.mxu2  ;;  %v3473_v45 = vpop.f32.mrf.mxu3 }
 0x380   : > { %2517 = vmatmul.f32.gmra.mxu1 %v8413_v30  ;;  %v2965_v38 = vadd.f32 %v6250_v55, %v2964_v58  ;;  %v3097_v44 = vsub.f32 %v6419_v39, %v8023_v50  ;;  %v8418_v39 = vld [vmem:[#allocation43_spill] sm:$0xff] }
 0x381   : > { %v2751_v18 = vsel %vm2665_vm2, %v2621_v0, 0 }
 0x382   : > { %v6430_v43 = vand.u32 4294901760, %v2751_v18  ;;  %v2180_v34 = vpop.f32.mrf.mxu0  ;;  %v3098_v10 = vand.u32 4294901760, %v3097_v44  ;;  %v6432_v2 = vadd.f32 %v3469_v12, %v2965_v38 }
 0x383   : > { %v2181_v29 = vadd.f32 %v2180_v34, %v8416_v22 }
 0x384   : > { %8414 = vst [vmem:[#allocation41_spill] sm:$0xff] %v6430_v43  ;;  %v6436_v37 = vsub.f32 %v2751_v18, %v6430_v43  ;;  %3099 = vmatmul.f32.gmra.mxu2 %v3098_v10  ;;  %3540 = vmatmul.f32.gmra.mxu3 %v6430_v43 }
 0x385   : > { %8415 = vst [vmem:[#allocation150_spill] sm:$0xff] %v6432_v2  ;;  %v2458_v4 = vpop.f32.mrf.mxu1  ;;  %v2455_v58 = vadd.f32 %v2454_v51, %v2181_v29  ;;  %2243 = vmatmul.f32.gmra.mxu0 %v8413_v30  ;;  %v8420_v29 = vld [vmem:[#allocation48_spill] sm:$0xff] }
 0x386   : > { %8417 = vst [vmem:[#allocation46_spill] sm:$0xff] %v6436_v37  ;;  %v8028_v0 = vand.u32 4294901760, %v6436_v37 }
 0x387   : > { %v2622_v50 = vmax.f32 %v2455_v58, 0.0  ;;  %v2972_v44 = vpop.f32.mrf.mxu2  ;;  %v3477_v12 = vpop.f32.mrf.mxu3 }
 0x388   : > { %2521 = vmatmul.f32.gmra.mxu1 %v8418_v39  ;;  %v2973_v38 = vadd.f32 %v6250_v55, %v2972_v44  ;;  %v3105_v18 = vsub.f32 %v6436_v37, %v8028_v0  ;;  %v8422_v37 = vld [vmem:[#allocation44_spill] sm:$0xff] }
 0x389   : > { %v2754_v34 = vsel %vm2665_vm2, %v2622_v50, 0 }
 0x38a   : > { %v6447_v10 = vand.u32 4294901760, %v2754_v34  ;;  %v2184_v51 = vpop.f32.mrf.mxu0  ;;  %v3106_v22 = vand.u32 4294901760, %v3105_v18  ;;  %v6449_v30 = vadd.f32 %v3473_v45, %v2973_v38 }
 0x38b   : > { %v2185_v58 = vadd.f32 %v2184_v51, %v8420_v29 }
 0x38c   : > { %8419 = vst [vmem:[#allocation43_spill] sm:$0xff] %v6447_v10  ;;  %v6453_v43 = vsub.f32 %v2754_v34, %v6447_v10  ;;  %3107 = vmatmul.f32.gmra.mxu2 %v3106_v22  ;;  %3544 = vmatmul.f32.gmra.mxu3 %v6447_v10 }
 0x38d   : > { %v2462_v2 = vpop.f32.mrf.mxu1  ;;  %v2459_v44 = vadd.f32 %v2458_v4, %v2185_v58  ;;  %2247 = vmatmul.f32.gmra.mxu0 %v8418_v39 }
 0x38e   : > { %8421 = vst [vmem:[#allocation48_spill] sm:$0xff] %v6453_v43  ;;  %v8033_v50 = vand.u32 4294901760, %v6453_v43 }
 0x38f   : > { %v2623_v0 = vmax.f32 %v2459_v44, 0.0  ;;  %v2980_v18 = vpop.f32.mrf.mxu2  ;;  %v3481_v45 = vpop.f32.mrf.mxu3 }
 0x390   : > { %2525 = vmatmul.f32.gmra.mxu1 %v8422_v37  ;;  %v2981_v38 = vadd.f32 %v6250_v55, %v2980_v18  ;;  %v3113_v34 = vsub.f32 %v6453_v43, %v8033_v50  ;;  %v8426_v43 = vld [vmem:[#allocation47_spill] sm:$0xff] }
 0x391   : > { %v2757_v51 = vsel %vm2665_vm2, %v2623_v0, 0 }
 0x392   : > { %v6464_v22 = vand.u32 4294901760, %v2757_v51  ;;  %v2188_v4 = vpop.f32.mrf.mxu0  ;;  %v3114_v29 = vand.u32 4294901760, %v3113_v34  ;;  %v6466_v39 = vadd.f32 %v3477_v12, %v2981_v38 }
 0x393   : > { %v2189_v58 = vadd.f32 %v2188_v4, %v5652_v16 }
 0x394   : > { %8423 = vst [vmem:[#allocation44_spill] sm:$0xff] %v6464_v22  ;;  %v6470_v44 = vsub.f32 %v2757_v51, %v6464_v22  ;;  %3115 = vmatmul.f32.gmra.mxu2 %v3114_v29  ;;  %3548 = vmatmul.f32.gmra.mxu3 %v6464_v22 }
 0x395   : > { %8424 = vst [vmem:[#allocation151_spill] sm:$0xff] %v6466_v39  ;;  %v2466_v10 = vpop.f32.mrf.mxu1  ;;  %v2463_v18 = vadd.f32 %v2462_v2, %v2189_v58  ;;  %2251 = vmatmul.f32.gmra.mxu0 %v8422_v37  ;;  %v8429_v58 = vld [vmem:[#allocation51_spill] sm:$0xff] }
 0x396   : > { %8425 = vst [vmem:[#allocation152_spill] sm:$0xff] %v6470_v44  ;;  %v8038_v0 = vand.u32 4294901760, %v6470_v44 }
 0x397   : > { %v2624_v50 = vmax.f32 %v2463_v18, 0.0  ;;  %v2988_v34 = vpop.f32.mrf.mxu2  ;;  %v3485_v12 = vpop.f32.mrf.mxu3 }
 0x398   : > { %2529 = vmatmul.f32.gmra.mxu1 %v8426_v43  ;;  %v2989_v38 = vadd.f32 %v6250_v55, %v2988_v34  ;;  %v3121_v16 = vsub.f32 %v6470_v44, %v8038_v0  ;;  %v8431_v44 = vld [vmem:[#allocation49_spill] sm:$0xff] }
 0x399   : > { %v2760_v51 = vsel %vm2665_vm2, %v2624_v50, 0 }
 0x39a   : > { %v6481_v4 = vand.u32 4294901760, %v2760_v51  ;;  %v2192_v2 = vpop.f32.mrf.mxu0  ;;  %v3122_v29 = vand.u32 4294901760, %v3121_v16  ;;  %v6483_v37 = vadd.f32 %v3481_v45, %v2989_v38 }
 0x39b   : > { %v2193_v18 = vadd.f32 %v2192_v2, %v8429_v58 }
 0x39c   : > { %8427 = vst [vmem:[#allocation47_spill] sm:$0xff] %v6481_v4  ;;  %v6487_v22 = vsub.f32 %v2760_v51, %v6481_v4  ;;  %3123 = vmatmul.f32.gmra.mxu2 %v3122_v29  ;;  %3552 = vmatmul.f32.gmra.mxu3 %v6481_v4 }
 0x39d   : > { %8428 = vst [vmem:[#allocation153_spill] sm:$0xff] %v6483_v37  ;;  %v2470_v39 = vpop.f32.mrf.mxu1  ;;  %v2467_v34 = vadd.f32 %v2466_v10, %v2193_v18  ;;  %2255 = vmatmul.f32.gmra.mxu0 %v8426_v43  ;;  %v8434_v18 = vld [vmem:[#allocation53_spill] sm:$0xff] }
 0x39e   : > { %8430 = vst [vmem:[#allocation51_spill] sm:$0xff] %v6487_v22  ;;  %v8043_v50 = vand.u32 4294901760, %v6487_v22 }
 0x39f   : > { %v2625_v0 = vmax.f32 %v2467_v34, 0.0  ;;  %v2996_v16 = vpop.f32.mrf.mxu2  ;;  %v3489_v45 = vpop.f32.mrf.mxu3 }
 0x3a0   : > { %2533 = vmatmul.f32.gmra.mxu1 %v8431_v44  ;;  %v2997_v38 = vadd.f32 %v6250_v55, %v2996_v16  ;;  %v3129_v51 = vsub.f32 %v6487_v22, %v8043_v50  ;;  %v8436_v22 = vld [vmem:[#allocation50_spill] sm:$0xff] }
 0x3a1   : > { %v2763_v2 = vsel %vm2665_vm2, %v2625_v0, 0 }
 0x3a2   : > { %v6498_v29 = vand.u32 4294901760, %v2763_v2  ;;  %v2196_v10 = vpop.f32.mrf.mxu0  ;;  %v3130_v58 = vand.u32 4294901760, %v3129_v51  ;;  %v6500_v43 = vadd.f32 %v3485_v12, %v2997_v38 }
 0x3a3   : > { %v2197_v34 = vadd.f32 %v2196_v10, %v8434_v18 }
 0x3a4   : > { %8432 = vst [vmem:[#allocation49_spill] sm:$0xff] %v6498_v29  ;;  %v6504_v4 = vsub.f32 %v2763_v2, %v6498_v29  ;;  %3131 = vmatmul.f32.gmra.mxu2 %v3130_v58  ;;  %3556 = vmatmul.f32.gmra.mxu3 %v6498_v29 }
 0x3a5   : > { %8433 = vst [vmem:[#allocation154_spill] sm:$0xff] %v6500_v43  ;;  %v2474_v37 = vpop.f32.mrf.mxu1  ;;  %v2471_v16 = vadd.f32 %v2470_v39, %v2197_v34  ;;  %2259 = vmatmul.f32.gmra.mxu0 %v8431_v44  ;;  %v8439_v34 = vld [vmem:[#allocation55_spill] sm:$0xff] }
 0x3a6   : > { %8435 = vst [vmem:[#allocation53_spill] sm:$0xff] %v6504_v4  ;;  %v8048_v0 = vand.u32 4294901760, %v6504_v4 }
 0x3a7   : > { %v2626_v50 = vmax.f32 %v2471_v16, 0.0  ;;  %v3004_v51 = vpop.f32.mrf.mxu2  ;;  %v3493_v12 = vpop.f32.mrf.mxu3 }
 0x3a8   : > { %2537 = vmatmul.f32.gmra.mxu1 %v8436_v22  ;;  %v3005_v38 = vadd.f32 %v6250_v55, %v3004_v51  ;;  %v3137_v2 = vsub.f32 %v6504_v4, %v8048_v0  ;;  %v8441_v4 = vld [vmem:[#allocation52_spill] sm:$0xff] }
 0x3a9   : > { %v2766_v10 = vsel %vm2665_vm2, %v2626_v50, 0 }
 0x3aa   : > { %v6515_v58 = vand.u32 4294901760, %v2766_v10  ;;  %v2200_v39 = vpop.f32.mrf.mxu0  ;;  %v3138_v18 = vand.u32 4294901760, %v3137_v2  ;;  %v6517_v44 = vadd.f32 %v3489_v45, %v3005_v38 }
 0x3ab   : > { %v2201_v16 = vadd.f32 %v2200_v39, %v8439_v34 }
 0x3ac   : > { %8437 = vst [vmem:[#allocation50_spill] sm:$0xff] %v6515_v58  ;;  %v6521_v29 = vsub.f32 %v2766_v10, %v6515_v58  ;;  %3139 = vmatmul.f32.gmra.mxu2 %v3138_v18  ;;  %3560 = vmatmul.f32.gmra.mxu3 %v6515_v58 }
 0x3ad   : > { %8438 = vst [vmem:[#allocation155_spill] sm:$0xff] %v6517_v44  ;;  %v2478_v43 = vpop.f32.mrf.mxu1  ;;  %v2475_v51 = vadd.f32 %v2474_v37, %v2201_v16  ;;  %2263 = vmatmul.f32.gmra.mxu0 %v8436_v22  ;;  %v8444_v16 = vld [vmem:[#allocation57_spill] sm:$0xff] }
 0x3ae   : > { %8440 = vst [vmem:[#allocation55_spill] sm:$0xff] %v6521_v29  ;;  %v8053_v50 = vand.u32 4294901760, %v6521_v29 }
 0x3af   : > { %v2627_v0 = vmax.f32 %v2475_v51, 0.0  ;;  %v3012_v2 = vpop.f32.mrf.mxu2  ;;  %v3497_v45 = vpop.f32.mrf.mxu3 }
 0x3b0   : > { %2541 = vmatmul.f32.gmra.mxu1 %v8441_v4  ;;  %v3013_v38 = vadd.f32 %v6250_v55, %v3012_v2  ;;  %v3145_v10 = vsub.f32 %v6521_v29, %v8053_v50  ;;  %v8446_v29 = vld [vmem:[#allocation54_spill] sm:$0xff] }
 0x3b1   : > { %v2769_v39 = vsel %vm2665_vm2, %v2627_v0, 0 }
 0x3b2   : > { %v6532_v18 = vand.u32 4294901760, %v2769_v39  ;;  %v2204_v37 = vpop.f32.mrf.mxu0  ;;  %v3146_v34 = vand.u32 4294901760, %v3145_v10  ;;  %v6534_v22 = vadd.f32 %v3493_v12, %v3013_v38 }
 0x3b3   : > { %v2205_v51 = vadd.f32 %v2204_v37, %v8444_v16 }
 0x3b4   : > { %8442 = vst [vmem:[#allocation52_spill] sm:$0xff] %v6532_v18  ;;  %v6538_v58 = vsub.f32 %v2769_v39, %v6532_v18  ;;  %3147 = vmatmul.f32.gmra.mxu2 %v3146_v34  ;;  %3564 = vmatmul.f32.gmra.mxu3 %v6532_v18 }
 0x3b5   : > { %8443 = vst [vmem:[#allocation156_spill] sm:$0xff] %v6534_v22  ;;  %v2482_v44 = vpop.f32.mrf.mxu1  ;;  %v2479_v2 = vadd.f32 %v2478_v43, %v2205_v51  ;;  %2267 = vmatmul.f32.gmra.mxu0 %v8441_v4  ;;  %v8448_v51 = vld [vmem:[#allocation59_spill] sm:$0xff] }
 0x3b6   : > { %8445 = vst [vmem:[#allocation57_spill] sm:$0xff] %v6538_v58  ;;  %v8058_v0 = vand.u32 4294901760, %v6538_v58 }
 0x3b7   : > { %v2628_v50 = vmax.f32 %v2479_v2, 0.0  ;;  %v3020_v10 = vpop.f32.mrf.mxu2  ;;  %v3501_v12 = vpop.f32.mrf.mxu3 }
 0x3b8   : > { %2545 = vmatmul.f32.gmra.mxu1 %v8446_v29  ;;  %v3021_v38 = vadd.f32 %v6250_v55, %v3020_v10  ;;  %v3153_v39 = vsub.f32 %v6538_v58, %v8058_v0  ;;  %v8450_v58 = vld [vmem:[#allocation56_spill] sm:$0xff] }
 0x3b9   : > { %v2772_v37 = vsel %vm2665_vm2, %v2628_v50, 0 }
 0x3ba   : > { %v6549_v34 = vand.u32 4294901760, %v2772_v37  ;;  %v2208_v43 = vpop.f32.mrf.mxu0  ;;  %v3154_v16 = vand.u32 4294901760, %v3153_v39  ;;  %v6551_v4 = vadd.f32 %v3497_v45, %v3021_v38 }
 0x3bb   : > { %v2209_v2 = vadd.f32 %v2208_v43, %v8448_v51 }
 0x3bc   : > { %8447 = vst [vmem:[#allocation54_spill] sm:$0xff] %v6549_v34  ;;  %v6555_v18 = vsub.f32 %v2772_v37, %v6549_v34  ;;  %3155 = vmatmul.f32.gmra.mxu2 %v3154_v16  ;;  %3568 = vmatmul.f32.gmra.mxu3 %v6549_v34 }
 0x3bd   : > { %v2486_v22 = vpop.f32.mrf.mxu1  ;;  %v2483_v10 = vadd.f32 %v2482_v44, %v2209_v2  ;;  %2271 = vmatmul.f32.gmra.mxu0 %v8446_v29 }
 0x3be   : > { %8449 = vst [vmem:[#allocation59_spill] sm:$0xff] %v6555_v18  ;;  %v8063_v50 = vand.u32 4294901760, %v6555_v18 }
 0x3bf   : > { %v2629_v0 = vmax.f32 %v2483_v10, 0.0  ;;  %v3028_v39 = vpop.f32.mrf.mxu2  ;;  %v3505_v45 = vpop.f32.mrf.mxu3 }
 0x3c0   : > { %2549 = vmatmul.f32.gmra.mxu1 %v8450_v58  ;;  %v3029_v38 = vadd.f32 %v6250_v55, %v3028_v39  ;;  %v3161_v37 = vsub.f32 %v6555_v18, %v8063_v50  ;;  %v8453_v18 = vld [vmem:[#allocation58_spill] sm:$0xff] }
 0x3c1   : > { %v2775_v43 = vsel %vm2665_vm2, %v2629_v0, 0 }
 0x3c2   : > { %v6566_v16 = vand.u32 4294901760, %v2775_v43  ;;  %v2212_v44 = vpop.f32.mrf.mxu0  ;;  %v3162_v51 = vand.u32 4294901760, %v3161_v37  ;;  %v6568_v29 = vadd.f32 %v3501_v12, %v3029_v38 }
 0x3c3   : > { %v2213_v2 = vadd.f32 %v2212_v44, %v5706_v19 }
 0x3c4   : > { %8451 = vst [vmem:[#allocation56_spill] sm:$0xff] %v6566_v16  ;;  %v6572_v10 = vsub.f32 %v2775_v43, %v6566_v16  ;;  %3163 = vmatmul.f32.gmra.mxu2 %v3162_v51  ;;  %3572 = vmatmul.f32.gmra.mxu3 %v6566_v16 }
 0x3c5   : > { %v2490_v34 = vpop.f32.mrf.mxu1  ;;  %v2487_v39 = vadd.f32 %v2486_v22, %v2213_v2  ;;  %2275 = vmatmul.f32.gmra.mxu0 %v8450_v58 }
 0x3c6   : > { %8452 = vst [vmem:[#allocation157_spill] sm:$0xff] %v6572_v10  ;;  %v8068_v0 = vand.u32 4294901760, %v6572_v10 }
 0x3c7   : > { %v2630_v50 = vmax.f32 %v2487_v39, 0.0  ;;  %v3036_v37 = vpop.f32.mrf.mxu2  ;;  %v3509_v12 = vpop.f32.mrf.mxu3 }
 0x3c8   : > { %2553 = vmatmul.f32.gmra.mxu1 %v8453_v18  ;;  %v3037_v38 = vadd.f32 %v6250_v55, %v3036_v37  ;;  %v3169_v19 = vsub.f32 %v6572_v10, %v8068_v0  ;;  %v6595_v37 = vld [vmem:[%s7815_s2] ss:$0 sm:$0xff] }
 0x3c9   : > { %v2778_v43 = vsel %vm2665_vm2, %v2630_v50, 0  ;;  %v838_v50 = vadd.f32 %v6595_v37, %v5730_v61 }
 0x3ca   : > { %v6583_v44 = vand.u32 4294901760, %v2778_v43  ;;  %v2216_v22 = vpop.f32.mrf.mxu0  ;;  %v3170_v51 = vand.u32 4294901760, %v3169_v19  ;;  %v6585_v58 = vadd.f32 %v3505_v45, %v3037_v38 }
 0x3cb   : > { %v2217_v2 = vadd.f32 %v2216_v22, %v5715_v1  ;;  %v1208_v0 = vadd.f32 %v5721_v27, %v838_v50  ;;  %v846_v27 = vadd.f32 %v6595_v37, %v5740_v59 }
 0x3cc   : > { %8454 = vst [vmem:[#allocation58_spill] sm:$0xff] %v6583_v44  ;;  %v6589_v39 = vsub.f32 %v2778_v43, %v6583_v44  ;;  %3171 = vmatmul.f32.gmra.mxu2 %v3170_v51  ;;  %3576 = vmatmul.f32.gmra.mxu3 %v6583_v44 }
 0x3cd   : > { %v2494_v16 = vpop.f32.mrf.mxu1  ;;  %v2491_v19 = vadd.f32 %v2490_v34, %v2217_v2  ;;  %2279 = vmatmul.f32.gmra.mxu0 %v8453_v18 }
 0x3ce   : > { %8455 = vst [vmem:[#allocation158_spill] sm:$0xff] %v6589_v39  ;;  %v8073_v1 = vand.u32 4294901760, %v6589_v39 }
 0x3cf   : > { %v2631_v45 = vmax.f32 %v2491_v19, 0.0  ;;  %v3044_v38 = vpop.f32.mrf.mxu2  ;;  %v3513_v43 = vpop.f32.mrf.mxu3 }
 0x3d0   : > { %2557 = vmatmul.f32.gmra.mxu1 %v5699_v60  ;;  %v3045_v22 = vadd.f32 %v6250_v55, %v3044_v38  ;;  %v3177_v51 = vsub.f32 %v6589_v39, %v8073_v1  ;;  %v1524_v1 = vadd.f32 %v5840_v20, %v1208_v0  ;;  %v8458_v0 = vld [vmem:[#allocation63_spill] sm:$0xff] }
 0x3d1   : > { %v2781_v61 = vsel %vm2665_vm2, %v2631_v45, 0  ;;  %v1212_v59 = vadd.f32 %v8458_v0, %v846_v27 }
 0x3d2   : > { %v6608_v34 = vand.u32 4294901760, %v2781_v61  ;;  %v2220_v18 = vpop.f32.mrf.mxu0  ;;  %v3178_v2 = vand.u32 4294901760, %v3177_v51  ;;  %v6610_v44 = vadd.f32 %v3509_v12, %v3045_v22  ;;  %v8457_v22 = vld [vmem:[#allocation60_spill] sm:$0xff]  ;;  %v1903_v20 = vadd.f32 %v5832_v33, %v1524_v1  ;;  %v8460_v1 = vld [vmem:[#allocation67_spill] sm:$0xff] }
 0x3d3   : > { %v2221_v19 = vadd.f32 %v2220_v18, %v5726_v36  ;;  %v1529_v33 = vadd.f32 %v5852_v54, %v1212_v59  ;;  %v854_v27 = vadd.f32 %v6595_v37, %v8460_v1  ;;  %v8462_v59 = vld [vmem:[#allocation65_spill] sm:$0xff] }
 0x3d4   : > { %8456 = vst [vmem:[#allocation159_spill] sm:$0xff] %v6608_v34  ;;  %v6614_v10 = vsub.f32 %v2781_v61, %v6608_v34  ;;  %3179 = vmatmul.f32.gmra.mxu2 %v3178_v2  ;;  %3580 = vmatmul.f32.gmra.mxu3 %v6608_v34 }
 0x3d5   : > { %v2498_v38 = vpop.f32.mrf.mxu1  ;;  %v2495_v50 = vadd.f32 %v2494_v16, %v2221_v19  ;;  %2283 = vmatmul.f32.gmra.mxu0 %v5699_v60  ;;  %v1909_v54 = vadd.f32 %v5844_v17, %v1529_v33  ;;  %v8464_v33 = vld [vmem:[#allocation70_spill] sm:$0xff] }
 0x3d6   : > { %v8078_v12 = vand.u32 4294901760, %v6614_v10 }
 0x3d7   : > { %v2632_v45 = vmax.f32 %v2495_v50, 0.0  ;;  %v3052_v36 = vpop.f32.mrf.mxu2  ;;  %v3517_v51 = vpop.f32.mrf.mxu3 }
 0x3d8   : > { %2561 = vmatmul.f32.gmra.mxu1 %v8457_v22  ;;  %v3053_v61 = vadd.f32 %v6250_v55, %v3052_v36  ;;  %v3185_v18 = vsub.f32 %v6614_v10, %v8078_v12 }
 0x3d9   : > { %v2784_v16 = vsel %vm2665_vm2, %v2632_v45, 0 }
 0x3da   : > { %v6630_v60 = vand.u32 4294901760, %v2784_v16  ;;  %v2224_v2 = vpop.f32.mrf.mxu0  ;;  %v3186_v19 = vand.u32 4294901760, %v3185_v18  ;;  %v6632_v50 = vadd.f32 %v3513_v43, %v3053_v61  ;;  %v8461_v61 = vld [vmem:[#allocation61_spill] sm:$0xff] }
 0x3db   : > { %v2225_v34 = vadd.f32 %v2224_v2, %v1903_v20 }
 0x3dc   : > { %8459 = vst [vmem:[#allocation60_spill] sm:$0xff] %v6630_v60  ;;  %v6635_v39 = vsub.f32 %v2784_v16, %v6630_v60  ;;  %3187 = vmatmul.f32.gmra.mxu2 %v3186_v19  ;;  %3584 = vmatmul.f32.gmra.mxu3 %v6630_v60  ;;  %v1216_v19 = vadd.f32 %v8462_v59, %v854_v27 }
 0x3dd   : > { %v2502_v36 = vpop.f32.mrf.mxu1  ;;  %v2499_v45 = vadd.f32 %v2498_v38, %v2225_v34  ;;  %2287 = vmatmul.f32.gmra.mxu0 %v8457_v22  ;;  %v862_v27 = vadd.f32 %v6595_v37, %v8464_v33 }
 0x3de   : > { %v8081_v18 = vand.u32 4294901760, %v6635_v39  ;;  %v1534_v17 = vadd.f32 %v5864_v52, %v1216_v19  ;;  %v8466_v19 = vld [vmem:[#allocation68_spill] sm:$0xff] }
 0x3df   : > { %v2633_v43 = vmax.f32 %v2499_v45, 0.0  ;;  %v3060_v20 = vpop.f32.mrf.mxu2  ;;  %v3521_v0 = vpop.f32.mrf.mxu3 }
 0x3e0   : > { %2565 = vmatmul.f32.gmra.mxu1 %v8461_v61  ;;  %v3061_v16 = vadd.f32 %v6250_v55, %v3060_v20  ;;  %v3193_v2 = vsub.f32 %v6635_v39, %v8081_v18  ;;  %v1915_v52 = vadd.f32 %v5856_v35, %v1534_v17  ;;  %v870_v17 = vadd.f32 %v6595_v37, %v5770_v48 }
 0x3e1   : > { %v2787_v34 = vsel %vm2665_vm2, %v2633_v43, 0 }
 0x3e2   : > { %v6651_v38 = vand.u32 4294901760, %v2787_v34  ;;  %v2228_v22 = vpop.f32.mrf.mxu0  ;;  %v3194_v1 = vand.u32 4294901760, %v3193_v2  ;;  %v6653_v45 = vadd.f32 %v3517_v51, %v3061_v16  ;;  %v8465_v16 = vld [vmem:[#allocation62_spill] sm:$0xff] }
 0x3e3   : > { %v2229_v12 = vadd.f32 %v2228_v22, %v1909_v54 }
 0x3e4   : > { %8463 = vst [vmem:[#allocation63_spill] sm:$0xff] %v6651_v38  ;;  %v6656_v60 = vsub.f32 %v2787_v34, %v6651_v38  ;;  %3195 = vmatmul.f32.gmra.mxu2 %v3194_v1  ;;  %3588 = vmatmul.f32.gmra.mxu3 %v6651_v38  ;;  %v1220_v1 = vadd.f32 %v8466_v19, %v862_v27 }
 0x3e5   : > { %v2506_v20 = vpop.f32.mrf.mxu1  ;;  %v2503_v43 = vadd.f32 %v2502_v36, %v2229_v12  ;;  %2291 = vmatmul.f32.gmra.mxu0 %v8461_v61 }
 0x3e6   : > { %v8084_v2 = vand.u32 4294901760, %v6656_v60  ;;  %v1539_v35 = vadd.f32 %v5875_v49, %v1220_v1  ;;  %v8469_v1 = vld [vmem:[#allocation71_spill] sm:$0xff] }
 0x3e7   : > { %v2634_v51 = vmax.f32 %v2503_v43, 0.0  ;;  %v3068_v54 = vpop.f32.mrf.mxu2  ;;  %v3525_v59 = vpop.f32.mrf.mxu3  ;;  %v1224_v48 = vadd.f32 %v8469_v1, %v870_v17 }
 0x3e8   : > { %2569 = vmatmul.f32.gmra.mxu1 %v8465_v16  ;;  %v3069_v34 = vadd.f32 %v6250_v55, %v3068_v54  ;;  %v3201_v22 = vsub.f32 %v6656_v60, %v8084_v2  ;;  %v1921_v49 = vadd.f32 %v5867_v42, %v1539_v35  ;;  %v878_v35 = vadd.f32 %v6595_v37, %v5780_v24 }
 0x3e9   : > { %v2790_v12 = vsel %vm2665_vm2, %v2634_v51, 0  ;;  %v1544_v42 = vadd.f32 %v5886_v56, %v1224_v48  ;;  %v8472_v48 = vld [vmem:[#allocation73_spill] sm:$0xff] }
 0x3ea   : > { %v6672_v36 = vand.u32 4294901760, %v2790_v12  ;;  %v2232_v61 = vpop.f32.mrf.mxu0  ;;  %v3202_v33 = vand.u32 4294901760, %v3201_v22  ;;  %v6674_v43 = vadd.f32 %v3521_v0, %v3069_v34  ;;  %v8468_v34 = vld [vmem:[#allocation64_spill] sm:$0xff]  ;;  %v1228_v24 = vadd.f32 %v8472_v48, %v878_v35 }
 0x3eb   : > { %v2233_v18 = vadd.f32 %v2232_v61, %v1915_v52  ;;  %v1927_v56 = vadd.f32 %v5878_v40, %v1544_v42  ;;  %v886_v42 = vadd.f32 %v6595_v37, %v5786_v21 }
 0x3ec   : > { %8467 = vst [vmem:[#allocation67_spill] sm:$0xff] %v6672_v36  ;;  %v6677_v38 = vsub.f32 %v2790_v12, %v6672_v36  ;;  %3203 = vmatmul.f32.gmra.mxu2 %v3202_v33  ;;  %3592 = vmatmul.f32.gmra.mxu3 %v6672_v36  ;;  %v1549_v40 = vadd.f32 %v5898_v57, %v1228_v24 }
 0x3ed   : > { %v2510_v54 = vpop.f32.mrf.mxu1  ;;  %v2507_v27 = vadd.f32 %v2506_v20, %v2233_v18  ;;  %2295 = vmatmul.f32.gmra.mxu0 %v8465_v16 }
 0x3ee   : > { %v8085_v51 = vand.u32 4294901760, %v6677_v38 }
 0x3ef   : > { %v2635_v0 = vmax.f32 %v2507_v27, 0.0  ;;  %v3076_v22 = vpop.f32.mrf.mxu2  ;;  %v3529_v52 = vpop.f32.mrf.mxu3 }
 0x3f0   : > { %2573 = vmatmul.f32.gmra.mxu1 %v8468_v34  ;;  %v3077_v19 = vadd.f32 %v6250_v55, %v3076_v22  ;;  %v3209_v12 = vsub.f32 %v6677_v38, %v8085_v51 }
 0x3f1   : > { %v2793_v18 = vsel %vm2665_vm2, %v2635_v0, 0 }
 0x3f2   : > { %v6693_v20 = vand.u32 4294901760, %v2793_v18  ;;  %v2236_v16 = vpop.f32.mrf.mxu0  ;;  %v3210_v61 = vand.u32 4294901760, %v3209_v12  ;;  %v6695_v33 = vadd.f32 %v3525_v59, %v3077_v19  ;;  %v8471_v19 = vld [vmem:[#allocation66_spill] sm:$0xff] }
 0x3f3   : > { %v2237_v27 = vadd.f32 %v2236_v16, %v1921_v49 }
 0x3f4   : > { %8470 = vst [vmem:[#allocation61_spill] sm:$0xff] %v6693_v20  ;;  %v6698_v2 = vsub.f32 %v2793_v18, %v6693_v20  ;;  %3211 = vmatmul.f32.gmra.mxu2 %v3210_v61  ;;  %3596 = vmatmul.f32.gmra.mxu3 %v6693_v20 }
 0x3f5   : > { %v2514_v22 = vpop.f32.mrf.mxu1  ;;  %v2511_v17 = vadd.f32 %v2510_v54, %v2237_v27  ;;  %2299 = vmatmul.f32.gmra.mxu0 %v8468_v34 }
 0x3f6   : > { %v8086_v0 = vand.u32 4294901760, %v6698_v2 }
 0x3f7   : > { %v2636_v59 = vmax.f32 %v2511_v17, 0.0  ;;  %v3084_v12 = vpop.f32.mrf.mxu2  ;;  %v3533_v49 = vpop.f32.mrf.mxu3 }
 0x3f8   : > { %2577 = vmatmul.f32.gmra.mxu1 %v8471_v19  ;;  %v3085_v1 = vadd.f32 %v6250_v55, %v3084_v12  ;;  %v3217_v18 = vsub.f32 %v6698_v2, %v8086_v0  ;;  %v8474_v12 = vld [vmem:[#allocation69_spill] sm:$0xff] }
 0x3f9   : > { %v2796_v54 = vsel %vm2665_vm2, %v2636_v59, 0 }
 0x3fa   : > { %v6714_v34 = vand.u32 4294901760, %v2796_v54  ;;  %v2240_v16 = vpop.f32.mrf.mxu0  ;;  %v3218_v61 = vand.u32 4294901760, %v3217_v18  ;;  %v6716_v27 = vadd.f32 %v3529_v52, %v3085_v1 }
 0x3fb   : > { %v2241_v17 = vadd.f32 %v2240_v16, %v1927_v56  ;;  %v6731_v56 = vld [vmem:[%s7817_s4] ss:$0 sm:$0xff] }
 0x3fc   : > { %8473 = vst [vmem:[#allocation65_spill] sm:$0xff] %v6714_v34  ;;  %v6719_v51 = vsub.f32 %v2796_v54, %v6714_v34  ;;  %3219 = vmatmul.f32.gmra.mxu2 %v3218_v61  ;;  %3600 = vmatmul.f32.gmra.mxu3 %v6714_v34 }
 0x3fd   : > { %v2518_v55 = vpop.f32.mrf.mxu1  ;;  %v2515_v35 = vadd.f32 %v2514_v22, %v2241_v17  ;;  %2303 = vmatmul.f32.gmra.mxu0 %v8471_v19  ;;  %v1933_v22 = vadd.f32 %v5890_v25, %v1549_v40  ;;  %v8475_v19 = vld [vmem:[#allocation74_spill] sm:$0xff]  ;;  %v894_v40 = vadd.f32 %v6595_v37, %v5796_v26 }
 0x3fe   : > { %v8087_v59 = vand.u32 4294901760, %v6719_v51  ;;  %v1232_v48 = vadd.f32 %v8475_v19, %v886_v42 }
 0x3ff   : > { %v2637_v52 = vmax.f32 %v2515_v35, 0.0  ;;  %v3092_v1 = vpop.f32.mrf.mxu2  ;;  %v3537_v18 = vpop.f32.mrf.mxu3 }
 0x400   : > { %2581 = vmatmul.f32.gmra.mxu1 %v8474_v12  ;;  %v3093_v57 = vadd.f32 %v6731_v56, %v3092_v1  ;;  %v3225_v21 = vsub.f32 %v6719_v51, %v8087_v59  ;;  %v1554_v25 = vadd.f32 %v5910_v63, %v1232_v48  ;;  %v8478_v48 = vld [vmem:[#allocation75_spill] sm:$0xff] }
 0x401   : > { %v2799_v24 = vsel %vm2665_vm2, %v2637_v52, 0  ;;  %v1236_v26 = vadd.f32 %v8478_v48, %v894_v40 }
 0x402   : > { %v6740_v54 = vand.u32 4294901760, %v2799_v24  ;;  %v2244_v16 = vpop.f32.mrf.mxu0  ;;  %v3226_v61 = vand.u32 4294901760, %v3225_v21  ;;  %v6742_v17 = vadd.f32 %v3533_v49, %v3093_v57  ;;  %v8477_v57 = vld [vmem:[#allocation72_spill] sm:$0xff]  ;;  %v1939_v63 = vadd.f32 %v5902_v6, %v1554_v25 }
 0x403   : > { %v2245_v35 = vadd.f32 %v2244_v16, %v1933_v22  ;;  %v1559_v6 = vadd.f32 %v5921_v23, %v1236_v26  ;;  %v902_v25 = vadd.f32 %v6595_v37, %v5806_v8 }
 0x404   : > { %8476 = vst [vmem:[#allocation70_spill] sm:$0xff] %v6740_v54  ;;  %v6745_v0 = vsub.f32 %v2799_v24, %v6740_v54  ;;  %3227 = vmatmul.f32.gmra.mxu2 %v3226_v61  ;;  %3604 = vmatmul.f32.gmra.mxu3 %v6740_v54 }
 0x405   : > { %v2522_v1 = vpop.f32.mrf.mxu1  ;;  %v2519_v42 = vadd.f32 %v2518_v55, %v2245_v35  ;;  %2307 = vmatmul.f32.gmra.mxu0 %v8474_v12  ;;  %v1945_v23 = vadd.f32 %v5913_v15, %v1559_v6  ;;  %v1240_v8 = vadd.f32 %v5800_v3, %v902_v25  ;;  %v910_v3 = vadd.f32 %v6595_v37, %v5814_v46 }
 0x406   : > { %v8093_v52 = vand.u32 4294901760, %v6745_v0 }
 0x407   : > { %v2638_v49 = vmax.f32 %v2519_v42, 0.0  ;;  %v3100_v21 = vpop.f32.mrf.mxu2  ;;  %v3541_v22 = vpop.f32.mrf.mxu3  ;;  %v1564_v15 = vadd.f32 %v5932_v31, %v1240_v8  ;;  %v1244_v46 = vadd.f32 %v5809_v62, %v910_v3 }
 0x408   : > { %2585 = vmatmul.f32.gmra.mxu1 %v8477_v57  ;;  %v3101_v19 = vadd.f32 %v6731_v56, %v3100_v21  ;;  %v3233_v24 = vsub.f32 %v6745_v0, %v8093_v52 }
 0x409   : > { %v2802_v55 = vsel %vm2665_vm2, %v2638_v49, 0 }
 0x40a   : > { %v6761_v12 = vand.u32 4294901760, %v2802_v55  ;;  %v2248_v16 = vpop.f32.mrf.mxu0  ;;  %v3234_v61 = vand.u32 4294901760, %v3233_v24  ;;  %v6763_v35 = vadd.f32 %v3537_v18, %v3101_v19 }
 0x40b   : > { %v2249_v42 = vadd.f32 %v2248_v16, %v1939_v63 }
 0x40c   : > { %8479 = vst [vmem:[#allocation62_spill] sm:$0xff] %v6761_v12  ;;  %v6766_v59 = vsub.f32 %v2802_v55, %v6761_v12  ;;  %3235 = vmatmul.f32.gmra.mxu2 %v3234_v61  ;;  %3608 = vmatmul.f32.gmra.mxu3 %v6761_v12 }
 0x40d   : > { %v2526_v21 = vpop.f32.mrf.mxu1  ;;  %v2523_v40 = vadd.f32 %v2522_v1, %v2249_v42  ;;  %2311 = vmatmul.f32.gmra.mxu0 %v8477_v57 }
 0x40e   : > { %v8091_v49 = vand.u32 4294901760, %v6766_v59 }
 0x40f   : > { %v2639_v18 = vmax.f32 %v2523_v40, 0.0  ;;  %v3108_v19 = vpop.f32.mrf.mxu2  ;;  %v3545_v24 = vpop.f32.mrf.mxu3 }
 0x410   : > { %2589 = vmatmul.f32.gmra.mxu1 %v5778_v14  ;;  %v3109_v63 = vadd.f32 %v6731_v56, %v3108_v19  ;;  %v3241_v48 = vsub.f32 %v6766_v59, %v8091_v49 }
 0x411   : > { %v2805_v1 = vsel %vm2665_vm2, %v2639_v18, 0 }
 0x412   : > { %v6782_v57 = vand.u32 4294901760, %v2805_v1  ;;  %v2252_v26 = vpop.f32.mrf.mxu0  ;;  %v3242_v55 = vand.u32 4294901760, %v3241_v48  ;;  %v6784_v16 = vadd.f32 %v3541_v22, %v3109_v63  ;;  %v8481_v63 = vand.u32 4294901760, %v5952_v9 }
 0x413   : > { %v2253_v61 = vadd.f32 %v2252_v26, %v1945_v23  ;;  %v1951_v23 = vadd.f32 %v5924_v41, %v1564_v15  ;;  %v8484_v15 = vld [vmem:[#allocation77_spill] sm:$0xff] }
 0x414   : > { %8480 = vst [vmem:[#allocation68_spill] sm:$0xff] %v6782_v57  ;;  %v6787_v42 = vsub.f32 %v2805_v1, %v6782_v57  ;;  %3243 = vmatmul.f32.gmra.mxu2 %v3242_v55  ;;  %3612 = vmatmul.f32.gmra.mxu3 %v6782_v57  ;;  %v918_v62 = vadd.f32 %v6595_v37, %v8484_v15 }
 0x415   : > { %v2530_v40 = vpop.f32.mrf.mxu1  ;;  %v2527_v6 = vadd.f32 %v2526_v21, %v2253_v61  ;;  %2315 = vmatmul.f32.gmra.mxu0 %v5778_v14 }
 0x416   : > { %v8088_v25 = vand.u32 4294901760, %v6787_v42 }
 0x417   : > { %v2640_v22 = vmax.f32 %v2527_v6, 0.0  ;;  %v3116_v18 = vpop.f32.mrf.mxu2  ;;  %v3549_v19 = vpop.f32.mrf.mxu3 }
 0x418   : > { %4052 = vmatmul.f32.vlgmr.msra.gmra.mxu1 %v8481_v63  ;;  %v3117_v48 = vadd.f32 %v6731_v56, %v3116_v18  ;;  %v3249_v31 = vsub.f32 %v6787_v42, %v8088_v25  ;;  %v8483_v18 = vld [vmem:[#allocation105_spill] sm:$0xff] }
 0x419   : > { %v2808_v14 = vsel %vm2665_vm2, %v2640_v22, 0  ;;  %v1569_v41 = vadd.f32 %v8483_v18, %v1244_v46 }
 0x41a   : > { %v6804_v21 = vand.u32 4294901760, %v2808_v14  ;;  %v2256_v8 = vpop.f32.mrf.mxu0  ;;  %v3250_v1 = vand.u32 4294901760, %v3249_v31  ;;  %v6806_v26 = vadd.f32 %v3545_v24, %v3117_v48  ;;  %v8485_v31 = vand.u32 4294901760, %v5970_v13 }
 0x41b   : > { %v2257_v55 = vadd.f32 %v2256_v8, %v1951_v23 }
 0x41c   : > { %8482 = vst [vmem:[#allocation64_spill] sm:$0xff] %v6804_v21  ;;  %v6809_v61 = vsub.f32 %v2808_v14, %v6804_v21  ;;  %3251 = vmatmul.f32.gmra.mxu2 %v3250_v1  ;;  %3616 = vmatmul.f32.gmra.mxu3 %v6804_v21  ;;  %v8486_v14 = vld [vmem:[#allocation104_spill] sm:$0xff] }
 0x41d   : > { %v2534_v6 = vpop.f32.mrf.mxu1  ;;  %v2531_v3 = vadd.f32 %v2530_v40, %v2257_v55  ;;  %3710 = vmatmul.f32.vlgmr.msra.gmra.mxu0 %v5952_v9  ;;  %v1957_v8 = vadd.f32 %v8486_v14, %v1569_v41  ;;  %v8487_v1 = vld [vmem:[#allocation76_spill] sm:$0xff]  ;;  %v8489_v14 = vld [vmem:[#allocation79_spill] sm:$0xff] }
 0x41e   : > { %v8089_v22 = vand.u32 4294901760, %v6809_v61  ;;  %v1248_v40 = vadd.f32 %v8487_v1, %v918_v62  ;;  %v926_v62 = vadd.f32 %v6595_v37, %v8489_v14  ;;  %v8490_v1 = vand.u32 4294901760, %v5988_v5 }
 0x41f   : > { %v2641_v24 = vmax.f32 %v2531_v3, 0.0  ;;  %v3124_v63 = vpop.f32.mrf.mxu2  ;;  %v3553_v48 = vpop.f32.mrf.mxu3 }
 0x420   : > { %4058 = vmatmul.f32.gmra.mxu1 %v8485_v31  ;;  %v3125_v23 = vadd.f32 %v6731_v56, %v3124_v63  ;;  %v3257_v46 = vsub.f32 %v6809_v61, %v8089_v22  ;;  %v1574_v41 = vadd.f32 %v5955_v32, %v1248_v40 }
 0x421   : > { %v2811_v9 = vsel %vm2665_vm2, %v2641_v24, 0 }
 0x422   : > { %v6826_v55 = vand.u32 4294901760, %v2811_v9  ;;  %v2260_v18 = vpop.f32.mrf.mxu0  ;;  %v3258_v15 = vand.u32 4294901760, %v3257_v46  ;;  %v6828_v3 = vadd.f32 %v3549_v19, %v3125_v23  ;;  %v1963_v40 = vadd.f32 %v5943_v47, %v1574_v41  ;;  %v8493_v41 = vld [vmem:[#allocation81_spill] sm:$0xff] }
 0x423   : > { %v2261_v25 = vadd.f32 %v2260_v18, %v1957_v8  ;;  %v8491_v18 = vld [vmem:[#allocation78_spill] sm:$0xff] }
 0x424   : > { %8488 = vst [vmem:[#allocation71_spill] sm:$0xff] %v6826_v55  ;;  %v6831_v31 = vsub.f32 %v2811_v9, %v6826_v55  ;;  %3259 = vmatmul.f32.gmra.mxu2 %v3258_v15  ;;  %3620 = vmatmul.f32.gmra.mxu3 %v6826_v55 }
 0x425   : > { %v2538_v63 = vpop.f32.mrf.mxu1  ;;  %v2535_v24 = vadd.f32 %v2534_v6, %v2261_v25  ;;  %3715 = vmatmul.f32.gmra.mxu0 %v5970_v13  ;;  %v1252_v25 = vadd.f32 %v8491_v18, %v926_v62  ;;  %v934_v62 = vadd.f32 %v6595_v37, %v8493_v41  ;;  %v8494_v18 = vand.u32 4294901760, %v6006_v28 }
 0x426   : > { %v8090_v46 = vand.u32 4294901760, %v6831_v31 }
 0x427   : > { %v2642_v19 = vmax.f32 %v2535_v24, 0.0  ;;  %v3132_v23 = vpop.f32.mrf.mxu2  ;;  %v3557_v8 = vpop.f32.mrf.mxu3  ;;  %v1579_v47 = vadd.f32 %v5975_v11, %v1252_v25  ;;  %v8495_v25 = vld [vmem:[#allocation107_spill] sm:$0xff] }
 0x428   : > { %4064 = vmatmul.f32.gmra.mxu1 %v8490_v1  ;;  %v3133_v9 = vadd.f32 %v6731_v56, %v3132_v23  ;;  %v3265_v32 = vsub.f32 %v6831_v31, %v8090_v46 }
 0x429   : > { %v2814_v13 = vsel %vm2665_vm2, %v2642_v19, 0 }
 0x42a   : > { %v6848_v6 = vand.u32 4294901760, %v2814_v13  ;;  %v2264_v15 = vpop.f32.mrf.mxu0  ;;  %v3266_v14 = vand.u32 4294901760, %v3265_v32  ;;  %v6850_v24 = vadd.f32 %v3553_v48, %v3133_v9 }
 0x42b   : > { %v2265_v22 = vadd.f32 %v2264_v15, %v1963_v40  ;;  %v1969_v15 = vadd.f32 %v8495_v25, %v1579_v47  ;;  %v8498_v25 = vld [vmem:[#allocation83_spill] sm:$0xff] }
 0x42c   : > { %8492 = vst [vmem:[#allocation66_spill] sm:$0xff] %v6848_v6  ;;  %v6853_v1 = vsub.f32 %v2814_v13, %v6848_v6  ;;  %3267 = vmatmul.f32.gmra.mxu2 %v3266_v14  ;;  %3624 = vmatmul.f32.gmra.mxu3 %v6848_v6  ;;  %v8496_v14 = vld [vmem:[#allocation80_spill] sm:$0xff] }
 0x42d   : > { %v2542_v23 = vpop.f32.mrf.mxu1  ;;  %v2539_v19 = vadd.f32 %v2538_v63, %v2265_v22  ;;  %3720 = vmatmul.f32.gmra.mxu0 %v5988_v5  ;;  %v1256_v22 = vadd.f32 %v8496_v14, %v934_v62  ;;  %v942_v62 = vadd.f32 %v6595_v37, %v8498_v25  ;;  %v8499_v14 = vand.u32 4294901760, %v6022_v7 }
 0x42e   : > { %v8092_v32 = vand.u32 4294901760, %v6853_v1 }
 0x42f   : > { %v2643_v48 = vmax.f32 %v2539_v19, 0.0  ;;  %v3140_v9 = vpop.f32.mrf.mxu2  ;;  %v3561_v40 = vpop.f32.mrf.mxu3  ;;  %v1584_v47 = vadd.f32 %v5997_v53, %v1256_v22  ;;  %v8500_v22 = vld [vmem:[#allocation109_spill] sm:$0xff] }
 0x430   : > { %4070 = vmatmul.f32.gmra.mxu1 %v8494_v18  ;;  %v3141_v13 = vadd.f32 %v6731_v56, %v3140_v9  ;;  %v3273_v11 = vsub.f32 %v6853_v1, %v8092_v32 }
 0x431   : > { %v2817_v5 = vsel %vm2665_vm2, %v2643_v48, 0 }
 0x432   : > { %v6870_v63 = vand.u32 4294901760, %v2817_v5  ;;  %v2268_v41 = vpop.f32.mrf.mxu0  ;;  %v3274_v19 = vand.u32 4294901760, %v3273_v11  ;;  %v6872_v46 = vadd.f32 %v3557_v8, %v3141_v13 }
 0x433   : > { %v2269_v49 = vadd.f32 %v2268_v41, %v1969_v15  ;;  %v1975_v41 = vadd.f32 %v8500_v22, %v1584_v47  ;;  %v8505_v22 = vld [vmem:[#allocation85_spill] sm:$0xff] }
 0x434   : > { %8497 = vst [vmem:[#allocation73_spill] sm:$0xff] %v6870_v63  ;;  %v6875_v18 = vsub.f32 %v2817_v5, %v6870_v63  ;;  %3275 = vmatmul.f32.gmra.mxu2 %v3274_v19  ;;  %3628 = vmatmul.f32.gmra.mxu3 %v6870_v63  ;;  %v8501_v19 = vld [vmem:[#allocation82_spill] sm:$0xff] }
 0x435   : > { %v2546_v9 = vpop.f32.mrf.mxu1  ;;  %v2543_v48 = vadd.f32 %v2542_v23, %v2269_v49  ;;  %3725 = vmatmul.f32.gmra.mxu0 %v6006_v28  ;;  %v1260_v49 = vadd.f32 %v8501_v19, %v942_v62  ;;  %v950_v62 = vadd.f32 %v6595_v37, %v8505_v22  ;;  %v8506_v19 = vld [vmem:[#allocation117_spill] sm:$0xff]  ;;  %v8509_v22 = vld [vmem:[#allocation84_spill] sm:$0xff] }
 0x436   : > { %v8094_v11 = vand.u32 4294901760, %v6875_v18 }
 0x437   : > { %v2644_v8 = vmax.f32 %v2543_v48, 0.0  ;;  %v3148_v13 = vpop.f32.mrf.mxu2  ;;  %v3565_v15 = vpop.f32.mrf.mxu3 }
 0x438   : > { %4076 = vmatmul.f32.gmra.mxu1 %v8499_v14  ;;  %v3149_v5 = vadd.f32 %v6731_v56, %v3148_v13  ;;  %v3281_v53 = vsub.f32 %v6875_v18, %v8094_v11  ;;  %v8504_v11 = vld [vmem:[#allocation114_spill] sm:$0xff] }
 0x439   : > { %v2820_v28 = vsel %vm2665_vm2, %v2644_v8, 0  ;;  %v1589_v47 = vadd.f32 %v8504_v11, %v1260_v49  ;;  %v8508_v49 = vld [vmem:[#allocation112_spill] sm:$0xff] }
 0x43a   : > { %v6892_v23 = vand.u32 4294901760, %v2820_v28  ;;  %v2272_v25 = vpop.f32.mrf.mxu0  ;;  %v3282_v48 = vand.u32 4294901760, %v3281_v53  ;;  %v6894_v32 = vadd.f32 %v3561_v40, %v3149_v5 }
 0x43b   : > { %v2273_v52 = vadd.f32 %v2272_v25, %v1975_v41 }
 0x43c   : > { %8502 = vst [vmem:[#allocation69_spill] sm:$0xff] %v6892_v23  ;;  %v6897_v14 = vsub.f32 %v2820_v28, %v6892_v23  ;;  %3283 = vmatmul.f32.gmra.mxu2 %v3282_v48  ;;  %3632 = vmatmul.f32.gmra.mxu3 %v6892_v23  ;;  %v8507_v28 = vand.u32 4294901760, %v8506_v19  ;;  %v1981_v48 = vadd.f32 %v8508_v49, %v1589_v47  ;;  %v8514_v49 = vld [vmem:[#allocation87_spill] sm:$0xff] }
 0x43d   : > { %v2550_v13 = vpop.f32.mrf.mxu1  ;;  %v2547_v8 = vadd.f32 %v2546_v9, %v2273_v52  ;;  %3730 = vmatmul.f32.gmra.mxu0 %v6022_v7  ;;  %v1264_v52 = vadd.f32 %v8509_v22, %v950_v62  ;;  %v958_v62 = vadd.f32 %v6595_v37, %v8514_v49  ;;  %v8515_v22 = vld [vmem:[#allocation121_spill] sm:$0xff]  ;;  %v8518_v49 = vld [vmem:[#allocation86_spill] sm:$0xff] }
 0x43e   : > { %8503 = vst [vmem:[#allocation74_spill] sm:$0xff] %v6897_v14  ;;  %v8101_v53 = vand.u32 4294901760, %v6897_v14 }
 0x43f   : > { %v2645_v40 = vmax.f32 %v2547_v8, 0.0  ;;  %v3156_v5 = vpop.f32.mrf.mxu2  ;;  %v3569_v41 = vpop.f32.mrf.mxu3 }
 0x440   : > { %4082 = vmatmul.f32.gmra.mxu1 %v8507_v28  ;;  %v3157_v25 = vadd.f32 %v6731_v56, %v3156_v5  ;;  %v3289_v11 = vsub.f32 %v6897_v14, %v8101_v53  ;;  %v8513_v53 = vld [vmem:[#allocation118_spill] sm:$0xff]  ;;  %v8676_v14 = vld [vmem:[#allocation51_spill] sm:$0xff] }
 0x441   : > { %v2823_v7 = vsel %vm2665_vm2, %v2645_v40, 0  ;;  %v1594_v47 = vadd.f32 %v8513_v53, %v1264_v52  ;;  %v8517_v52 = vld [vmem:[#allocation115_spill] sm:$0xff] }
 0x442   : > { %v6914_v9 = vand.u32 4294901760, %v2823_v7  ;;  %v2276_v8 = vpop.f32.mrf.mxu0  ;;  %v3290_v23 = vand.u32 4294901760, %v3289_v11  ;;  %v6916_v63 = vadd.f32 %v3565_v15, %v3157_v25 }
 0x443   : > { %v2277_v6 = vadd.f32 %v2276_v8, %v1981_v48  ;;  %v1987_v8 = vadd.f32 %v8517_v52, %v1594_v47  ;;  %v8523_v52 = vld [vmem:[#allocation89_spill] sm:$0xff] }
 0x444   : > { %8510 = vst [vmem:[#allocation72_spill] sm:$0xff] %v6914_v9  ;;  %v6919_v28 = vsub.f32 %v2823_v7, %v6914_v9  ;;  %3291 = vmatmul.f32.gmra.mxu2 %v3290_v23  ;;  %3636 = vmatmul.f32.gmra.mxu3 %v6914_v9  ;;  %v8516_v7 = vand.u32 4294901760, %v8515_v22 }
 0x445   : > { %8511 = vst [vmem:[#allocation75_spill] sm:$0xff] %v6916_v63  ;;  %v2554_v5 = vpop.f32.mrf.mxu1  ;;  %v2551_v40 = vadd.f32 %v2550_v13, %v2277_v6  ;;  %3735 = vmatmul.f32.gmra.mxu0 %v8506_v19  ;;  %v1268_v6 = vadd.f32 %v8518_v49, %v958_v62  ;;  %v966_v62 = vadd.f32 %v6595_v37, %v8523_v52  ;;  %v8524_v49 = vld [vmem:[#allocation4_spill] sm:$0xff]  ;;  %v8682_v63 = vld [vmem:[#allocation53_spill] sm:$0xff] }
 0x446   : > { %8512 = vst [vmem:[#allocation105_spill] sm:$0xff] %v6919_v28  ;;  %v8108_v11 = vand.u32 4294901760, %v6919_v28  ;;  %v8527_v52 = vld [vmem:[#allocation88_spill] sm:$0xff] }
 0x447   : > { %v2646_v15 = vmax.f32 %v2551_v40, 0.0  ;;  %v3164_v25 = vpop.f32.mrf.mxu2  ;;  %v3573_v48 = vpop.f32.mrf.mxu3 }
 0x448   : > { %4088 = vmatmul.f32.gmra.mxu1 %v8516_v7  ;;  %v3165_v23 = vadd.f32 %v6731_v56, %v3164_v25  ;;  %v3297_v53 = vsub.f32 %v6919_v28, %v8108_v11  ;;  %v8522_v11 = vld [vmem:[#allocation122_spill] sm:$0xff]  ;;  %v8666_v28 = vld [vmem:[#allocation48_spill] sm:$0xff] }
 0x449   : > { %v2826_v13 = vsel %vm2665_vm2, %v2646_v15, 0  ;;  %v1599_v47 = vadd.f32 %v8522_v11, %v1268_v6  ;;  %v8526_v6 = vld [vmem:[#allocation119_spill] sm:$0xff] }
 0x44a   : > { %v6936_v19 = vand.u32 4294901760, %v2826_v13  ;;  %v2280_v40 = vpop.f32.mrf.mxu0  ;;  %v3298_v9 = vand.u32 4294901760, %v3297_v53  ;;  %v6938_v55 = vadd.f32 %v3569_v41, %v3165_v23 }
 0x44b   : > { %v2281_v21 = vadd.f32 %v2280_v40, %v1987_v8  ;;  %v1993_v40 = vadd.f32 %v8526_v6, %v1599_v47  ;;  %v8532_v6 = vld [vmem:[#allocation91_spill] sm:$0xff] }
 0x44c   : > { %8519 = vst [vmem:[#allocation77_spill] sm:$0xff] %v6936_v19  ;;  %v6941_v7 = vsub.f32 %v2826_v13, %v6936_v19  ;;  %3299 = vmatmul.f32.gmra.mxu2 %v3298_v9  ;;  %3640 = vmatmul.f32.gmra.mxu3 %v6936_v19  ;;  %v8525_v13 = vand.u32 4294901760, %v8524_v49 }
 0x44d   : > { %8520 = vst [vmem:[#allocation104_spill] sm:$0xff] %v6938_v55  ;;  %v2558_v25 = vpop.f32.mrf.mxu1  ;;  %v2555_v15 = vadd.f32 %v2554_v5, %v2281_v21  ;;  %3740 = vmatmul.f32.gmra.mxu0 %v8515_v22  ;;  %v1272_v21 = vadd.f32 %v8527_v52, %v966_v62  ;;  %v974_v62 = vadd.f32 %v6595_v37, %v8532_v6  ;;  %v8533_v52 = vld [vmem:[#allocation6_spill] sm:$0xff]  ;;  %v8671_v55 = vld [vmem:[#allocation152_spill] sm:$0xff] }
 0x44e   : > { %8521 = vst [vmem:[#allocation76_spill] sm:$0xff] %v6941_v7  ;;  %v8115_v53 = vand.u32 4294901760, %v6941_v7  ;;  %v8536_v6 = vld [vmem:[#allocation90_spill] sm:$0xff] }
 0x44f   : > { %v2647_v41 = vmax.f32 %v2555_v15, 0.0  ;;  %v3172_v23 = vpop.f32.mrf.mxu2  ;;  %v3577_v8 = vpop.f32.mrf.mxu3 }
 0x450   : > { %4094 = vmatmul.f32.gmra.mxu1 %v8525_v13  ;;  %v3173_v9 = vadd.f32 %v6731_v56, %v3172_v23  ;;  %v3305_v11 = vsub.f32 %v6941_v7, %v8115_v53  ;;  %v8531_v53 = vld [vmem:[#allocation2_spill] sm:$0xff] }
 0x451   : > { %v2829_v5 = vsel %vm2665_vm2, %v2647_v41, 0  ;;  %v1604_v47 = vadd.f32 %v8531_v53, %v1272_v21  ;;  %v8535_v21 = vld [vmem:[#allocation123_spill] sm:$0xff]  ;;  %v8652_v7 = vld [vmem:[#allocation42_spill] sm:$0xff] }
 0x452   : > { %v6958_v22 = vand.u32 4294901760, %v2829_v5  ;;  %v2284_v15 = vpop.f32.mrf.mxu0  ;;  %v3306_v19 = vand.u32 4294901760, %v3305_v11  ;;  %v6960_v57 = vadd.f32 %v3573_v48, %v3173_v9 }
 0x453   : > { %v2285_v12 = vadd.f32 %v2284_v15, %v1993_v40  ;;  %v1999_v15 = vadd.f32 %v8535_v21, %v1604_v47  ;;  %v8541_v21 = vld [vmem:[#allocation93_spill] sm:$0xff] }
 0x454   : > { %8528 = vst [vmem:[#allocation79_spill] sm:$0xff] %v6958_v22  ;;  %v6963_v13 = vsub.f32 %v2829_v5, %v6958_v22  ;;  %3307 = vmatmul.f32.gmra.mxu2 %v3306_v19  ;;  %3644 = vmatmul.f32.gmra.mxu3 %v6958_v22  ;;  %v8534_v5 = vand.u32 4294901760, %v8533_v52 }
 0x455   : > { %8529 = vst [vmem:[#allocation78_spill] sm:$0xff] %v6960_v57  ;;  %v2562_v23 = vpop.f32.mrf.mxu1  ;;  %v2559_v41 = vadd.f32 %v2558_v25, %v2285_v12  ;;  %3745 = vmatmul.f32.gmra.mxu0 %v8524_v49  ;;  %v1276_v12 = vadd.f32 %v8536_v6, %v974_v62  ;;  %v982_v62 = vadd.f32 %v6595_v37, %v8541_v21  ;;  %v8542_v6 = vld [vmem:[#allocation8_spill] sm:$0xff]  ;;  %v8657_v57 = vld [vmem:[#allocation45_spill] sm:$0xff] }
 0x456   : > { %8530 = vst [vmem:[#allocation81_spill] sm:$0xff] %v6963_v13  ;;  %v8122_v11 = vand.u32 4294901760, %v6963_v13  ;;  %v8545_v21 = vld [vmem:[#allocation92_spill] sm:$0xff] }
 0x457   : > { %v2648_v48 = vmax.f32 %v2559_v41, 0.0  ;;  %v3180_v9 = vpop.f32.mrf.mxu2  ;;  %v3581_v40 = vpop.f32.mrf.mxu3 }
 0x458   : > { %4100 = vmatmul.f32.gmra.mxu1 %v8534_v5  ;;  %v3181_v19 = vadd.f32 %v6731_v56, %v3180_v9  ;;  %v3313_v53 = vsub.f32 %v6963_v13, %v8122_v11  ;;  %v8540_v11 = vld [vmem:[#allocation127_spill] sm:$0xff]  ;;  %v8642_v13 = vld [vmem:[#allocation38_spill] sm:$0xff] }
 0x459   : > { %v2832_v25 = vsel %vm2665_vm2, %v2648_v48, 0  ;;  %v1609_v47 = vadd.f32 %v8540_v11, %v1276_v12  ;;  %v8544_v12 = vld [vmem:[#allocation126_spill] sm:$0xff] }
 0x45a   : > { %v6980_v49 = vand.u32 4294901760, %v2832_v25  ;;  %v2288_v41 = vpop.f32.mrf.mxu0  ;;  %v3314_v22 = vand.u32 4294901760, %v3313_v53  ;;  %v6982_v54 = vadd.f32 %v3577_v8, %v3181_v19 }
 0x45b   : > { %v2289_v34 = vadd.f32 %v2288_v41, %v1999_v15  ;;  %v2005_v41 = vadd.f32 %v8544_v12, %v1609_v47  ;;  %v8550_v12 = vld [vmem:[#allocation95_spill] sm:$0xff] }
 0x45c   : > { %8537 = vst [vmem:[#allocation107_spill] sm:$0xff] %v6980_v49  ;;  %v6985_v5 = vsub.f32 %v2832_v25, %v6980_v49  ;;  %3315 = vmatmul.f32.gmra.mxu2 %v3314_v22  ;;  %3648 = vmatmul.f32.gmra.mxu3 %v6980_v49  ;;  %v8543_v25 = vand.u32 4294901760, %v8542_v6 }
 0x45d   : > { %8538 = vst [vmem:[#allocation80_spill] sm:$0xff] %v6982_v54  ;;  %v2566_v9 = vpop.f32.mrf.mxu1  ;;  %v2563_v48 = vadd.f32 %v2562_v23, %v2289_v34  ;;  %3750 = vmatmul.f32.gmra.mxu0 %v8533_v52  ;;  %v1280_v34 = vadd.f32 %v8545_v21, %v982_v62  ;;  %v990_v62 = vadd.f32 %v6595_v37, %v8550_v12  ;;  %v8551_v21 = vld [vmem:[#allocation10_spill] sm:$0xff]  ;;  %v8647_v54 = vld [vmem:[#allocation40_spill] sm:$0xff] }
 0x45e   : > { %8539 = vst [vmem:[#allocation83_spill] sm:$0xff] %v6985_v5  ;;  %v8129_v53 = vand.u32 4294901760, %v6985_v5  ;;  %v8554_v12 = vld [vmem:[#allocation94_spill] sm:$0xff] }
 0x45f   : > { %v2649_v8 = vmax.f32 %v2563_v48, 0.0  ;;  %v3188_v19 = vpop.f32.mrf.mxu2  ;;  %v3585_v15 = vpop.f32.mrf.mxu3 }
 0x460   : > { %4106 = vmatmul.f32.gmra.mxu1 %v8543_v25  ;;  %v3189_v22 = vadd.f32 %v6731_v56, %v3188_v19  ;;  %v3321_v11 = vsub.f32 %v6985_v5, %v8129_v53  ;;  %v8549_v53 = vld [vmem:[#allocation129_spill] sm:$0xff] }
 0x461   : > { %v2835_v23 = vsel %vm2665_vm2, %v2649_v8, 0  ;;  %v1614_v47 = vadd.f32 %v8549_v53, %v1280_v34  ;;  %v8553_v34 = vld [vmem:[#allocation128_spill] sm:$0xff] }
 0x462   : > { %v7002_v52 = vand.u32 4294901760, %v2835_v23  ;;  %v2292_v48 = vpop.f32.mrf.mxu0  ;;  %v3322_v49 = vand.u32 4294901760, %v3321_v11  ;;  %v7004_v20 = vadd.f32 %v3581_v40, %v3189_v22 }
 0x463   : > { %v2293_v36 = vadd.f32 %v2292_v48, %v2005_v41  ;;  %v2011_v48 = vadd.f32 %v8553_v34, %v1614_v47  ;;  %v8559_v34 = vld [vmem:[#allocation97_spill] sm:$0xff] }
 0x464   : > { %8546 = vst [vmem:[#allocation109_spill] sm:$0xff] %v7002_v52  ;;  %v7007_v25 = vsub.f32 %v2835_v23, %v7002_v52  ;;  %3323 = vmatmul.f32.gmra.mxu2 %v3322_v49  ;;  %3652 = vmatmul.f32.gmra.mxu3 %v7002_v52  ;;  %v8552_v23 = vand.u32 4294901760, %v8551_v21 }
 0x465   : > { %8547 = vst [vmem:[#allocation82_spill] sm:$0xff] %v7004_v20  ;;  %v2570_v19 = vpop.f32.mrf.mxu1  ;;  %v2567_v8 = vadd.f32 %v2566_v9, %v2293_v36  ;;  %3755 = vmatmul.f32.gmra.mxu0 %v8542_v6  ;;  %v1284_v36 = vadd.f32 %v8554_v12, %v990_v62  ;;  %v998_v62 = vadd.f32 %v6595_v37, %v8559_v34  ;;  %v8560_v12 = vld [vmem:[#allocation13_spill] sm:$0xff]  ;;  %v8563_v34 = vld [vmem:[#allocation96_spill] sm:$0xff] }
 0x466   : > { %8548 = vst [vmem:[#allocation114_spill] sm:$0xff] %v7007_v25  ;;  %v8134_v11 = vand.u32 4294901760, %v7007_v25 }
 0x467   : > { %v2650_v40 = vmax.f32 %v2567_v8, 0.0  ;;  %v3196_v22 = vpop.f32.mrf.mxu2  ;;  %v3589_v41 = vpop.f32.mrf.mxu3 }
 0x468   : > { %4112 = vmatmul.f32.gmra.mxu1 %v8552_v23  ;;  %v3197_v49 = vadd.f32 %v6731_v56, %v3196_v22  ;;  %v3329_v53 = vsub.f32 %v7007_v25, %v8134_v11  ;;  %v8558_v11 = vld [vmem:[#allocation131_spill] sm:$0xff] }
 0x469   : > { %v2838_v9 = vsel %vm2665_vm2, %v2650_v40, 0  ;;  %v1619_v47 = vadd.f32 %v8558_v11, %v1284_v36  ;;  %v8562_v36 = vld [vmem:[#allocation130_spill] sm:$0xff] }
 0x46a   : > { %v7024_v6 = vand.u32 4294901760, %v2838_v9  ;;  %v2296_v8 = vpop.f32.mrf.mxu0  ;;  %v3330_v52 = vand.u32 4294901760, %v3329_v53  ;;  %v7026_v5 = vadd.f32 %v3585_v15, %v3197_v49 }
 0x46b   : > { %v2297_v20 = vadd.f32 %v2296_v8, %v2011_v48  ;;  %v2017_v8 = vadd.f32 %v8562_v36, %v1619_v47  ;;  %v8568_v36 = vld [vmem:[#allocation99_spill] sm:$0xff] }
 0x46c   : > { %8555 = vst [vmem:[#allocation85_spill] sm:$0xff] %v7024_v6  ;;  %v7029_v23 = vsub.f32 %v2838_v9, %v7024_v6  ;;  %3331 = vmatmul.f32.gmra.mxu2 %v3330_v52  ;;  %3656 = vmatmul.f32.gmra.mxu3 %v7024_v6  ;;  %v8561_v9 = vand.u32 4294901760, %v8560_v12 }
 0x46d   : > { %8556 = vst [vmem:[#allocation117_spill] sm:$0xff] %v7026_v5  ;;  %v2574_v22 = vpop.f32.mrf.mxu1  ;;  %v2571_v40 = vadd.f32 %v2570_v19, %v2297_v20  ;;  %3760 = vmatmul.f32.gmra.mxu0 %v8551_v21  ;;  %v1288_v20 = vadd.f32 %v8563_v34, %v998_v62  ;;  %v1006_v62 = vadd.f32 %v6595_v37, %v8568_v36  ;;  %v8569_v34 = vld [vmem:[#allocation14_spill] sm:$0xff] }
 0x46e   : > { %8557 = vst [vmem:[#allocation112_spill] sm:$0xff] %v7029_v23  ;;  %v8139_v53 = vand.u32 4294901760, %v7029_v23  ;;  %v8572_v36 = vld [vmem:[#allocation98_spill] sm:$0xff] }
 0x46f   : > { %v2651_v15 = vmax.f32 %v2571_v40, 0.0  ;;  %v3204_v49 = vpop.f32.mrf.mxu2  ;;  %v3593_v48 = vpop.f32.mrf.mxu3 }
 0x470   : > { %4118 = vmatmul.f32.gmra.mxu1 %v8561_v9  ;;  %v3205_v52 = vadd.f32 %v6731_v56, %v3204_v49  ;;  %v3337_v11 = vsub.f32 %v7029_v23, %v8139_v53  ;;  %v8567_v53 = vld [vmem:[#allocation11_spill] sm:$0xff] }
 0x471   : > { %v2841_v19 = vsel %vm2665_vm2, %v2651_v15, 0  ;;  %v1624_v47 = vadd.f32 %v8567_v53, %v1288_v20  ;;  %v8571_v20 = vld [vmem:[#allocation9_spill] sm:$0xff] }
 0x472   : > { %v7046_v21 = vand.u32 4294901760, %v2841_v19  ;;  %v2300_v40 = vpop.f32.mrf.mxu0  ;;  %v3338_v6 = vand.u32 4294901760, %v3337_v11  ;;  %v7048_v25 = vadd.f32 %v3589_v41, %v3205_v52 }
 0x473   : > { %v2301_v5 = vadd.f32 %v2300_v40, %v2017_v8  ;;  %v2023_v40 = vadd.f32 %v8571_v20, %v1624_v47  ;;  %v8577_v20 = vld [vmem:[#allocation101_spill] sm:$0xff] }
 0x474   : > { %8564 = vst [vmem:[#allocation84_spill] sm:$0xff] %v7046_v21  ;;  %v7051_v9 = vsub.f32 %v2841_v19, %v7046_v21  ;;  %3339 = vmatmul.f32.gmra.mxu2 %v3338_v6  ;;  %3660 = vmatmul.f32.gmra.mxu3 %v7046_v21  ;;  %v8570_v19 = vand.u32 4294901760, %v8569_v34 }
 0x475   : > { %8565 = vst [vmem:[#allocation118_spill] sm:$0xff] %v7048_v25  ;;  %v2578_v49 = vpop.f32.mrf.mxu1  ;;  %v2575_v15 = vadd.f32 %v2574_v22, %v2301_v5  ;;  %3765 = vmatmul.f32.gmra.mxu0 %v8560_v12  ;;  %v1292_v5 = vadd.f32 %v8572_v36, %v1006_v62  ;;  %v1014_v62 = vadd.f32 %v6595_v37, %v8577_v20  ;;  %v8578_v36 = vld [vmem:[#allocation16_spill] sm:$0xff] }
 0x476   : > { %8566 = vst [vmem:[#allocation87_spill] sm:$0xff] %v7051_v9  ;;  %v8144_v11 = vand.u32 4294901760, %v7051_v9  ;;  %v8581_v37 = vld [vmem:[#allocation100_spill] sm:$0xff] }
 0x477   : > { %v2652_v41 = vmax.f32 %v2575_v15, 0.0  ;;  %v3212_v52 = vpop.f32.mrf.mxu2  ;;  %v3597_v8 = vpop.f32.mrf.mxu3 }
 0x478   : > { %4124 = vmatmul.f32.gmra.mxu1 %v8570_v19  ;;  %v3213_v6 = vadd.f32 %v6731_v56, %v3212_v52  ;;  %v3345_v53 = vsub.f32 %v7051_v9, %v8144_v11  ;;  %v8576_v11 = vld [vmem:[#allocation135_spill] sm:$0xff] }
 0x479   : > { %v2844_v22 = vsel %vm2665_vm2, %v2652_v41, 0  ;;  %v1629_v47 = vadd.f32 %v8576_v11, %v1292_v5  ;;  %v8580_v5 = vld [vmem:[#allocation134_spill] sm:$0xff] }
 0x47a   : > { %v7068_v12 = vand.u32 4294901760, %v2844_v22  ;;  %v2304_v15 = vpop.f32.mrf.mxu0  ;;  %v3346_v21 = vand.u32 4294901760, %v3345_v53  ;;  %v7070_v25 = vadd.f32 %v3593_v48, %v3213_v6 }
 0x47b   : > { %v2305_v23 = vadd.f32 %v2304_v15, %v2023_v40  ;;  %v2029_v15 = vadd.f32 %v8580_v5, %v1629_v47 }
 0x47c   : > { %8573 = vst [vmem:[#allocation121_spill] sm:$0xff] %v7068_v12  ;;  %v7073_v19 = vsub.f32 %v2844_v22, %v7068_v12  ;;  %3347 = vmatmul.f32.gmra.mxu2 %v3346_v21  ;;  %3664 = vmatmul.f32.gmra.mxu3 %v7068_v12  ;;  %v8579_v22 = vand.u32 4294901760, %v8578_v36 }
 0x47d   : > { %8574 = vst [vmem:[#allocation115_spill] sm:$0xff] %v7070_v25  ;;  %v2582_v52 = vpop.f32.mrf.mxu1  ;;  %v2579_v41 = vadd.f32 %v2578_v49, %v2305_v23  ;;  %3770 = vmatmul.f32.gmra.mxu0 %v8569_v34  ;;  %v1296_v23 = vadd.f32 %v8581_v37, %v1014_v62  ;;  %v5141_v62 = vld [vmem:[%s7815_s2] ss:$0 sm:$0xff] }
 0x47e   : > { %8575 = vst [vmem:[#allocation86_spill] sm:$0xff] %v7073_v19  ;;  %v8147_v53 = vand.u32 4294901760, %v7073_v19 }
 0x47f   : > { %v2653_v48 = vmax.f32 %v2579_v41, 0.0  ;;  %v3220_v6 = vpop.f32.mrf.mxu2  ;;  %v3601_v40 = vpop.f32.mrf.mxu3 }
 0x480   : > { %4130 = vmatmul.f32.gmra.mxu1 %v8579_v22  ;;  %v3221_v21 = vadd.f32 %v6731_v56, %v3220_v6  ;;  %v3353_v11 = vsub.f32 %v7073_v19, %v8147_v53  ;;  %v8585_v53 = vld [vmem:[#allocation137_spill] sm:$0xff] }
 0x481   : > { %v2847_v49 = vsel %vm2665_vm2, %v2653_v48, 0  ;;  %v1634_v47 = vadd.f32 %v8585_v53, %v1296_v23  ;;  %v8586_v48 = vld [vmem:[#allocation103_spill] sm:$0xff]  ;;  %v8589_v23 = vld [vmem:[#allocation136_spill] sm:$0xff] }
 0x482   : > { %v7090_v34 = vand.u32 4294901760, %v2847_v49  ;;  %v2308_v20 = vpop.f32.mrf.mxu0  ;;  %v3354_v41 = vand.u32 4294901760, %v3353_v11  ;;  %v7092_v12 = vadd.f32 %v3597_v8, %v3221_v21  ;;  %v1022_v5 = vadd.f32 %v5141_v62, %v8586_v48  ;;  %v8590_v62 = vld [vmem:[#allocation102_spill] sm:$0xff] }
 0x483   : > { %v2309_v25 = vadd.f32 %v2308_v20, %v2029_v15 }
 0x484   : > { %8582 = vst [vmem:[#allocation122_spill] sm:$0xff] %v7090_v34  ;;  %v7095_v22 = vsub.f32 %v2847_v49, %v7090_v34  ;;  %3355 = vmatmul.f32.gmra.mxu2 %v3354_v41  ;;  %3668 = vmatmul.f32.gmra.mxu3 %v7090_v34  ;;  %v8587_v49 = vld [vmem:[#allocation18_spill] sm:$0xff]  ;;  %v2035_v34 = vadd.f32 %v8589_v23, %v1634_v47 }
 0x485   : > { %8583 = vst [vmem:[#allocation89_spill] sm:$0xff] %v7092_v12  ;;  %v2586_v6 = vpop.f32.mrf.mxu1  ;;  %v2583_v37 = vadd.f32 %v2582_v52, %v2309_v25  ;;  %3775 = vmatmul.f32.gmra.mxu0 %v8578_v36  ;;  %v8588_v20 = vand.u32 4294901760, %v8587_v49  ;;  %v1300_v25 = vadd.f32 %v8590_v62, %v1022_v5 }
 0x486   : > { %8584 = vst [vmem:[#allocation4_spill] sm:$0xff] %v7095_v22  ;;  %v8152_v8 = vand.u32 4294901760, %v7095_v22 }
 0x487   : > { %v2654_v21 = vmax.f32 %v2583_v37, 0.0  ;;  %v3228_v11 = vpop.f32.mrf.mxu2  ;;  %v3605_v15 = vpop.f32.mrf.mxu3 }
 0x488   : > { %4136 = vmatmul.f32.gmra.mxu1 %v8588_v20  ;;  %v3229_v41 = vadd.f32 %v6731_v56, %v3228_v11  ;;  %v3361_v53 = vsub.f32 %v7095_v22, %v8152_v8  ;;  %v8594_v8 = vld [vmem:[#allocation139_spill] sm:$0xff]  ;;  %v8632_v22 = vld [vmem:[#allocation34_spill] sm:$0xff] }
 0x489   : > { %v2850_v52 = vsel %vm2665_vm2, %v2654_v21, 0  ;;  %v1639_v47 = vadd.f32 %v8594_v8, %v1300_v25 }
 0x48a   : > { %v7114_v36 = vand.u32 4294901760, %v2850_v52  ;;  %v2312_v48 = vpop.f32.mrf.mxu0  ;;  %v3362_v37 = vand.u32 4294901760, %v3361_v53  ;;  %v7116_v12 = vadd.f32 %v3601_v40, %v3229_v41  ;;  %v8595_v40 = vld [vmem:[#allocation20_spill] sm:$0xff] }
 0x48b   : > { %v2313_v19 = vadd.f32 %v2312_v48, %v2035_v34  ;;  %v8596_v41 = vand.u32 4294901760, %v8595_v40  ;;  %v8597_v48 = vld [vmem:[#allocation138_spill] sm:$0xff] }
 0x48c   : > { %8591 = vst [vmem:[#allocation119_spill] sm:$0xff] %v7114_v36  ;;  %v7119_v20 = vsub.f32 %v2850_v52, %v7114_v36  ;;  %3363 = vmatmul.f32.gmra.mxu2 %v3362_v37  ;;  %3672 = vmatmul.f32.gmra.mxu3 %v7114_v36  ;;  %v2041_v37 = vadd.f32 %v8597_v48, %v1639_v47 }
 0x48d   : > { %8592 = vst [vmem:[#allocation88_spill] sm:$0xff] %v7116_v12  ;;  %v2590_v11 = vpop.f32.mrf.mxu1  ;;  %v2587_v23 = vadd.f32 %v2586_v6, %v2313_v19  ;;  %3780 = vmatmul.f32.gmra.mxu0 %v8587_v49  ;;  %v8601_v12 = vld [vmem:[#allocation22_spill] sm:$0xff] }
 0x48e   : > { %8593 = vst [vmem:[#allocation2_spill] sm:$0xff] %v7119_v20  ;;  %v8155_v5 = vand.u32 4294901760, %v7119_v20 }
 0x48f   : > { %v2655_v21 = vmax.f32 %v2587_v23, 0.0  ;;  %v3236_v62 = vpop.f32.mrf.mxu2  ;;  %v3609_v53 = vpop.f32.mrf.mxu3 }
 0x490   : > { %4142 = vmatmul.f32.gmra.mxu1 %v8596_v41  ;;  %v3237_v34 = vadd.f32 %v6731_v56, %v3236_v62  ;;  %v3369_v52 = vsub.f32 %v7119_v20, %v8155_v5  ;;  %v8627_v20 = vld [vmem:[#allocation32_spill] sm:$0xff] }
 0x491   : > { %v2853_v19 = vsel %vm2665_vm2, %v2655_v21, 0 }
 0x492   : > { %v7133_v6 = vand.u32 4294901760, %v2853_v19  ;;  %v2316_v8 = vpop.f32.mrf.mxu0  ;;  %v3370_v49 = vand.u32 4294901760, %v3369_v52  ;;  %v7135_v25 = vadd.f32 %v3605_v15, %v3237_v34  ;;  %v8602_v52 = vand.u32 4294901760, %v8601_v12 }
 0x493   : > { %v2317_v23 = vadd.f32 %v2316_v8, %v2041_v37 }
 0x494   : > { %8598 = vst [vmem:[#allocation91_spill] sm:$0xff] %v7133_v6  ;;  %v7138_v36 = vsub.f32 %v2853_v19, %v7133_v6  ;;  %3371 = vmatmul.f32.gmra.mxu2 %v3370_v49  ;;  %3676 = vmatmul.f32.gmra.mxu3 %v7133_v6  ;;  %v8605_v49 = vld [vmem:[#allocation140_spill] sm:$0xff] }
 0x495   : > { %8599 = vst [vmem:[#allocation6_spill] sm:$0xff] %v7135_v25  ;;  %v4053_v62 = vpop.f32.mrf.mxu1  ;;  %v2591_v41 = vadd.f32 %v2590_v11, %v2317_v23  ;;  %3785 = vmatmul.f32.gmra.mxu0 %v8595_v40  ;;  %v8612_v25 = vld [vmem:[#allocation26_spill] sm:$0xff] }
 0x496   : > { %8600 = vst [vmem:[#allocation123_spill] sm:$0xff] %v7138_v36  ;;  %v8156_v47 = vand.u32 4294901760, %v7138_v36 }
 0x497   : > { %v2656_v21 = vmax.f32 %v2591_v41, 0.0  ;;  %v3244_v48 = vpop.f32.mrf.mxu2  ;;  %v3613_v5 = vpop.f32.mrf.mxu3 }
 0x498   : > { %4148 = vmatmul.f32.gmra.mxu1 %v8602_v52  ;;  %v3245_v15 = vadd.f32 %v6731_v56, %v3244_v48  ;;  %v3377_v34 = vsub.f32 %v7138_v36, %v8156_v47  ;;  %v8613_v36 = vand.u32 4294901760, %v8612_v25 }
 0x499   : > { %v2856_v37 = vsel %vm2665_vm2, %v2656_v21, 0 }
 0x49a   : > { %v7150_v19 = vand.u32 4294901760, %v2856_v37  ;;  %v3711_v11 = vpop.f32.mrf.mxu0  ;;  %v3378_v40 = vand.u32 4294901760, %v3377_v34  ;;  %v7152_v8 = vadd.f32 %v3609_v53, %v3245_v15  ;;  %v8607_v34 = vld [vmem:[#allocation24_spill] sm:$0xff] }
 0x49b   : > { %v3712_v23 = vadd.f32 %v3711_v11, %v8605_v49  ;;  %v8608_v53 = vand.u32 4294901760, %v8607_v34 }
 0x49c   : > { %8603 = vst [vmem:[#allocation90_spill] sm:$0xff] %v7150_v19  ;;  %v7156_v41 = vsub.f32 %v2856_v37, %v7150_v19  ;;  %3379 = vmatmul.f32.gmra.mxu2 %v3378_v40  ;;  %3680 = vmatmul.f32.gmra.mxu3 %v7150_v19  ;;  %v8611_v19 = vld [vmem:[#allocation106_spill] sm:$0xff] }
 0x49d   : > { %8604 = vst [vmem:[#allocation127_spill] sm:$0xff] %v7152_v8  ;;  %v4059_v48 = vpop.f32.mrf.mxu1  ;;  %3790 = vmatmul.f32.gmra.mxu0 %v8601_v12  ;;  %v7160_v52 = vadd.f32 %v4053_v62, %v3712_v23  ;;  %v8610_v12 = vld [vmem:[#allocation141_spill] sm:$0xff] }
 0x49e   : > { %8606 = vst [vmem:[#allocation93_spill] sm:$0xff] %v7156_v41  ;;  %v8163_v21 = vand.u32 4294901760, %v7156_v41 }
 0x49f   : > { %v3252_v47 = vpop.f32.mrf.mxu2  ;;  %v3617_v6 = vpop.f32.mrf.mxu3 }
 0x4a0   : > { %4154 = vmatmul.f32.gmra.mxu1 %v8608_v53  ;;  %v3253_v15 = vadd.f32 %v6731_v56, %v3252_v47  ;;  %v3385_v37 = vsub.f32 %v7156_v41, %v8163_v21  ;;  %v8622_v41 = vld [vmem:[#allocation30_spill] sm:$0xff] }
 0x4a2   : > { %v3716_v11 = vpop.f32.mrf.mxu0  ;;  %v3386_v40 = vand.u32 4294901760, %v3385_v37  ;;  %v7169_v49 = vadd.f32 %v3613_v5, %v3253_v15  ;;  %v8615_v15 = vld [vmem:[#allocation142_spill] sm:$0xff] }
 0x4a3   : > { %v3717_v62 = vadd.f32 %v3716_v11, %v8610_v12  ;;  %v8616_v12 = vld [vmem:[#allocation108_spill] sm:$0xff] }
 0x4a4   : > { %8609 = vst [vmem:[#allocation8_spill] sm:$0xff] %v7169_v49  ;;  %3387 = vmatmul.f32.gmra.mxu2 %v3386_v40  ;;  %4740 = vmatmul.f32.vlgmr.msra.gmra.mxu3 %v8611_v19  ;;  %v8617_v49 = vld [vmem:[#allocation28_spill] sm:$0xff] }
 0x4a5   : > { %v4065_v23 = vpop.f32.mrf.mxu1  ;;  %3795 = vmatmul.f32.gmra.mxu0 %v8607_v34  ;;  %v7174_v8 = vadd.f32 %v4059_v48, %v3717_v62 }
 0x4a7   : > { %v3260_v53 = vpop.f32.mrf.mxu2  ;;  %v3621_v47 = vpop.f32.mrf.mxu3 }
 0x4a8   : > { %4160 = vmatmul.f32.gmra.mxu1 %v8613_v36  ;;  %v3261_v21 = vadd.f32 %v6731_v56, %v3260_v53  ;;  %v8618_v36 = vand.u32 4294901760, %v8617_v49 }
 0x4aa   : > { %v3721_v37 = vpop.f32.mrf.mxu0  ;;  %v7179_v5 = vadd.f32 %v3617_v6, %v3261_v21 }
 0x4ab   : > { %v3722_v11 = vadd.f32 %v3721_v37, %v8615_v15  ;;  %v8620_v37 = vld [vmem:[#allocation143_spill] sm:$0xff] }
 0x4ac   : > { %8614 = vst [vmem:[#allocation126_spill] sm:$0xff] %v7179_v5  ;;  %4463 = vmatmul.f32.vlgmr.msra.gmra.mxu2 %v8611_v19  ;;  %4744 = vmatmul.f32.gmra.mxu3 %v8616_v12  ;;  %v8621_v19 = vld [vmem:[#allocation110_spill] sm:$0xff] }
 0x4ad   : > { %v4071_v40 = vpop.f32.mrf.mxu1  ;;  %3800 = vmatmul.f32.gmra.mxu0 %v8612_v25  ;;  %v7185_v48 = vadd.f32 %v4065_v23, %v3722_v11 }
 0x4af   : > { %v3268_v34 = vpop.f32.mrf.mxu2  ;;  %v3625_v62 = vpop.f32.mrf.mxu3 }
 0x4b0   : > { %4166 = vmatmul.f32.gmra.mxu1 %v8618_v36  ;;  %v3269_v53 = vadd.f32 %v6731_v56, %v3268_v34  ;;  %v8623_v36 = vand.u32 4294901760, %v8622_v41 }
 0x4b2   : > { %v3726_v6 = vpop.f32.mrf.mxu0  ;;  %v7190_v21 = vadd.f32 %v3621_v47, %v3269_v53 }
 0x4b3   : > { %v3727_v15 = vadd.f32 %v3726_v6, %v8620_v37  ;;  %v8625_v6 = vld [vmem:[#allocation144_spill] sm:$0xff] }
 0x4b4   : > { %8619 = vst [vmem:[#allocation92_spill] sm:$0xff] %v7190_v21  ;;  %4467 = vmatmul.f32.gmra.mxu2 %v8616_v12  ;;  %4748 = vmatmul.f32.gmra.mxu3 %v8621_v19  ;;  %v8626_v12 = vld [vmem:[#allocation111_spill] sm:$0xff] }
 0x4b5   : > { %v4077_v5 = vpop.f32.mrf.mxu1  ;;  %3805 = vmatmul.f32.gmra.mxu0 %v8617_v49  ;;  %v7196_v25 = vadd.f32 %v4071_v40, %v3727_v15 }
 0x4b7   : > { %v3276_v23 = vpop.f32.mrf.mxu2  ;;  %v3629_v11 = vpop.f32.mrf.mxu3 }
 0x4b8   : > { %4172 = vmatmul.f32.gmra.mxu1 %v8623_v36  ;;  %v3277_v34 = vadd.f32 %v6731_v56, %v3276_v23  ;;  %v8628_v36 = vand.u32 4294901760, %v8627_v20 }
 0x4ba   : > { %v3731_v47 = vpop.f32.mrf.mxu0  ;;  %v7201_v53 = vadd.f32 %v3625_v62, %v3277_v34 }
 0x4bb   : > { %v3732_v37 = vadd.f32 %v3731_v47, %v8625_v6  ;;  %v8630_v47 = vld [vmem:[#allocation145_spill] sm:$0xff] }
 0x4bc   : > { %8624 = vst [vmem:[#allocation129_spill] sm:$0xff] %v7201_v53  ;;  %4471 = vmatmul.f32.gmra.mxu2 %v8621_v19  ;;  %4752 = vmatmul.f32.gmra.mxu3 %v8626_v12  ;;  %v8631_v19 = vld [vmem:[#allocation113_spill] sm:$0xff] }
 0x4bd   : > { %v4083_v21 = vpop.f32.mrf.mxu1  ;;  %3810 = vmatmul.f32.gmra.mxu0 %v8622_v41  ;;  %v7207_v49 = vadd.f32 %v4077_v5, %v3732_v37 }
 0x4bf   : > { %v3284_v40 = vpop.f32.mrf.mxu2  ;;  %v3633_v15 = vpop.f32.mrf.mxu3 }
 0x4c0   : > { %4178 = vmatmul.f32.gmra.mxu1 %v8628_v36  ;;  %v3285_v23 = vadd.f32 %v6731_v56, %v3284_v40  ;;  %v8633_v36 = vand.u32 4294901760, %v8632_v22  ;;  %v7225_v56 = vld [vmem:[%s7817_s4] ss:$0 sm:$0xff] }
 0x4c2   : > { %v3736_v62 = vpop.f32.mrf.mxu0  ;;  %v7212_v34 = vadd.f32 %v3629_v11, %v3285_v23  ;;  %v8635_v23 = vld [vmem:[#allocation146_spill] sm:$0xff] }
 0x4c3   : > { %v3737_v6 = vadd.f32 %v3736_v62, %v8630_v47 }
 0x4c4   : > { %8629 = vst [vmem:[#allocation95_spill] sm:$0xff] %v7212_v34  ;;  %4475 = vmatmul.f32.gmra.mxu2 %v8626_v12  ;;  %4756 = vmatmul.f32.gmra.mxu3 %v8631_v19  ;;  %v8637_v34 = vld [vmem:[#allocation36_spill] sm:$0xff] }
 0x4c5   : > { %v4089_v53 = vpop.f32.mrf.mxu1  ;;  %3815 = vmatmul.f32.gmra.mxu0 %v8627_v20  ;;  %v7218_v41 = vadd.f32 %v4083_v21, %v3737_v6  ;;  %v8636_v21 = vld [vmem:[#allocation116_spill] sm:$0xff]  ;;  %v8638_v9 = vand.u32 4294901760, %v8637_v34 }
 0x4c7   : > { %v3292_v5 = vpop.f32.mrf.mxu2  ;;  %v3637_v37 = vpop.f32.mrf.mxu3 }
 0x4c8   : > { %4184 = vmatmul.f32.gmra.mxu1 %v8633_v36  ;;  %v3293_v11 = vadd.f32 %v7225_v56, %v3292_v5 }
 0x4ca   : > { %v3741_v40 = vpop.f32.mrf.mxu0  ;;  %v7228_v12 = vadd.f32 %v3633_v15, %v3293_v11 }
 0x4cb   : > { %v3742_v62 = vadd.f32 %v3741_v40, %v8635_v23  ;;  %v8640_v40 = vld [vmem:[#allocation147_spill] sm:$0xff] }
 0x4cc   : > { %8634 = vst [vmem:[#allocation10_spill] sm:$0xff] %v7228_v12  ;;  %4479 = vmatmul.f32.gmra.mxu2 %v8631_v19  ;;  %4760 = vmatmul.f32.gmra.mxu3 %v8636_v21  ;;  %v8641_v19 = vld [vmem:[#allocation120_spill] sm:$0xff] }
 0x4cd   : > { %v4095_v20 = vpop.f32.mrf.mxu1  ;;  %3820 = vmatmul.f32.gmra.mxu0 %v8632_v22  ;;  %v7234_v47 = vadd.f32 %v4089_v53, %v3742_v62 }
 0x4cf   : > { %v3300_v6 = vpop.f32.mrf.mxu2  ;;  %v3641_v36 = vpop.f32.mrf.mxu3 }
 0x4d0   : > { %4190 = vmatmul.f32.gmra.mxu1 %v8638_v9  ;;  %v3301_v5 = vadd.f32 %v7225_v56, %v3300_v6  ;;  %v8643_v9 = vand.u32 4294901760, %v8642_v13 }
 0x4d2   : > { %v3746_v15 = vpop.f32.mrf.mxu0  ;;  %v7239_v11 = vadd.f32 %v3637_v37, %v3301_v5 }
 0x4d3   : > { %v3747_v23 = vadd.f32 %v3746_v15, %v8640_v40  ;;  %v8645_v15 = vld [vmem:[#allocation148_spill] sm:$0xff] }
 0x4d4   : > { %8639 = vst [vmem:[#allocation128_spill] sm:$0xff] %v7239_v11  ;;  %4483 = vmatmul.f32.gmra.mxu2 %v8636_v21  ;;  %4764 = vmatmul.f32.gmra.mxu3 %v8641_v19  ;;  %v8646_v21 = vld [vmem:[#allocation124_spill] sm:$0xff] }
 0x4d5   : > { %v4101_v12 = vpop.f32.mrf.mxu1  ;;  %3825 = vmatmul.f32.gmra.mxu0 %v8637_v34  ;;  %v7245_v22 = vadd.f32 %v4095_v20, %v3747_v23 }
 0x4d7   : > { %v3308_v53 = vpop.f32.mrf.mxu2  ;;  %v3645_v62 = vpop.f32.mrf.mxu3 }
 0x4d8   : > { %4196 = vmatmul.f32.gmra.mxu1 %v8643_v9  ;;  %v3309_v6 = vadd.f32 %v7225_v56, %v3308_v53  ;;  %v8648_v9 = vand.u32 4294901760, %v8647_v54 }
 0x4da   : > { %v3751_v37 = vpop.f32.mrf.mxu0  ;;  %v7250_v5 = vadd.f32 %v3641_v36, %v3309_v6 }
 0x4db   : > { %v3752_v40 = vadd.f32 %v3751_v37, %v8645_v15  ;;  %v8650_v37 = vld [vmem:[#allocation149_spill] sm:$0xff] }
 0x4dc   : > { %8644 = vst [vmem:[#allocation94_spill] sm:$0xff] %v7250_v5  ;;  %4487 = vmatmul.f32.gmra.mxu2 %v8641_v19  ;;  %4768 = vmatmul.f32.gmra.mxu3 %v8646_v21  ;;  %v8651_v19 = vld [vmem:[#allocation125_spill] sm:$0xff] }
 0x4dd   : > { %v4107_v11 = vpop.f32.mrf.mxu1  ;;  %3830 = vmatmul.f32.gmra.mxu0 %v8642_v13  ;;  %v7256_v34 = vadd.f32 %v4101_v12, %v3752_v40 }
 0x4df   : > { %v3316_v20 = vpop.f32.mrf.mxu2  ;;  %v3649_v23 = vpop.f32.mrf.mxu3 }
 0x4e0   : > { %4202 = vmatmul.f32.gmra.mxu1 %v8648_v9  ;;  %v3317_v53 = vadd.f32 %v7225_v56, %v3316_v20  ;;  %v8653_v9 = vand.u32 4294901760, %v8652_v7 }
 0x4e2   : > { %v3756_v36 = vpop.f32.mrf.mxu0  ;;  %v7261_v6 = vadd.f32 %v3645_v62, %v3317_v53 }
 0x4e3   : > { %v3757_v15 = vadd.f32 %v3756_v36, %v8650_v37  ;;  %v8655_v36 = vld [vmem:[#allocation150_spill] sm:$0xff] }
 0x4e4   : > { %8649 = vst [vmem:[#allocation131_spill] sm:$0xff] %v7261_v6  ;;  %4491 = vmatmul.f32.gmra.mxu2 %v8646_v21  ;;  %4772 = vmatmul.f32.gmra.mxu3 %v8651_v19  ;;  %v8656_v21 = vld [vmem:[#allocation3_spill] sm:$0xff] }
 0x4e5   : > { %v4113_v5 = vpop.f32.mrf.mxu1  ;;  %3835 = vmatmul.f32.gmra.mxu0 %v8647_v54  ;;  %v7267_v13 = vadd.f32 %v4107_v11, %v3757_v15 }
 0x4e7   : > { %v3324_v12 = vpop.f32.mrf.mxu2  ;;  %v3653_v40 = vpop.f32.mrf.mxu3 }
 0x4e8   : > { %4208 = vmatmul.f32.gmra.mxu1 %v8653_v9  ;;  %v3325_v20 = vadd.f32 %v7225_v56, %v3324_v12  ;;  %v8658_v9 = vand.u32 4294901760, %v8657_v57 }
 0x4ea   : > { %v3761_v62 = vpop.f32.mrf.mxu0  ;;  %v7272_v53 = vadd.f32 %v3649_v23, %v3325_v20 }
 0x4eb   : > { %v3762_v37 = vadd.f32 %v3761_v62, %v8655_v36 }
 0x4ec   : > { %8654 = vst [vmem:[#allocation97_spill] sm:$0xff] %v7272_v53  ;;  %4495 = vmatmul.f32.gmra.mxu2 %v8651_v19  ;;  %4776 = vmatmul.f32.gmra.mxu3 %v8656_v21  ;;  %v8660_v19 = vld [vmem:[#allocation5_spill] sm:$0xff]  ;;  %v8661_v53 = vld [vmem:[#allocation46_spill] sm:$0xff] }
 0x4ed   : > { %v4119_v6 = vpop.f32.mrf.mxu1  ;;  %3840 = vmatmul.f32.gmra.mxu0 %v8652_v7  ;;  %v7278_v54 = vadd.f32 %v4113_v5, %v3762_v37 }
 0x4ef   : > { %v3332_v11 = vpop.f32.mrf.mxu2  ;;  %v3657_v15 = vpop.f32.mrf.mxu3 }
 0x4f0   : > { %4214 = vmatmul.f32.gmra.mxu1 %v8658_v9  ;;  %v3333_v12 = vadd.f32 %v7225_v56, %v3332_v11  ;;  %v8662_v9 = vand.u32 4294901760, %v8661_v53 }
 0x4f2   : > { %v3766_v23 = vpop.f32.mrf.mxu0  ;;  %v7283_v20 = vadd.f32 %v3653_v40, %v3333_v12 }
 0x4f3   : > { %v3767_v62 = vadd.f32 %v3766_v23, %v6449_v30  ;;  %v8664_v30 = vld [vmem:[#allocation151_spill] sm:$0xff] }
 0x4f4   : > { %8659 = vst [vmem:[#allocation13_spill] sm:$0xff] %v7283_v20  ;;  %4499 = vmatmul.f32.gmra.mxu2 %v8656_v21  ;;  %4780 = vmatmul.f32.gmra.mxu3 %v8660_v19  ;;  %v8665_v21 = vld [vmem:[#allocation7_spill] sm:$0xff] }
 0x4f5   : > { %v4125_v36 = vpop.f32.mrf.mxu1  ;;  %3845 = vmatmul.f32.gmra.mxu0 %v8657_v57  ;;  %v7289_v7 = vadd.f32 %v4119_v6, %v3767_v62 }
 0x4f7   : > { %v3340_v5 = vpop.f32.mrf.mxu2  ;;  %v3661_v37 = vpop.f32.mrf.mxu3 }
 0x4f8   : > { %4220 = vmatmul.f32.gmra.mxu1 %v8662_v9  ;;  %v3341_v11 = vadd.f32 %v7225_v56, %v3340_v5  ;;  %v8667_v9 = vand.u32 4294901760, %v8666_v28 }
 0x4fa   : > { %v3771_v40 = vpop.f32.mrf.mxu0  ;;  %v7294_v12 = vadd.f32 %v3657_v15, %v3341_v11 }
 0x4fb   : > { %v3772_v23 = vadd.f32 %v3771_v40, %v8664_v30  ;;  %v8669_v40 = vld [vmem:[#allocation153_spill] sm:$0xff] }
 0x4fc   : > { %8663 = vst [vmem:[#allocation130_spill] sm:$0xff] %v7294_v12  ;;  %4503 = vmatmul.f32.gmra.mxu2 %v8660_v19  ;;  %4784 = vmatmul.f32.gmra.mxu3 %v8665_v21  ;;  %v8670_v19 = vld [vmem:[#allocation132_spill] sm:$0xff] }
 0x4fd   : > { %v4131_v20 = vpop.f32.mrf.mxu1  ;;  %3850 = vmatmul.f32.gmra.mxu0 %v8661_v53  ;;  %v7300_v57 = vadd.f32 %v4125_v36, %v3772_v23 }
 0x4ff   : > { %v3348_v6 = vpop.f32.mrf.mxu2  ;;  %v3665_v62 = vpop.f32.mrf.mxu3 }
 0x500   : > { %4226 = vmatmul.f32.gmra.mxu1 %v8667_v9  ;;  %v3349_v5 = vadd.f32 %v7225_v56, %v3348_v6  ;;  %v8672_v9 = vand.u32 4294901760, %v8671_v55 }
 0x502   : > { %v3776_v15 = vpop.f32.mrf.mxu0  ;;  %v7305_v11 = vadd.f32 %v3661_v37, %v3349_v5 }
 0x503   : > { %v3777_v30 = vadd.f32 %v3776_v15, %v8669_v40  ;;  %v8674_v15 = vld [vmem:[#allocation154_spill] sm:$0xff] }
 0x504   : > { %8668 = vst [vmem:[#allocation96_spill] sm:$0xff] %v7305_v11  ;;  %4507 = vmatmul.f32.gmra.mxu2 %v8665_v21  ;;  %4788 = vmatmul.f32.gmra.mxu3 %v8670_v19  ;;  %v8675_v21 = vld [vmem:[#allocation133_spill] sm:$0xff] }
 0x505   : > { %v4137_v12 = vpop.f32.mrf.mxu1  ;;  %3855 = vmatmul.f32.gmra.mxu0 %v8666_v28  ;;  %v7311_v53 = vadd.f32 %v4131_v20, %v3777_v30 }
 0x507   : > { %v3356_v36 = vpop.f32.mrf.mxu2  ;;  %v3669_v23 = vpop.f32.mrf.mxu3 }
 0x508   : > { %4232 = vmatmul.f32.gmra.mxu1 %v8672_v9  ;;  %v3357_v6 = vadd.f32 %v7225_v56, %v3356_v36  ;;  %v8677_v9 = vand.u32 4294901760, %v8676_v14 }
 0x50a   : > { %v3781_v37 = vpop.f32.mrf.mxu0  ;;  %v7316_v5 = vadd.f32 %v3665_v62, %v3357_v6 }
 0x50b   : > { %v3782_v40 = vadd.f32 %v3781_v37, %v8674_v15  ;;  %v8679_v37 = vld [vmem:[#allocation155_spill] sm:$0xff] }
 0x50c   : > { %8673 = vst [vmem:[#allocation11_spill] sm:$0xff] %v7316_v5  ;;  %4511 = vmatmul.f32.gmra.mxu2 %v8670_v19  ;;  %4792 = vmatmul.f32.gmra.mxu3 %v8675_v21  ;;  %v8680_v19 = vld [vmem:[#allocation12_spill] sm:$0xff] }
 0x50d   : > { %v4143_v11 = vpop.f32.mrf.mxu1  ;;  %3860 = vmatmul.f32.gmra.mxu0 %v8671_v55  ;;  %v7322_v28 = vadd.f32 %v4137_v12, %v3782_v40 }
 0x50f   : > { %v3364_v20 = vpop.f32.mrf.mxu2  ;;  %v3673_v30 = vpop.f32.mrf.mxu3 }
 0x510   : > { %4238 = vmatmul.f32.gmra.mxu1 %v8677_v9  ;;  %v3365_v36 = vadd.f32 %v7225_v56, %v3364_v20  ;;  %v8683_v9 = vand.u32 4294901760, %v8682_v63 }
 0x512   : > { %v3786_v62 = vpop.f32.mrf.mxu0  ;;  %v7327_v6 = vadd.f32 %v3669_v23, %v3365_v36 }
 0x513   : > { %v3787_v15 = vadd.f32 %v3786_v62, %v8679_v37  ;;  %v8685_v62 = vld [vmem:[#allocation156_spill] sm:$0xff] }
 0x514   : > { %8678 = vst [vmem:[#allocation99_spill] sm:$0xff] %v7327_v6  ;;  %4515 = vmatmul.f32.gmra.mxu2 %v8675_v21  ;;  %4796 = vmatmul.f32.gmra.mxu3 %v8680_v19  ;;  %v8686_v21 = vld [vmem:[#allocation15_spill] sm:$0xff] }
 0x515   : > { %v4149_v5 = vpop.f32.mrf.mxu1  ;;  %3865 = vmatmul.f32.gmra.mxu0 %v8676_v14  ;;  %v7333_v55 = vadd.f32 %v4143_v11, %v3787_v15 }
 0x517   : > { %8681 = vst [vmem:[#allocation14_spill] sm:$0xff] %v7333_v55  ;;  %v3372_v12 = vpop.f32.mrf.mxu2  ;;  %v3677_v40 = vpop.f32.mrf.mxu3  ;;  %v8687_v55 = vld [vmem:[#allocation55_spill] sm:$0xff] }
 0x518   : > { %4244 = vmatmul.f32.gmra.mxu1 %v8683_v9  ;;  %v3373_v20 = vadd.f32 %v7225_v56, %v3372_v12  ;;  %v8688_v9 = vand.u32 4294901760, %v8687_v55 }
 0x51a   : > { %v3791_v23 = vpop.f32.mrf.mxu0  ;;  %v7338_v36 = vadd.f32 %v3673_v30, %v3373_v20 }
 0x51b   : > { %v3792_v37 = vadd.f32 %v3791_v23, %v8685_v62 }
 0x51c   : > { %8684 = vst [vmem:[#allocation9_spill] sm:$0xff] %v7338_v36  ;;  %4519 = vmatmul.f32.gmra.mxu2 %v8680_v19  ;;  %4800 = vmatmul.f32.gmra.mxu3 %v8686_v21  ;;  %v8690_v19 = vld [vmem:[#allocation17_spill] sm:$0xff] }
 0x51d   : > { %v4155_v6 = vpop.f32.mrf.mxu1  ;;  %3870 = vmatmul.f32.gmra.mxu0 %v8682_v63  ;;  %v7344_v14 = vadd.f32 %v4149_v5, %v3792_v37  ;;  %v8691_v37 = vld [vmem:[#allocation57_spill] sm:$0xff] }
 0x51e   : > { %v8692_v36 = vand.u32 4294901760, %v8691_v37 }
 0x51f   : > { %v3380_v11 = vpop.f32.mrf.mxu2  ;;  %v3681_v15 = vpop.f32.mrf.mxu3 }
 0x520   : > { %4250 = vmatmul.f32.gmra.mxu1 %v8688_v9  ;;  %v3381_v12 = vadd.f32 %v7225_v56, %v3380_v11 }
 0x522   : > { %v3796_v30 = vpop.f32.mrf.mxu0  ;;  %v7349_v20 = vadd.f32 %v3677_v40, %v3381_v12 }
 0x523   : > { %v3797_v23 = vadd.f32 %v3796_v30, %v6551_v4  ;;  %v8693_v30 = vld [vmem:[#allocation19_spill] sm:$0xff] }
 0x524   : > { %8689 = vst [vmem:[#allocation98_spill] sm:$0xff] %v7349_v20  ;;  %4523 = vmatmul.f32.gmra.mxu2 %v8686_v21  ;;  %4804 = vmatmul.f32.gmra.mxu3 %v8690_v19 }
 0x525   : > { %v4161_v62 = vpop.f32.mrf.mxu1  ;;  %3875 = vmatmul.f32.gmra.mxu0 %v8687_v55  ;;  %v7355_v63 = vadd.f32 %v4155_v6, %v3797_v23  ;;  %v8694_v55 = vld [vmem:[#allocation59_spill] sm:$0xff] }
 0x526   : > { %v8695_v23 = vand.u32 4294901760, %v8694_v55 }
 0x527   : > { %v3388_v5 = vpop.f32.mrf.mxu2  ;;  %v4741_v11 = vpop.f32.mrf.mxu3 }
 0x528   : > { %4256 = vmatmul.f32.gmra.mxu1 %v8692_v36  ;;  %v3389_v40 = vadd.f32 %v7225_v56, %v3388_v5  ;;  %v8696_v5 = vld [vmem:[#allocation21_spill] sm:$0xff] }
 0x52a   : > { %v3801_v9 = vpop.f32.mrf.mxu0  ;;  %v7360_v12 = vadd.f32 %v3681_v15, %v3389_v40 }
 0x52b   : > { %v3802_v4 = vadd.f32 %v3801_v9, %v6568_v29 }
 0x52c   : > { %4527 = vmatmul.f32.gmra.mxu2 %v8690_v19  ;;  %4808 = vmatmul.f32.gmra.mxu3 %v8693_v30 }
 0x52d   : > { %v4167_v21 = vpop.f32.mrf.mxu1  ;;  %3880 = vmatmul.f32.gmra.mxu0 %v8691_v37  ;;  %v7366_v6 = vadd.f32 %v4161_v62, %v3802_v4  ;;  %v8697_v37 = vld [vmem:[#allocation157_spill] sm:$0xff] }
 0x52e   : > { %v8698_v40 = vand.u32 4294901760, %v8697_v37 }
 0x52f   : > { %v4464_v36 = vpop.f32.mrf.mxu2  ;;  %v4745_v20 = vpop.f32.mrf.mxu3 }
 0x530   : > { %4262 = vmatmul.f32.gmra.mxu1 %v8695_v23  ;;  %v4465_v56 = vadd.f32 %v4464_v36, %v7160_v52 }
 0x532   : > { %v4742_v29 = vadd.f32 %v4741_v11, %v4465_v56  ;;  %v3806_v15 = vpop.f32.mrf.mxu0  ;;  %v8700_v56 = vld [vmem:[#allocation158_spill] sm:$0xff] }
 0x533   : > { %v3807_v62 = vadd.f32 %v3806_v15, %v6585_v58 }
 0x534   : > { %4997 = vst.msk [vmem:[%s7376_s29] sm:$0xff] %vm4996_vm3, %v4742_v29  ;;  %4531 = vmatmul.f32.gmra.mxu2 %v8693_v30  ;;  %4812 = vmatmul.f32.gmra.mxu3 %v8696_v5  ;;  %v8701_v29 = vand.u32 4294901760, %v8700_v56 }
 0x535   : > { %v4173_v19 = vpop.f32.mrf.mxu1  ;;  %3885 = vmatmul.f32.gmra.mxu0 %v8694_v55  ;;  %v7384_v52 = vadd.f32 %v4167_v21, %v3807_v62  ;;  %v8699_v55 = vld [vmem:[#allocation23_spill] sm:$0xff] }
 0x537   : > { %v4468_v9 = vpop.f32.mrf.mxu2  ;;  %v4749_v11 = vpop.f32.mrf.mxu3 }
 0x538   : > { %4268 = vmatmul.f32.gmra.mxu1 %v8698_v40  ;;  %v4469_v4 = vadd.f32 %v4468_v9, %v7174_v8  ;;  %v8703_v9 = vand.u32 4294901760, %v6614_v10 }
 0x53a   : > { %v4746_v23 = vadd.f32 %v4745_v20, %v4469_v4  ;;  %v3811_v58 = vpop.f32.mrf.mxu0 }
 0x53b   : > { %v3812_v36 = vadd.f32 %v3811_v58, %v6610_v44 }
 0x53c   : > { %4998 = vst.msk [vmem:[%s7376_s29 + $0x8] sm:$0xff] %vm4996_vm3, %v4746_v23  ;;  %4535 = vmatmul.f32.gmra.mxu2 %v8696_v5  ;;  %4816 = vmatmul.f32.gmra.mxu3 %v8699_v55 }
 0x53d   : > { %v4179_v30 = vpop.f32.mrf.mxu1  ;;  %3890 = vmatmul.f32.gmra.mxu0 %v8697_v37  ;;  %v7395_v21 = vadd.f32 %v4173_v19, %v3812_v36  ;;  %v8702_v37 = vld [vmem:[#allocation25_spill] sm:$0xff] }
 0x53f   : > { %v4472_v8 = vpop.f32.mrf.mxu2  ;;  %v4753_v20 = vpop.f32.mrf.mxu3 }
 0x540   : > { %4274 = vmatmul.f32.gmra.mxu1 %v8701_v29  ;;  %v4473_v15 = vadd.f32 %v4472_v8, %v7185_v48 }
 0x542   : > { %v4750_v62 = vadd.f32 %v4749_v11, %v4473_v15  ;;  %v3816_v44 = vpop.f32.mrf.mxu0 }
 0x543   : > { %v3817_v40 = vadd.f32 %v3816_v44, %v6632_v50 }
 0x544   : > { %4999 = vst.msk [vmem:[%s7376_s29 + $0x10] sm:$0xff] %vm4996_vm3, %v4750_v62  ;;  %4539 = vmatmul.f32.gmra.mxu2 %v8699_v55  ;;  %4820 = vmatmul.f32.gmra.mxu3 %v8702_v37  ;;  %v8704_v55 = vld [vmem:[#allocation27_spill] sm:$0xff] }
 0x545   : > { %v4185_v5 = vpop.f32.mrf.mxu1  ;;  %3895 = vmatmul.f32.gmra.mxu0 %v8700_v56  ;;  %v7406_v19 = vadd.f32 %v4179_v30, %v3817_v40  ;;  %v8705_v56 = vand.u32 4294901760, %v6635_v39  ;;  %v8707_v40 = vand.u32 4294901760, %v6656_v60 }
 0x547   : > { %v4476_v48 = vpop.f32.mrf.mxu2  ;;  %v4757_v11 = vpop.f32.mrf.mxu3 }
 0x548   : > { %4280 = vmatmul.f32.gmra.mxu1 %v8703_v9  ;;  %v4477_v4 = vadd.f32 %v4476_v48, %v7196_v25 }
 0x54a   : > { %v4754_v23 = vadd.f32 %v4753_v20, %v4477_v4  ;;  %v3821_v50 = vpop.f32.mrf.mxu0 }
 0x54b   : > { %v3822_v58 = vadd.f32 %v3821_v50, %v6653_v45 }
 0x54c   : > { %5000 = vst.msk [vmem:[%s7376_s29 + $0x18] sm:$0xff] %vm4996_vm3, %v4754_v23  ;;  %4543 = vmatmul.f32.gmra.mxu2 %v8702_v37  ;;  %4824 = vmatmul.f32.gmra.mxu3 %v8704_v55  ;;  %v8709_v23 = vand.u32 4294901760, %v6677_v38 }
 0x54d   : > { %v4191_v36 = vpop.f32.mrf.mxu1  ;;  %3900 = vmatmul.f32.gmra.mxu0 %v6614_v10  ;;  %v7417_v30 = vadd.f32 %v4185_v5, %v3822_v58  ;;  %v8706_v10 = vld [vmem:[#allocation29_spill] sm:$0xff] }
 0x54f   : > { %v4480_v25 = vpop.f32.mrf.mxu2  ;;  %v4761_v29 = vpop.f32.mrf.mxu3 }
 0x550   : > { %4286 = vmatmul.f32.gmra.mxu1 %v8705_v56  ;;  %v4481_v8 = vadd.f32 %v4480_v25, %v7207_v49 }
 0x552   : > { %v4758_v20 = vadd.f32 %v4757_v11, %v4481_v8  ;;  %v3826_v45 = vpop.f32.mrf.mxu0 }
 0x553   : > { %v3827_v15 = vadd.f32 %v3826_v45, %v6674_v43 }
 0x554   : > { %5001 = vst.msk [vmem:[%s7376_s29 + $0x20] sm:$0xff] %vm4996_vm3, %v4758_v20  ;;  %4547 = vmatmul.f32.gmra.mxu2 %v8704_v55  ;;  %4828 = vmatmul.f32.gmra.mxu3 %v8706_v10 }
 0x555   : > { %v4197_v62 = vpop.f32.mrf.mxu1  ;;  %3905 = vmatmul.f32.gmra.mxu0 %v6635_v39  ;;  %v7428_v44 = vadd.f32 %v4191_v36, %v3827_v15  ;;  %v8708_v39 = vld [vmem:[#allocation31_spill] sm:$0xff] }
 0x557   : > { %v4484_v49 = vpop.f32.mrf.mxu2  ;;  %v4765_v5 = vpop.f32.mrf.mxu3 }
 0x558   : > { %4292 = vmatmul.f32.gmra.mxu1 %v8707_v40  ;;  %v4485_v37 = vadd.f32 %v4484_v49, %v7218_v41  ;;  %v8713_v40 = vand.u32 4294901760, %v6719_v51 }
 0x55a   : > { %v4762_v9 = vadd.f32 %v4761_v29, %v4485_v37  ;;  %v3831_v43 = vpop.f32.mrf.mxu0  ;;  %v8711_v29 = vand.u32 4294901760, %v6698_v2 }
 0x55b   : > { %v3832_v48 = vadd.f32 %v3831_v43, %v6695_v33 }
 0x55c   : > { %5002 = vst.msk [vmem:[%s7376_s29 + $0x28] sm:$0xff] %vm4996_vm3, %v4762_v9  ;;  %4551 = vmatmul.f32.gmra.mxu2 %v8706_v10  ;;  %4832 = vmatmul.f32.gmra.mxu3 %v8708_v39 }
 0x55d   : > { %v4203_v11 = vpop.f32.mrf.mxu1  ;;  %3910 = vmatmul.f32.gmra.mxu0 %v6656_v60  ;;  %v7439_v4 = vadd.f32 %v4197_v62, %v3832_v48  ;;  %v8710_v60 = vld [vmem:[#allocation33_spill] sm:$0xff] }
 0x55f   : > { %v4488_v41 = vpop.f32.mrf.mxu2  ;;  %v4769_v50 = vpop.f32.mrf.mxu3 }
 0x560   : > { %4298 = vmatmul.f32.gmra.mxu1 %v8709_v23  ;;  %v4489_v58 = vadd.f32 %v4488_v41, %v7234_v47 }
 0x562   : > { %v4766_v36 = vadd.f32 %v4765_v5, %v4489_v58  ;;  %v3836_v33 = vpop.f32.mrf.mxu0 }
 0x563   : > { %v3837_v55 = vadd.f32 %v3836_v33, %v6716_v27  ;;  %v8717_v33 = vand.u32 4294901760, %v6766_v59 }
 0x564   : > { %5003 = vst.msk [vmem:[%s7376_s29 + $0x30] sm:$0xff] %vm4996_vm3, %v4766_v36  ;;  %4555 = vmatmul.f32.gmra.mxu2 %v8708_v39  ;;  %4836 = vmatmul.f32.gmra.mxu3 %v8710_v60 }
 0x565   : > { %v4209_v56 = vpop.f32.mrf.mxu1  ;;  %3915 = vmatmul.f32.gmra.mxu0 %v6677_v38  ;;  %v7450_v25 = vadd.f32 %v4203_v11, %v3837_v55  ;;  %v8712_v38 = vld [vmem:[#allocation35_spill] sm:$0xff]  ;;  %v8715_v11 = vand.u32 4294901760, %v6745_v0 }
 0x567   : > { %v4492_v47 = vpop.f32.mrf.mxu2  ;;  %v4773_v8 = vpop.f32.mrf.mxu3 }
 0x568   : > { %4304 = vmatmul.f32.gmra.mxu1 %v8711_v29  ;;  %v4493_v20 = vadd.f32 %v4492_v47, %v7245_v22 }
 0x56a   : > { %v4770_v45 = vadd.f32 %v4769_v50, %v4493_v20  ;;  %v3841_v27 = vpop.f32.mrf.mxu0  ;;  %v8719_v20 = vand.u32 4294901760, %v6787_v42 }
 0x56b   : > { %v3842_v15 = vadd.f32 %v3841_v27, %v6742_v17 }
 0x56c   : > { %5004 = vst.msk [vmem:[%s7376_s29 + $0x38] sm:$0xff] %vm4996_vm3, %v4770_v45  ;;  %4559 = vmatmul.f32.gmra.mxu2 %v8710_v60  ;;  %4840 = vmatmul.f32.gmra.mxu3 %v8712_v38 }
 0x56d   : > { %v4215_v62 = vpop.f32.mrf.mxu1  ;;  %3920 = vmatmul.f32.gmra.mxu0 %v6698_v2  ;;  %v7461_v10 = vadd.f32 %v4209_v56, %v3842_v15  ;;  %v8714_v2 = vld [vmem:[#allocation37_spill] sm:$0xff] }
 0x56f   : > { %v4496_v22 = vpop.f32.mrf.mxu2  ;;  %v4777_v49 = vpop.f32.mrf.mxu3 }
 0x570   : > { %4310 = vmatmul.f32.gmra.mxu1 %v8713_v40  ;;  %v4497_v5 = vadd.f32 %v4496_v22, %v7256_v34  ;;  %v8721_v22 = vand.u32 4294901760, %v6809_v61 }
 0x572   : > { %v4774_v37 = vadd.f32 %v4773_v8, %v4497_v5  ;;  %v3846_v17 = vpop.f32.mrf.mxu0 }
 0x573   : > { %v3847_v9 = vadd.f32 %v3846_v17, %v6763_v35 }
 0x574   : > { %5005 = vst.msk [vmem:[%s7376_s29 + $0x40] sm:$0xff] %vm4996_vm3, %v4774_v37  ;;  %4563 = vmatmul.f32.gmra.mxu2 %v8712_v38  ;;  %4844 = vmatmul.f32.gmra.mxu3 %v8714_v2 }
 0x575   : > { %v4221_v43 = vpop.f32.mrf.mxu1  ;;  %3925 = vmatmul.f32.gmra.mxu0 %v6719_v51  ;;  %v7472_v48 = vadd.f32 %v4215_v62, %v3847_v9  ;;  %v8716_v51 = vld [vmem:[#allocation39_spill] sm:$0xff] }
 0x577   : > { %v4500_v34 = vpop.f32.mrf.mxu2  ;;  %v4781_v39 = vpop.f32.mrf.mxu3 }
 0x578   : > { %4316 = vmatmul.f32.gmra.mxu1 %v8715_v11  ;;  %v4501_v23 = vadd.f32 %v4500_v34, %v7267_v13 }
 0x57a   : > { %v4778_v41 = vadd.f32 %v4777_v49, %v4501_v23  ;;  %v3851_v35 = vpop.f32.mrf.mxu0 }
 0x57b   : > { %v3852_v50 = vadd.f32 %v3851_v35, %v6784_v16 }
 0x57c   : > { %5006 = vst.msk [vmem:[%s7376_s29 + $0x48] sm:$0xff] %vm4996_vm3, %v4778_v41  ;;  %4567 = vmatmul.f32.gmra.mxu2 %v8714_v2  ;;  %4848 = vmatmul.f32.gmra.mxu3 %v8716_v51  ;;  %v8723_v2 = vand.u32 4294901760, %v6831_v31 }
 0x57d   : > { %v4227_v58 = vpop.f32.mrf.mxu1  ;;  %3930 = vmatmul.f32.gmra.mxu0 %v6745_v0  ;;  %v7483_v36 = vadd.f32 %v4221_v43, %v3852_v50  ;;  %v8718_v0 = vld [vmem:[#allocation41_spill] sm:$0xff]  ;;  %v8725_v50 = vand.u32 4294901760, %v6853_v1 }
 0x57f   : > { %v4504_v13 = vpop.f32.mrf.mxu2  ;;  %v4785_v55 = vpop.f32.mrf.mxu3 }
 0x580   : > { %4322 = vmatmul.f32.gmra.mxu1 %v8717_v33  ;;  %v4505_v56 = vadd.f32 %v4504_v13, %v7278_v54 }
 0x582   : > { %v4782_v60 = vadd.f32 %v4781_v39, %v4505_v56  ;;  %v3856_v16 = vpop.f32.mrf.mxu0 }
 0x583   : > { %v3857_v29 = vadd.f32 %v3856_v16, %v6806_v26 }
 0x584   : > { %5007 = vst.msk [vmem:[%s7376_s29 + $0x50] sm:$0xff] %vm4996_vm3, %v4782_v60  ;;  %4571 = vmatmul.f32.gmra.mxu2 %v8716_v51  ;;  %4852 = vmatmul.f32.gmra.mxu3 %v8718_v0  ;;  %v8727_v60 = vand.u32 4294901760, %v6875_v18 }
 0x585   : > { %v4233_v47 = vpop.f32.mrf.mxu1  ;;  %3935 = vmatmul.f32.gmra.mxu0 %v6766_v59  ;;  %v7494_v8 = vadd.f32 %v4227_v58, %v3857_v29  ;;  %v8720_v59 = vld [vmem:[#allocation43_spill] sm:$0xff]  ;;  %v8728_v29 = vld [vmem:[#allocation14_spill] sm:$0xff] }
 0x587   : > { %v4508_v54 = vpop.f32.mrf.mxu2  ;;  %v4789_v45 = vpop.f32.mrf.mxu3 }
 0x588   : > { %4328 = vmatmul.f32.gmra.mxu1 %v8719_v20  ;;  %v4509_v27 = vadd.f32 %v4508_v54, %v7289_v7  ;;  %v8729_v20 = vld [vmem:[#allocation75_spill] sm:$0xff] }
 0x58a   : > { %v4786_v15 = vadd.f32 %v4785_v55, %v4509_v27  ;;  %v3861_v26 = vpop.f32.mrf.mxu0 }
 0x58b   : > { %v3862_v62 = vadd.f32 %v3861_v26, %v6828_v3 }
 0x58c   : > { %5008 = vst.msk [vmem:[%s7376_s29 + $0x58] sm:$0xff] %vm4996_vm3, %v4786_v15  ;;  %4575 = vmatmul.f32.gmra.mxu2 %v8718_v0  ;;  %4856 = vmatmul.f32.gmra.mxu3 %v8720_v59  ;;  %v8731_v15 = vld [vmem:[#allocation74_spill] sm:$0xff] }
 0x58d   : > { %v4239_v38 = vpop.f32.mrf.mxu1  ;;  %3940 = vmatmul.f32.gmra.mxu0 %v6787_v42  ;;  %v7505_v40 = vadd.f32 %v4233_v47, %v3862_v62  ;;  %v8722_v42 = vld [vmem:[#allocation44_spill] sm:$0xff]  ;;  %v8732_v26 = vand.u32 4294901760, %v8731_v15 }
 0x58f   : > { %v4512_v7 = vpop.f32.mrf.mxu2  ;;  %v4793_v49 = vpop.f32.mrf.mxu3 }
 0x590   : > { %4334 = vmatmul.f32.gmra.mxu1 %v8721_v22  ;;  %v4513_v5 = vadd.f32 %v4512_v7, %v7300_v57 }
 0x592   : > { %v4790_v37 = vadd.f32 %v4789_v45, %v4513_v5  ;;  %v3866_v3 = vpop.f32.mrf.mxu0 }
 0x593   : > { %v3867_v17 = vadd.f32 %v3866_v3, %v6850_v24 }
 0x594   : > { %5009 = vst.msk [vmem:[%s7376_s29 + $0x60] sm:$0xff] %vm4996_vm3, %v4790_v37  ;;  %4579 = vmatmul.f32.gmra.mxu2 %v8720_v59  ;;  %4860 = vmatmul.f32.gmra.mxu3 %v8722_v42  ;;  %v8734_v37 = vld [vmem:[#allocation52_spill] sm:$0xff] }
 0x595   : > { %v4245_v9 = vpop.f32.mrf.mxu1  ;;  %3945 = vmatmul.f32.gmra.mxu0 %v6809_v61  ;;  %v7516_v43 = vadd.f32 %v4239_v38, %v3867_v17  ;;  %v8724_v61 = vld [vmem:[#allocation47_spill] sm:$0xff]  ;;  %v8735_v17 = vld [vmem:[#allocation105_spill] sm:$0xff] }
 0x597   : > { %v4516_v57 = vpop.f32.mrf.mxu2  ;;  %v4797_v11 = vpop.f32.mrf.mxu3 }
 0x598   : > { %4340 = vmatmul.f32.gmra.mxu1 %v8723_v2  ;;  %v4517_v34 = vadd.f32 %v4516_v57, %v7311_v53 }
 0x59a   : > { %v4794_v39 = vadd.f32 %v4793_v49, %v4517_v34  ;;  %v3871_v24 = vpop.f32.mrf.mxu0  ;;  %v8733_v49 = vld [vmem:[#allocation104_spill] sm:$0xff]  ;;  %v8737_v34 = vld [vmem:[#allocation78_spill] sm:$0xff] }
 0x59b   : > { %v3872_v23 = vadd.f32 %v3871_v24, %v6872_v46  ;;  %v8738_v24 = vld [vmem:[#allocation54_spill] sm:$0xff] }
 0x59c   : > { %5010 = vst.msk [vmem:[%s7376_s29 + $0x68] sm:$0xff] %vm4996_vm3, %v4794_v39  ;;  %4583 = vmatmul.f32.gmra.mxu2 %v8722_v42  ;;  %4864 = vmatmul.f32.gmra.mxu3 %v8724_v61 }
 0x59d   : > { %v4251_v41 = vpop.f32.mrf.mxu1  ;;  %3950 = vmatmul.f32.gmra.mxu0 %v6831_v31  ;;  %v7527_v35 = vadd.f32 %v4245_v9, %v3872_v23  ;;  %v8726_v31 = vld [vmem:[#allocation49_spill] sm:$0xff]  ;;  %v8736_v9 = vand.u32 4294901760, %v8735_v17 }
 0x59f   : > { %v4520_v53 = vpop.f32.mrf.mxu2  ;;  %v4801_v58 = vpop.f32.mrf.mxu3 }
 0x5a0   : > { %4346 = vmatmul.f32.gmra.mxu1 %v8725_v50  ;;  %v4521_v51 = vadd.f32 %v4520_v53, %v7322_v28 }
 0x5a2   : > { %v4798_v33 = vadd.f32 %v4797_v11, %v4521_v51  ;;  %v3876_v46 = vpop.f32.mrf.mxu0 }
 0x5a3   : > { %v3877_v13 = vadd.f32 %v3876_v46, %v6894_v32  ;;  %v8741_v46 = vld [vmem:[#allocation80_spill] sm:$0xff] }
 0x5a4   : > { %5011 = vst.msk [vmem:[%s7376_s29 + $0x70] sm:$0xff] %vm4996_vm3, %v4798_v33  ;;  %4587 = vmatmul.f32.gmra.mxu2 %v8724_v61  ;;  %4868 = vmatmul.f32.gmra.mxu3 %v8726_v31 }
 0x5a5   : > { %v4257_v55 = vpop.f32.mrf.mxu1  ;;  %3955 = vmatmul.f32.gmra.mxu0 %v6853_v1  ;;  %v7538_v56 = vadd.f32 %v4251_v41, %v3877_v13  ;;  %v8730_v1 = vld [vmem:[#allocation50_spill] sm:$0xff]  ;;  %v8739_v41 = vld [vmem:[#allocation76_spill] sm:$0xff] }
 0x5a6   : > { %v8740_v61 = vand.u32 4294901760, %v8739_v41 }
 0x5a7   : > { %v4524_v28 = vpop.f32.mrf.mxu2  ;;  %v4805_v16 = vpop.f32.mrf.mxu3 }
 0x5a8   : > { %4352 = vmatmul.f32.gmra.mxu1 %v8727_v60  ;;  %v4525_v47 = vadd.f32 %v4524_v28, %v8728_v29  ;;  %v8743_v60 = vld [vmem:[#allocation81_spill] sm:$0xff] }
 0x5a9   : > { %v8744_v28 = vand.u32 4294901760, %v8743_v60 }
 0x5aa   : > { %v4802_v0 = vadd.f32 %v4801_v58, %v4525_v47  ;;  %v3881_v32 = vpop.f32.mrf.mxu0 }
 0x5ab   : > { %v3882_v54 = vadd.f32 %v3881_v32, %v8729_v20  ;;  %v8745_v20 = vld [vmem:[#allocation82_spill] sm:$0xff] }
 0x5ac   : > { %5012 = vst.msk [vmem:[%s7376_s29 + $0x78] sm:$0xff] %vm4996_vm3, %v4802_v0  ;;  %4591 = vmatmul.f32.gmra.mxu2 %v8726_v31  ;;  %4872 = vmatmul.f32.gmra.mxu3 %v8730_v1 }
 0x5ad   : > { %v4263_v45 = vpop.f32.mrf.mxu1  ;;  %3960 = vmatmul.f32.gmra.mxu0 %v6875_v18  ;;  %v7549_v27 = vadd.f32 %v4257_v55, %v3882_v54  ;;  %v8742_v55 = vld [vmem:[#allocation56_spill] sm:$0xff] }
 0x5af   : > { %v4528_v62 = vpop.f32.mrf.mxu2  ;;  %v4809_v38 = vpop.f32.mrf.mxu3 }
 0x5b0   : > { %4358 = vmatmul.f32.gmra.mxu1 %v8732_v26  ;;  %v4529_v59 = vadd.f32 %v4528_v62, %v7344_v14 }
 0x5b2   : > { %v4806_v22 = vadd.f32 %v4805_v16, %v4529_v59  ;;  %v3886_v7 = vpop.f32.mrf.mxu0 }
 0x5b3   : > { %v3887_v5 = vadd.f32 %v3886_v7, %v8733_v49  ;;  %v8749_v7 = vld [vmem:[#allocation117_spill] sm:$0xff] }
 0x5b4   : > { %5013 = vst.msk [vmem:[%s7376_s29 + $0x80] sm:$0xff] %vm4996_vm3, %v4806_v22  ;;  %4595 = vmatmul.f32.gmra.mxu2 %v8730_v1  ;;  %4876 = vmatmul.f32.gmra.mxu3 %v8734_v37 }
 0x5b5   : > { %3965 = vmatmul.f32.gmra.mxu0 %v8731_v15  ;;  %v7560_v18 = vadd.f32 %v4263_v45, %v3887_v5  ;;  %v4269_v3 = vpop.f32.mrf.mxu1  ;;  %v8746_v45 = vld [vmem:[#allocation58_spill] sm:$0xff]  ;;  %v8747_v15 = vld [vmem:[#allocation83_spill] sm:$0xff] }
 0x5b6   : > { %v8748_v26 = vand.u32 4294901760, %v8747_v15 }
 0x5b7   : > { %v4532_v14 = vpop.f32.mrf.mxu2  ;;  %v4813_v42 = vpop.f32.mrf.mxu3 }
 0x5b8   : > { %4364 = vmatmul.f32.gmra.mxu1 %v8736_v9  ;;  %v4533_v2 = vadd.f32 %v4532_v14, %v7355_v63 }
 0x5ba   : > { %v4810_v57 = vadd.f32 %v4809_v38, %v4533_v2  ;;  %v3891_v11 = vpop.f32.mrf.mxu0 }
 0x5bb   : > { %v3892_v39 = vadd.f32 %v3891_v11, %v8737_v34  ;;  %v8754_v11 = vld [vmem:[#allocation112_spill] sm:$0xff] }
 0x5bc   : > { %5014 = vst.msk [vmem:[%s7376_s29 + $0x88] sm:$0xff] %vm4996_vm3, %v4810_v57  ;;  %4599 = vmatmul.f32.gmra.mxu2 %v8734_v37  ;;  %4880 = vmatmul.f32.gmra.mxu3 %v8738_v24  ;;  %v8750_v37 = vld [vmem:[#allocation159_spill] sm:$0xff]  ;;  %v8753_v57 = vld [vmem:[#allocation60_spill] sm:$0xff]  ;;  %v8755_v34 = vand.u32 4294901760, %v8754_v11 }
 0x5bd   : > { %3970 = vmatmul.f32.gmra.mxu0 %v8735_v17  ;;  %v7571_v23 = vadd.f32 %v4269_v3, %v3892_v39  ;;  %v4275_v53 = vpop.f32.mrf.mxu1  ;;  %v8751_v17 = vld [vmem:[#allocation114_spill] sm:$0xff] }
 0x5be   : > { %v8752_v9 = vand.u32 4294901760, %v8751_v17 }
 0x5bf   : > { %v4536_v50 = vpop.f32.mrf.mxu2  ;;  %v4817_v63 = vpop.f32.mrf.mxu3 }
 0x5c0   : > { %4370 = vmatmul.f32.gmra.mxu1 %v8740_v61  ;;  %v4537_v58 = vadd.f32 %v4536_v50, %v7366_v6  ;;  %v8757_v50 = vld [vmem:[#allocation87_spill] sm:$0xff] }
 0x5c2   : > { %v4814_v51 = vadd.f32 %v4813_v42, %v4537_v58  ;;  %v3896_v33 = vpop.f32.mrf.mxu0 }
 0x5c3   : > { %v3897_v13 = vadd.f32 %v3896_v33, %v8741_v46  ;;  %v8760_v46 = vld [vmem:[#allocation86_spill] sm:$0xff] }
 0x5c4   : > { %5015 = vst.msk [vmem:[%s7376_s29 + $0x90] sm:$0xff] %vm4996_vm3, %v4814_v51  ;;  %4603 = vmatmul.f32.gmra.mxu2 %v8738_v24  ;;  %4884 = vmatmul.f32.gmra.mxu3 %v8742_v55 }
 0x5c5   : > { %3975 = vmatmul.f32.gmra.mxu0 %v8739_v41  ;;  %v7582_v31 = vadd.f32 %v4275_v53, %v3897_v13  ;;  %v4281_v47 = vpop.f32.mrf.mxu1  ;;  %v8761_v13 = vand.u32 4294901760, %v8760_v46 }
 0x5c7   : > { %v4540_v16 = vpop.f32.mrf.mxu2  ;;  %v4821_v6 = vpop.f32.mrf.mxu3 }
 0x5c8   : > { %4376 = vmatmul.f32.gmra.mxu1 %v8744_v28  ;;  %v4541_v29 = vadd.f32 %v4540_v16, %v7384_v52 }
 0x5ca   : > { %v4818_v0 = vadd.f32 %v4817_v63, %v4541_v29  ;;  %v3901_v32 = vpop.f32.mrf.mxu0  ;;  %v8758_v63 = vand.u32 4294901760, %v8757_v50 }
 0x5cb   : > { %v3902_v54 = vadd.f32 %v3901_v32, %v8745_v20 }
 0x5cc   : > { %5016 = vst.msk [vmem:[%s7376_s29 + $0x98] sm:$0xff] %vm4996_vm3, %v4818_v0  ;;  %4607 = vmatmul.f32.gmra.mxu2 %v8742_v55  ;;  %4888 = vmatmul.f32.gmra.mxu3 %v8746_v45 }
 0x5cd   : > { %3980 = vmatmul.f32.gmra.mxu0 %v8743_v60  ;;  %v7593_v1 = vadd.f32 %v4281_v47, %v3902_v54  ;;  %v4287_v5 = vpop.f32.mrf.mxu1  ;;  %v8766_v54 = vld [vmem:[#allocation2_spill] sm:$0xff] }
 0x5cf   : > { %v4544_v52 = vpop.f32.mrf.mxu2  ;;  %v4825_v62 = vpop.f32.mrf.mxu3 }
 0x5d0   : > { %4382 = vmatmul.f32.gmra.mxu1 %v8748_v26  ;;  %v4545_v38 = vadd.f32 %v4544_v52, %v7395_v21 }
 0x5d2   : > { %v4822_v59 = vadd.f32 %v4821_v6, %v4545_v38  ;;  %v3906_v22 = vpop.f32.mrf.mxu0  ;;  %v8763_v6 = vld [vmem:[#allocation4_spill] sm:$0xff]  ;;  %v8769_v38 = vld [vmem:[#allocation123_spill] sm:$0xff] }
 0x5d3   : > { %v3907_v49 = vadd.f32 %v3906_v22, %v8749_v7  ;;  %v8764_v29 = vand.u32 4294901760, %v8763_v6 }
 0x5d4   : > { %5017 = vst.msk [vmem:[%s7376_s29 + $0xa0] sm:$0xff] %vm4996_vm3, %v4822_v59  ;;  %4611 = vmatmul.f32.gmra.mxu2 %v8746_v45  ;;  %4892 = vmatmul.f32.gmra.mxu3 %v8750_v37  ;;  %v8767_v45 = vand.u32 4294901760, %v8766_v54  ;;  %v8770_v59 = vand.u32 4294901760, %v8769_v38 }
 0x5d5   : > { %3985 = vmatmul.f32.gmra.mxu0 %v8747_v15  ;;  %v7604_v3 = vadd.f32 %v4287_v5, %v3907_v49 }
 0x5d7   : > { %v4548_v21 = vpop.f32.mrf.mxu2  ;;  %v4829_v14 = vpop.f32.mrf.mxu3 }
 0x5d8   : > { %4388 = vmatmul.f32.gmra.mxu1 %v8752_v9  ;;  %v4549_v42 = vadd.f32 %v4548_v21, %v7406_v19  ;;  %v8756_v19 = vld [vmem:[#allocation63_spill] sm:$0xff] }
 0x5da   : > { %v4826_v2 = vadd.f32 %v4825_v62, %v4549_v42 }
 0x5dc   : > { %5018 = vst.msk [vmem:[%s7376_s29 + $0xa8] sm:$0xff] %vm4996_vm3, %v4826_v2  ;;  %4615 = vmatmul.f32.gmra.mxu2 %v8750_v37  ;;  %4896 = vmatmul.f32.gmra.mxu3 %v8753_v57  ;;  %v8772_v37 = vld [vmem:[#allocation93_spill] sm:$0xff] }
 0x5dd   : > { %3990 = vmatmul.f32.gmra.mxu0 %v8751_v17  ;;  %v8773_v17 = vand.u32 4294901760, %v8772_v37 }
 0x5df   : > { %v4552_v39 = vpop.f32.mrf.mxu2  ;;  %v4833_v24 = vpop.f32.mrf.mxu3 }
 0x5e0   : > { %4394 = vmatmul.f32.gmra.mxu1 %v8755_v34  ;;  %v4553_v41 = vadd.f32 %v4552_v39, %v7417_v30  ;;  %v8759_v30 = vld [vmem:[#allocation67_spill] sm:$0xff] }
 0x5e2   : > { %v4830_v61 = vadd.f32 %v4829_v14, %v4553_v41 }
 0x5e4   : > { %5019 = vst.msk [vmem:[%s7376_s29 + $0xb0] sm:$0xff] %vm4996_vm3, %v4830_v61  ;;  %4619 = vmatmul.f32.gmra.mxu2 %v8753_v57  ;;  %4900 = vmatmul.f32.gmra.mxu3 %v8756_v19 }
 0x5e5   : > { %3995 = vmatmul.f32.gmra.mxu0 %v8754_v11 }
 0x5e7   : > { %v4556_v53 = vpop.f32.mrf.mxu2  ;;  %v4837_v58 = vpop.f32.mrf.mxu3 }
 0x5e8   : > { %4400 = vmatmul.f32.gmra.mxu1 %v8758_v63  ;;  %v4557_v51 = vadd.f32 %v4556_v53, %v7428_v44  ;;  %v8762_v44 = vld [vmem:[#allocation61_spill] sm:$0xff] }
 0x5ea   : > { %v4834_v33 = vadd.f32 %v4833_v24, %v4557_v51 }
 0x5ec   : > { %5020 = vst.msk [vmem:[%s7376_s29 + $0xb8] sm:$0xff] %vm4996_vm3, %v4834_v33  ;;  %4623 = vmatmul.f32.gmra.mxu2 %v8756_v19  ;;  %4904 = vmatmul.f32.gmra.mxu3 %v8759_v30  ;;  %v8776_v19 = vld [vmem:[#allocation71_spill] sm:$0xff] }
 0x5ed   : > { %4000 = vmatmul.f32.gmra.mxu0 %v8757_v50 }
 0x5ef   : > { %v4560_v55 = vpop.f32.mrf.mxu2  ;;  %v4841_v60 = vpop.f32.mrf.mxu3 }
 0x5f0   : > { %4406 = vmatmul.f32.gmra.mxu1 %v8761_v13  ;;  %v4561_v28 = vadd.f32 %v4560_v55, %v7439_v4  ;;  %v8765_v4 = vld [vmem:[#allocation65_spill] sm:$0xff]  ;;  %v3911_v55 = vpop.f32.mrf.mxu0 }
 0x5f2   : > { %v4838_v16 = vadd.f32 %v4837_v58, %v4561_v28  ;;  %v8777_v58 = vld [vmem:[#allocation66_spill] sm:$0xff] }
 0x5f4   : > { %5021 = vst.msk [vmem:[%s7376_s29 + $0xc0] sm:$0xff] %vm4996_vm3, %v4838_v16  ;;  %4627 = vmatmul.f32.gmra.mxu2 %v8759_v30  ;;  %4908 = vmatmul.f32.gmra.mxu3 %v8762_v44  ;;  %v8779_v16 = vld [vmem:[#allocation69_spill] sm:$0xff] }
 0x5f5   : > { %4005 = vmatmul.f32.gmra.mxu0 %v8760_v46  ;;  %v8778_v46 = vld [vmem:[#allocation73_spill] sm:$0xff] }
 0x5f7   : > { %v4564_v47 = vpop.f32.mrf.mxu2  ;;  %v4845_v0 = vpop.f32.mrf.mxu3 }
 0x5f8   : > { %4412 = vmatmul.f32.gmra.mxu1 %v8764_v29  ;;  %v4565_v32 = vadd.f32 %v4564_v47, %v7450_v25  ;;  %v8768_v25 = vld [vmem:[#allocation70_spill] sm:$0xff]  ;;  %v3916_v47 = vpop.f32.mrf.mxu0 }
 0x5fa   : > { %v4842_v20 = vadd.f32 %v4841_v60, %v4565_v32 }
 0x5fc   : > { %5022 = vst.msk [vmem:[%s7376_s29 + $0xc8] sm:$0xff] %vm4996_vm3, %v4842_v20  ;;  %4631 = vmatmul.f32.gmra.mxu2 %v8762_v44  ;;  %4912 = vmatmul.f32.gmra.mxu3 %v8765_v4 }
 0x5fd   : > { %4010 = vmatmul.f32.gmra.mxu0 %v8763_v6 }
 0x5ff   : > { %v4568_v15 = vpop.f32.mrf.mxu2  ;;  %v4849_v26 = vpop.f32.mrf.mxu3 }
 0x600   : > { %4418 = vmatmul.f32.gmra.mxu1 %v8767_v45  ;;  %v4569_v52 = vadd.f32 %v4568_v15, %v7461_v10  ;;  %v8771_v10 = vld [vmem:[#allocation62_spill] sm:$0xff]  ;;  %v3921_v15 = vpop.f32.mrf.mxu0 }
 0x602   : > { %v4846_v62 = vadd.f32 %v4845_v0, %v4569_v52 }
 0x604   : > { %5023 = vst.msk [vmem:[%s7376_s29 + $0xd0] sm:$0xff] %vm4996_vm3, %v4846_v62  ;;  %4635 = vmatmul.f32.gmra.mxu2 %v8765_v4  ;;  %4916 = vmatmul.f32.gmra.mxu3 %v8768_v25 }
 0x605   : > { %4015 = vmatmul.f32.gmra.mxu0 %v8766_v54 }
 0x607   : > { %v4572_v22 = vpop.f32.mrf.mxu2  ;;  %v4853_v7 = vpop.f32.mrf.mxu3 }
 0x608   : > { %4424 = vmatmul.f32.gmra.mxu1 %v8770_v59  ;;  %v4573_v49 = vadd.f32 %v4572_v22, %v7472_v48  ;;  %v8774_v48 = vld [vmem:[#allocation68_spill] sm:$0xff]  ;;  %v3926_v59 = vpop.f32.mrf.mxu0 }
 0x60a   : > { %v4850_v5 = vadd.f32 %v4849_v26, %v4573_v49 }
 0x60c   : > { %5024 = vst.msk [vmem:[%s7376_s29 + $0xd8] sm:$0xff] %vm4996_vm3, %v4850_v5  ;;  %4639 = vmatmul.f32.gmra.mxu2 %v8768_v25  ;;  %4920 = vmatmul.f32.gmra.mxu3 %v8771_v10 }
 0x60d   : > { %4020 = vmatmul.f32.gmra.mxu0 %v8769_v38 }
 0x60f   : > { %v4576_v9 = vpop.f32.mrf.mxu2  ;;  %v4857_v21 = vpop.f32.mrf.mxu3 }
 0x610   : > { %4430 = vmatmul.f32.gmra.mxu1 %v8773_v17  ;;  %v4577_v14 = vadd.f32 %v4576_v9, %v7483_v36  ;;  %v8775_v36 = vld [vmem:[#allocation64_spill] sm:$0xff]  ;;  %v3931_v9 = vpop.f32.mrf.mxu0 }
 0x612   : > { %v4854_v42 = vadd.f32 %v4853_v7, %v4577_v14 }
 0x614   : > { %5025 = vst.msk [vmem:[%s7376_s29 + $0xe0] sm:$0xff] %vm4996_vm3, %v4854_v42  ;;  %4643 = vmatmul.f32.gmra.mxu2 %v8771_v10  ;;  %4924 = vmatmul.f32.gmra.mxu3 %v8774_v48 }
 0x615   : > { %4025 = vmatmul.f32.gmra.mxu0 %v8772_v37 }
 0x617   : > { %v4580_v2 = vpop.f32.mrf.mxu2  ;;  %v4861_v57 = vpop.f32.mrf.mxu3 }
 0x618   : > { %v4581_v11 = vadd.f32 %v4580_v2, %v7494_v8 }
 0x61a   : > { %v4858_v34 = vadd.f32 %v4857_v21, %v4581_v11  ;;  %v8785_v11 = vld [vmem:[#allocation118_spill] sm:$0xff] }
 0x61c   : > { %5026 = vst.msk [vmem:[%s7376_s29 + $0xe8] sm:$0xff] %vm4996_vm3, %v4858_v34  ;;  %4647 = vmatmul.f32.gmra.mxu2 %v8774_v48  ;;  %4928 = vmatmul.f32.gmra.mxu3 %v8775_v36  ;;  %v3912_v34 = vadd.f32 %v3911_v55, %v8785_v11 }
 0x61f   : > { %v4584_v39 = vpop.f32.mrf.mxu2  ;;  %v4865_v24 = vpop.f32.mrf.mxu3 }
 0x620   : > { %v4585_v41 = vadd.f32 %v4584_v39, %v7505_v40 }
 0x622   : > { %v4862_v61 = vadd.f32 %v4861_v57, %v4585_v41 }
 0x624   : > { %5027 = vst.msk [vmem:[%s7376_s29 + $0xf0] sm:$0xff] %vm4996_vm3, %v4862_v61  ;;  %4651 = vmatmul.f32.gmra.mxu2 %v8775_v36  ;;  %4932 = vmatmul.f32.gmra.mxu3 %v8776_v19  ;;  %v3936_v36 = vpop.f32.mrf.mxu0 }
 0x627   : > { %v4588_v8 = vpop.f32.mrf.mxu2  ;;  %v4869_v50 = vpop.f32.mrf.mxu3 }
 0x628   : > { %v4589_v63 = vadd.f32 %v4588_v8, %v7516_v43 }
 0x62a   : > { %v4866_v53 = vadd.f32 %v4865_v24, %v4589_v63 }
 0x62c   : > { %5028 = vst.msk [vmem:[%s7376_s29 + $0xf8] sm:$0xff] %vm4996_vm3, %v4866_v53  ;;  %4655 = vmatmul.f32.gmra.mxu2 %v8776_v19  ;;  %4936 = vmatmul.f32.gmra.mxu3 %v8777_v58 }
 0x62f   : > { %v4592_v40 = vpop.f32.mrf.mxu2  ;;  %v4873_v51 = vpop.f32.mrf.mxu3 }
 0x630   : > { %v4593_v33 = vadd.f32 %v4592_v40, %v7527_v35  ;;  %v4293_v35 = vpop.f32.mrf.mxu1 }
 0x631   : > { %v4294_v24 = vadd.f32 %v4293_v35, %v3912_v34 }
 0x632   : > { %v4870_v30 = vadd.f32 %v4869_v50, %v4593_v33  ;;  %v8787_v50 = vld [vmem:[#allocation115_spill] sm:$0xff] }
 0x633   : > { %v3917_v63 = vadd.f32 %v3916_v47, %v8787_v50 }
 0x634   : > { %5029 = vst.msk [vmem:[%s7376_s29 + $0x100] sm:$0xff] %vm4996_vm3, %v4870_v30  ;;  %4659 = vmatmul.f32.gmra.mxu2 %v8777_v58  ;;  %4940 = vmatmul.f32.gmra.mxu3 %v8778_v46  ;;  %v8788_v58 = vld [vmem:[#allocation84_spill] sm:$0xff] }
 0x637   : > { %v4596_v43 = vpop.f32.mrf.mxu2  ;;  %v4877_v13 = vpop.f32.mrf.mxu3 }
 0x638   : > { %v4597_v60 = vadd.f32 %v4596_v43, %v7538_v56  ;;  %v8780_v56 = vld [vmem:[#allocation72_spill] sm:$0xff]  ;;  %v4299_v4 = vpop.f32.mrf.mxu1 }
 0x639   : > { %v4300_v40 = vadd.f32 %v4299_v4, %v3917_v63 }
 0x63a   : > { %v4874_v28 = vadd.f32 %v4873_v51, %v4597_v60  ;;  %v8790_v60 = vld [vmem:[#allocation121_spill] sm:$0xff] }
 0x63c   : > { %5030 = vst.msk [vmem:[%s7376_s29 + $0x108] sm:$0xff] %vm4996_vm3, %v4874_v28  ;;  %4663 = vmatmul.f32.gmra.mxu2 %v8778_v46  ;;  %4944 = vmatmul.f32.gmra.mxu3 %v8779_v16  ;;  %v8789_v46 = vld [vmem:[#allocation89_spill] sm:$0xff] }
 0x63d   : > { %v3922_v43 = vadd.f32 %v3921_v15, %v8789_v46 }
 0x63f   : > { %v4600_v44 = vpop.f32.mrf.mxu2  ;;  %v4881_v6 = vpop.f32.mrf.mxu3 }
 0x640   : > { %v4601_v29 = vadd.f32 %v4600_v44, %v7549_v27  ;;  %v8781_v27 = vld [vmem:[#allocation77_spill] sm:$0xff]  ;;  %v4305_v25 = vpop.f32.mrf.mxu1 }
 0x642   : > { %v4878_v0 = vadd.f32 %v4877_v13, %v4601_v29  ;;  %v8791_v29 = vld [vmem:[#allocation88_spill] sm:$0xff] }
 0x643   : > { %v3927_v47 = vadd.f32 %v3926_v59, %v8791_v29 }
 0x644   : > { %5031 = vst.msk [vmem:[%s7376_s29 + $0x110] sm:$0xff] %vm4996_vm3, %v4878_v0  ;;  %4667 = vmatmul.f32.gmra.mxu2 %v8779_v16  ;;  %4948 = vmatmul.f32.gmra.mxu3 %v8780_v56  ;;  %v4306_v16 = vadd.f32 %v4305_v25, %v3922_v43 }
 0x647   : > { %v4604_v32 = vpop.f32.mrf.mxu2  ;;  %v4885_v20 = vpop.f32.mrf.mxu3 }
 0x648   : > { %v4605_v54 = vadd.f32 %v4604_v32, %v7560_v18  ;;  %v8782_v18 = vld [vmem:[#allocation79_spill] sm:$0xff]  ;;  %v4311_v10 = vpop.f32.mrf.mxu1  ;;  %v8792_v32 = vld [vmem:[#allocation122_spill] sm:$0xff] }
 0x64a   : > { %v4882_v45 = vadd.f32 %v4881_v6, %v4605_v54 }
 0x64c   : > { %5032 = vst.msk [vmem:[%s7376_s29 + $0x118] sm:$0xff] %vm4996_vm3, %v4882_v45  ;;  %4671 = vmatmul.f32.gmra.mxu2 %v8780_v56  ;;  %4952 = vmatmul.f32.gmra.mxu3 %v8781_v27 }
 0x64f   : > { %v4608_v26 = vpop.f32.mrf.mxu2  ;;  %v4889_v52 = vpop.f32.mrf.mxu3 }
 0x650   : > { %v4609_v62 = vadd.f32 %v4608_v26, %v7571_v23  ;;  %v8783_v23 = vld [vmem:[#allocation107_spill] sm:$0xff]  ;;  %v4317_v42 = vpop.f32.mrf.mxu1 }
 0x652   : > { %v4886_v38 = vadd.f32 %v4885_v20, %v4609_v62  ;;  %v4312_v20 = vadd.f32 %v4311_v10, %v3927_v47  ;;  %v8794_v62 = vld [vmem:[#allocation119_spill] sm:$0xff] }
 0x653   : > { %v8802_v47 = vld [vmem:[#allocation95_spill] sm:$0xff] }
 0x654   : > { %5033 = vst.msk [vmem:[%s7376_s29 + $0x120] sm:$0xff] %vm4996_vm3, %v4886_v38  ;;  %4675 = vmatmul.f32.gmra.mxu2 %v8781_v27  ;;  %4956 = vmatmul.f32.gmra.mxu3 %v8782_v18  ;;  %v8793_v27 = vld [vmem:[#allocation6_spill] sm:$0xff] }
 0x655   : > { %v3932_v26 = vadd.f32 %v3931_v9, %v8793_v27  ;;  %v8803_v27 = vld [vmem:[#allocation10_spill] sm:$0xff] }
 0x657   : > { %v4612_v22 = vpop.f32.mrf.mxu2  ;;  %v4893_v7 = vpop.f32.mrf.mxu3  ;;  %v4318_v38 = vadd.f32 %v4317_v42, %v3932_v26 }
 0x658   : > { %v4613_v49 = vadd.f32 %v4612_v22, %v7582_v31  ;;  %v8784_v31 = vld [vmem:[#allocation109_spill] sm:$0xff]  ;;  %v4323_v19 = vpop.f32.mrf.mxu1 }
 0x65a   : > { %v4890_v5 = vadd.f32 %v4889_v52, %v4613_v49 }
 0x65c   : > { %5034 = vst.msk [vmem:[%s7376_s29 + $0x128] sm:$0xff] %vm4996_vm3, %v4890_v5  ;;  %4679 = vmatmul.f32.gmra.mxu2 %v8782_v18  ;;  %4960 = vmatmul.f32.gmra.mxu3 %v8783_v23 }
 0x65f   : > { %v4616_v37 = vpop.f32.mrf.mxu2  ;;  %v4897_v17 = vpop.f32.mrf.mxu3 }
 0x660   : > { %v4617_v21 = vadd.f32 %v4616_v37, %v7593_v1  ;;  %v8786_v1 = vld [vmem:[#allocation85_spill] sm:$0xff]  ;;  %v4329_v13 = vpop.f32.mrf.mxu1 }
 0x662   : > { %v4894_v14 = vadd.f32 %v4893_v7, %v4617_v21  ;;  %v8795_v7 = vld [vmem:[#allocation127_spill] sm:$0xff] }
 0x663   : > { %v3937_v49 = vadd.f32 %v3936_v36, %v8795_v7 }
 0x664   : > { %5035 = vst.msk [vmem:[%s7376_s29 + $0x130] sm:$0xff] %vm4996_vm3, %v4894_v14  ;;  %4683 = vmatmul.f32.gmra.mxu2 %v8783_v23  ;;  %4964 = vmatmul.f32.gmra.mxu3 %v8784_v31  ;;  %v8796_v23 = vld [vmem:[#allocation91_spill] sm:$0xff] }
 0x665   : > { %v4324_v37 = vadd.f32 %v4323_v19, %v3937_v49 }
 0x667   : > { %v4620_v48 = vpop.f32.mrf.mxu2  ;;  %v4901_v2 = vpop.f32.mrf.mxu3 }
 0x668   : > { %v4621_v57 = vadd.f32 %v4620_v48, %v7604_v3  ;;  %v3941_v3 = vpop.f32.mrf.mxu0  ;;  %v4335_v56 = vpop.f32.mrf.mxu1 }
 0x66a   : > { %v4898_v39 = vadd.f32 %v4897_v17, %v4621_v57  ;;  %v8798_v57 = vld [vmem:[#allocation90_spill] sm:$0xff] }
 0x66c   : > { %5036 = vst.msk [vmem:[%s7376_s29 + $0x138] sm:$0xff] %vm4996_vm3, %v4898_v39  ;;  %4687 = vmatmul.f32.gmra.mxu2 %v8784_v31  ;;  %4968 = vmatmul.f32.gmra.mxu3 %v8786_v1  ;;  %v8797_v31 = vld [vmem:[#allocation8_spill] sm:$0xff] }
 0x66d   : > { %v3942_v42 = vadd.f32 %v3941_v3, %v8797_v31  ;;  %v8800_v3 = vld [vmem:[#allocation92_spill] sm:$0xff] }
 0x66f   : > { %v4624_v41 = vpop.f32.mrf.mxu2  ;;  %v4905_v61 = vpop.f32.mrf.mxu3  ;;  %v4330_v11 = vadd.f32 %v4329_v13, %v3942_v42 }
 0x670   : > { %v4625_v8 = vadd.f32 %v4624_v41, %v4294_v24  ;;  %v3946_v28 = vpop.f32.mrf.mxu0  ;;  %v4341_v25 = vpop.f32.mrf.mxu1 }
 0x672   : > { %v4902_v53 = vadd.f32 %v4901_v2, %v4625_v8 }
 0x674   : > { %5037 = vst.msk [vmem:[%s7376_s29 + $0x140] sm:$0xff] %vm4996_vm3, %v4902_v53  ;;  %4691 = vmatmul.f32.gmra.mxu2 %v8786_v1  ;;  %4972 = vmatmul.f32.gmra.mxu3 %v8788_v58  ;;  %v8799_v1 = vld [vmem:[#allocation126_spill] sm:$0xff] }
 0x675   : > { %v3947_v24 = vadd.f32 %v3946_v28, %v8799_v1 }
 0x677   : > { %v4628_v51 = vpop.f32.mrf.mxu2  ;;  %v4909_v33 = vpop.f32.mrf.mxu3  ;;  %v4336_v8 = vadd.f32 %v4335_v56, %v3947_v24 }
 0x678   : > { %v4629_v30 = vadd.f32 %v4628_v51, %v4300_v40  ;;  %v3951_v45 = vpop.f32.mrf.mxu0  ;;  %v4347_v21 = vpop.f32.mrf.mxu1 }
 0x67a   : > { %v4906_v55 = vadd.f32 %v4905_v61, %v4629_v30 }
 0x67c   : > { %5038 = vst.msk [vmem:[%s7376_s29 + $0x148] sm:$0xff] %vm4996_vm3, %v4906_v55  ;;  %4695 = vmatmul.f32.gmra.mxu2 %v8788_v58  ;;  %4976 = vmatmul.f32.gmra.mxu3 %v8790_v60  ;;  %v3952_v58 = vadd.f32 %v3951_v45, %v8800_v3  ;;  %v8801_v55 = vld [vmem:[#allocation129_spill] sm:$0xff] }
 0x67f   : > { %v4632_v35 = vpop.f32.mrf.mxu2  ;;  %v4913_v44 = vpop.f32.mrf.mxu3 }
 0x680   : > { %v4633_v6 = vadd.f32 %v4632_v35, %v4306_v16  ;;  %v3956_v5 = vpop.f32.mrf.mxu0  ;;  %v4353_v41 = vpop.f32.mrf.mxu1 }
 0x682   : > { %v4910_v0 = vadd.f32 %v4909_v33, %v4633_v6  ;;  %v4342_v33 = vadd.f32 %v4341_v25, %v3952_v58 }
 0x684   : > { %5039 = vst.msk [vmem:[%s7376_s29 + $0x150] sm:$0xff] %vm4996_vm3, %v4910_v0  ;;  %4699 = vmatmul.f32.gmra.mxu2 %v8790_v60  ;;  %4980 = vmatmul.f32.gmra.mxu3 %v8792_v32  ;;  %v3957_v60 = vadd.f32 %v3956_v5, %v8801_v55 }
 0x686   : > { %v4348_v35 = vadd.f32 %v4347_v21, %v3957_v60  ;;  %v8805_v21 = vld [vmem:[#allocation94_spill] sm:$0xff] }
 0x687   : > { %v4636_v4 = vpop.f32.mrf.mxu2  ;;  %v4917_v54 = vpop.f32.mrf.mxu3 }
 0x688   : > { %v4637_v15 = vadd.f32 %v4636_v4, %v4312_v20  ;;  %v3961_v2 = vpop.f32.mrf.mxu0  ;;  %v4359_v51 = vpop.f32.mrf.mxu1 }
 0x689   : > { %v3962_v0 = vadd.f32 %v3961_v2, %v8802_v47 }
 0x68a   : > { %v4914_v52 = vadd.f32 %v4913_v44, %v4637_v15 }
 0x68b   : > { %v4354_v20 = vadd.f32 %v4353_v41, %v3962_v0 }
 0x68c   : > { %5040 = vst.msk [vmem:[%s7376_s29 + $0x158] sm:$0xff] %vm4996_vm3, %v4914_v52  ;;  %4703 = vmatmul.f32.gmra.mxu2 %v8792_v32  ;;  %4984 = vmatmul.f32.gmra.mxu3 %v8794_v62 }
 0x68f   : > { %v4640_v18 = vpop.f32.mrf.mxu2  ;;  %v4921_v59 = vpop.f32.mrf.mxu3 }
 0x690   : > { %v4641_v22 = vadd.f32 %v4640_v18, %v4318_v38  ;;  %v3966_v19 = vpop.f32.mrf.mxu0  ;;  %v4365_v16 = vpop.f32.mrf.mxu1 }
 0x691   : > { %v3967_v26 = vadd.f32 %v3966_v19, %v8803_v27 }
 0x692   : > { %v4918_v10 = vadd.f32 %v4917_v54, %v4641_v22  ;;  %v8804_v22 = vld [vmem:[#allocation128_spill] sm:$0xff] }
 0x693   : > { %v4360_v25 = vadd.f32 %v4359_v51, %v3967_v26 }
 0x694   : > { %5041 = vst.msk [vmem:[%s7376_s29 + $0x160] sm:$0xff] %vm4996_vm3, %v4918_v10  ;;  %4707 = vmatmul.f32.gmra.mxu2 %v8794_v62  ;;  %4988 = vmatmul.f32.gmra.mxu3 %v8796_v23 }
 0x697   : > { %v4644_v17 = vpop.f32.mrf.mxu2  ;;  %v4925_v9 = vpop.f32.mrf.mxu3 }
 0x698   : > { %v4645_v14 = vadd.f32 %v4644_v17, %v4324_v37  ;;  %v3971_v43 = vpop.f32.mrf.mxu0  ;;  %v4371_v45 = vpop.f32.mrf.mxu1 }
 0x699   : > { %v3972_v7 = vadd.f32 %v3971_v43, %v8804_v22 }
 0x69a   : > { %v4922_v48 = vadd.f32 %v4921_v59, %v4645_v14 }
 0x69c   : > { %5042 = vst.msk [vmem:[%s7376_s29 + $0x168] sm:$0xff] %vm4996_vm3, %v4922_v48  ;;  %4711 = vmatmul.f32.gmra.mxu2 %v8796_v23  ;;  %4992 = vmatmul.f32.gmra.mxu3 %v8798_v57  ;;  %v4366_v23 = vadd.f32 %v4365_v16, %v3972_v7 }
 0x69f   : > { %v4648_v34 = vpop.f32.mrf.mxu2  ;;  %v4929_v36 = vpop.f32.mrf.mxu3 }
 0x6a0   : > { %v4649_v39 = vadd.f32 %v4648_v34, %v4330_v11  ;;  %v3976_v56 = vpop.f32.mrf.mxu0  ;;  %v4377_v49 = vpop.f32.mrf.mxu1 }
 0x6a1   : > { %v3977_v14 = vadd.f32 %v3976_v56, %v8805_v21 }
 0x6a2   : > { %v4926_v61 = vadd.f32 %v4925_v9, %v4649_v39 }
 0x6a3   : > { %v4372_v48 = vadd.f32 %v4371_v45, %v3977_v14 }
 0x6a4   : > { %5043 = vst.msk [vmem:[%s7376_s29 + $0x170] sm:$0xff] %vm4996_vm3, %v4926_v61  ;;  %4715 = vmatmul.f32.gmra.mxu2 %v8798_v57 }
 0x6a7   : > { %v4652_v50 = vpop.f32.mrf.mxu2  ;;  %v4933_v63 = vpop.f32.mrf.mxu3 }
 0x6a8   : > { %v4653_v53 = vadd.f32 %v4652_v50, %v4336_v8  ;;  %v3981_v62 = vpop.f32.mrf.mxu0  ;;  %v4383_v42 = vpop.f32.mrf.mxu1  ;;  %v8807_v50 = vld [vmem:[#allocation97_spill] sm:$0xff] }
 0x6aa   : > { %v4930_v40 = vadd.f32 %v4929_v36, %v4653_v53  ;;  %v8806_v36 = vld [vmem:[#allocation131_spill] sm:$0xff] }
 0x6ab   : > { %v3982_v39 = vadd.f32 %v3981_v62, %v8806_v36 }
 0x6ac   : > { %5044 = vst.msk [vmem:[%s7376_s29 + $0x178] sm:$0xff] %vm4996_vm3, %v4930_v40 }
 0x6ad   : > { %v4378_v41 = vadd.f32 %v4377_v49, %v3982_v39 }
 0x6af   : > { %v4656_v30 = vpop.f32.mrf.mxu2  ;;  %v4937_v46 = vpop.f32.mrf.mxu3 }
 0x6b0   : > { %v4657_v13 = vadd.f32 %v4656_v30, %v4342_v33  ;;  %v3986_v10 = vpop.f32.mrf.mxu0  ;;  %v4389_v24 = vpop.f32.mrf.mxu1 }
 0x6b2   : > { %v4934_v28 = vadd.f32 %v4933_v63, %v4657_v13  ;;  %v3987_v63 = vadd.f32 %v3986_v10, %v8807_v50 }
 0x6b4   : > { %5045 = vst.msk [vmem:[%s7376_s29 + $0x180] sm:$0xff] %vm4996_vm3, %v4934_v28  ;;  %v4384_v58 = vadd.f32 %v4383_v42, %v3987_v63 }
 0x6b7   : > { %v4660_v44 = vpop.f32.mrf.mxu2  ;;  %v4941_v6 = vpop.f32.mrf.mxu3 }
 0x6b8   : > { %v4661_v29 = vadd.f32 %v4660_v44, %v4348_v35  ;;  %v3991_v11 = vpop.f32.mrf.mxu0  ;;  %v4395_v30 = vpop.f32.mrf.mxu1  ;;  %v8809_v44 = vld [vmem:[#allocation130_spill] sm:$0xff] }
 0x6ba   : > { %v4938_v32 = vadd.f32 %v4937_v46, %v4661_v29  ;;  %v8808_v46 = vld [vmem:[#allocation13_spill] sm:$0xff] }
 0x6bb   : > { %v3992_v43 = vadd.f32 %v3991_v11, %v8808_v46 }
 0x6bc   : > { %5046 = vst.msk [vmem:[%s7376_s29 + $0x188] sm:$0xff] %vm4996_vm3, %v4938_v32 }
 0x6bd   : > { %v4390_v60 = vadd.f32 %v4389_v24, %v3992_v43 }
 0x6bf   : > { %v4664_v4 = vpop.f32.mrf.mxu2  ;;  %v4945_v54 = vpop.f32.mrf.mxu3 }
 0x6c0   : > { %v4665_v15 = vadd.f32 %v4664_v4, %v4354_v20  ;;  %v3996_v53 = vpop.f32.mrf.mxu0  ;;  %v4401_v47 = vpop.f32.mrf.mxu1 }
 0x6c2   : > { %v4942_v52 = vadd.f32 %v4941_v6, %v4665_v15  ;;  %v3997_v6 = vadd.f32 %v3996_v53, %v8809_v44 }
 0x6c4   : > { %5047 = vst.msk [vmem:[%s7376_s29 + $0x190] sm:$0xff] %vm4996_vm3, %v4942_v52  ;;  %v4396_v56 = vadd.f32 %v4395_v30, %v3997_v6 }
 0x6c7   : > { %v4668_v38 = vpop.f32.mrf.mxu2  ;;  %v4949_v18 = vpop.f32.mrf.mxu3 }
 0x6c8   : > { %v4669_v59 = vadd.f32 %v4668_v38, %v4360_v25  ;;  %v4001_v55 = vpop.f32.mrf.mxu0  ;;  %v4407_v27 = vpop.f32.mrf.mxu1 }
 0x6ca   : > { %v4946_v5 = vadd.f32 %v4945_v54, %v4669_v59  ;;  %v8810_v54 = vld [vmem:[#allocation96_spill] sm:$0xff] }
 0x6cb   : > { %v4002_v45 = vadd.f32 %v4001_v55, %v8810_v54 }
 0x6cc   : > { %5048 = vst.msk [vmem:[%s7376_s29 + $0x198] sm:$0xff] %vm4996_vm3, %v4946_v5 }
 0x6cd   : > { %v4402_v26 = vadd.f32 %v4401_v47, %v4002_v45 }
 0x6cf   : > { %v4672_v37 = vpop.f32.mrf.mxu2  ;;  %v4953_v17 = vpop.f32.mrf.mxu3 }
 0x6d0   : > { %v4673_v9 = vadd.f32 %v4672_v37, %v4366_v23  ;;  %v4006_v0 = vpop.f32.mrf.mxu0  ;;  %v4413_v49 = vpop.f32.mrf.mxu1  ;;  %v8812_v23 = vld [vmem:[#allocation99_spill] sm:$0xff] }
 0x6d2   : > { %v4950_v31 = vadd.f32 %v4949_v18, %v4673_v9  ;;  %v8811_v18 = vld [vmem:[#allocation11_spill] sm:$0xff] }
 0x6d3   : > { %v4007_v59 = vadd.f32 %v4006_v0, %v8811_v18 }
 0x6d4   : > { %5049 = vst.msk [vmem:[%s7376_s29 + $0x1a0] sm:$0xff] %vm4996_vm3, %v4950_v31 }
 0x6d5   : > { %v4408_v7 = vadd.f32 %v4407_v27, %v4007_v59 }
 0x6d7   : > { %v4676_v2 = vpop.f32.mrf.mxu2  ;;  %v4957_v57 = vpop.f32.mrf.mxu3 }
 0x6d8   : > { %v4677_v34 = vadd.f32 %v4676_v2, %v4372_v48  ;;  %v4011_v62 = vpop.f32.mrf.mxu0  ;;  %v4419_v48 = vpop.f32.mrf.mxu1  ;;  %v8813_v2 = vld [vmem:[#allocation9_spill] sm:$0xff] }
 0x6d9   : > { %v4012_v37 = vadd.f32 %v4011_v62, %v8812_v23 }
 0x6da   : > { %v4954_v1 = vadd.f32 %v4953_v17, %v4677_v34 }
 0x6db   : > { %v4414_v14 = vadd.f32 %v4413_v49, %v4012_v37 }
 0x6dc   : > { %5050 = vst.msk [vmem:[%s7376_s29 + $0x1a8] sm:$0xff] %vm4996_vm3, %v4954_v1 }
 0x6df   : > { %v4680_v61 = vpop.f32.mrf.mxu2  ;;  %v4961_v19 = vpop.f32.mrf.mxu3 }
 0x6e0   : > { %v4681_v8 = vadd.f32 %v4680_v61, %v4378_v41  ;;  %v4016_v17 = vpop.f32.mrf.mxu0  ;;  %v8814_v41 = vld [vmem:[#allocation98_spill] sm:$0xff] }
 0x6e2   : > { %v4958_v3 = vadd.f32 %v4957_v57, %v4681_v8  ;;  %v4017_v57 = vadd.f32 %v4016_v17, %v8813_v2  ;;  %v4425_v8 = vpop.f32.mrf.mxu1 }
 0x6e4   : > { %5051 = vst.msk [vmem:[%s7376_s29 + $0x1b0] sm:$0xff] %vm4996_vm3, %v4958_v3  ;;  %v4420_v39 = vadd.f32 %v4419_v48, %v4017_v57 }
 0x6e7   : > { %v4684_v40 = vpop.f32.mrf.mxu2  ;;  %v4965_v51 = vpop.f32.mrf.mxu3 }
 0x6e8   : > { %v4685_v33 = vadd.f32 %v4684_v40, %v4384_v58  ;;  %v4021_v34 = vpop.f32.mrf.mxu0 }
 0x6e9   : > { %v4022_v61 = vadd.f32 %v4021_v34, %v8814_v41 }
 0x6ea   : > { %v4962_v13 = vadd.f32 %v4961_v19, %v4685_v33  ;;  %v4431_v33 = vpop.f32.mrf.mxu1 }
 0x6eb   : > { %v4426_v63 = vadd.f32 %v4425_v8, %v4022_v61 }
 0x6ec   : > { %5052 = vst.msk [vmem:[%s7376_s29 + $0x1b8] sm:$0xff] %vm4996_vm3, %v4962_v13 }
 0x6ef   : > { %v4688_v28 = vpop.f32.mrf.mxu2  ;;  %v4969_v16 = vpop.f32.mrf.mxu3 }
 0x6f0   : > { %v4689_v35 = vadd.f32 %v4688_v28, %v4390_v60  ;;  %v4026_v50 = vpop.f32.mrf.mxu0 }
 0x6f1   : > { %v4027_v40 = vadd.f32 %v4026_v50, %v7360_v12 }
 0x6f2   : > { %v4966_v29 = vadd.f32 %v4965_v51, %v4689_v35 }
 0x6f3   : > { %v4432_v30 = vadd.f32 %v4431_v33, %v4027_v40 }
 0x6f4   : > { %5053 = vst.msk [vmem:[%s7376_s29 + $0x1c0] sm:$0xff] %vm4996_vm3, %v4966_v29 }
 0x6f7   : > { %v4692_v32 = vpop.f32.mrf.mxu2  ;;  %v4973_v20 = vpop.f32.mrf.mxu3 }
 0x6f8   : > { %v4693_v4 = vadd.f32 %v4692_v32, %v4396_v56 }
 0x6fa   : > { %v4970_v15 = vadd.f32 %v4969_v16, %v4693_v4 }
 0x6fc   : > { %5054 = vst.msk [vmem:[%s7376_s29 + $0x1c8] sm:$0xff] %vm4996_vm3, %v4970_v15 }
 0x6ff   : > { %v4696_v52 = vpop.f32.mrf.mxu2  ;;  %v4977_v38 = vpop.f32.mrf.mxu3 }
 0x700   : > { %v4697_v25 = vadd.f32 %v4696_v52, %v4402_v26 }
 0x702   : > { %v4974_v22 = vadd.f32 %v4973_v20, %v4697_v25 }
 0x704   : > { %5055 = vst.msk [vmem:[%s7376_s29 + $0x1d0] sm:$0xff] %vm4996_vm3, %v4974_v22 }
 0x707   : > { %v4700_v5 = vpop.f32.mrf.mxu2  ;;  %v4981_v21 = vpop.f32.mrf.mxu3 }
 0x708   : > { %v4701_v10 = vadd.f32 %v4700_v5, %v4408_v7 }
 0x70a   : > { %v4978_v9 = vadd.f32 %v4977_v38, %v4701_v10 }
 0x70c   : > { %5056 = vst.msk [vmem:[%s7376_s29 + $0x1d8] sm:$0xff] %vm4996_vm3, %v4978_v9 }
 0x70f   : > { %v4704_v31 = vpop.f32.mrf.mxu2  ;;  %v4985_v36 = vpop.f32.mrf.mxu3 }
 0x710   : > { %v4705_v42 = vadd.f32 %v4704_v31, %v4414_v14 }
 0x712   : > { %v4982_v11 = vadd.f32 %v4981_v21, %v4705_v42 }
 0x714   : > { %5057 = vst.msk [vmem:[%s7376_s29 + $0x1e0] sm:$0xff] %vm4996_vm3, %v4982_v11 }
 0x717   : > { %v4708_v1 = vpop.f32.mrf.mxu2  ;;  %v4989_v53 = vpop.f32.mrf.mxu3 }
 0x718   : > { %v4709_v24 = vadd.f32 %v4708_v1, %v4420_v39 }
 0x71a   : > { %v4986_v19 = vadd.f32 %v4985_v36, %v4709_v24 }
 0x71c   : > { %5058 = vst.msk [vmem:[%s7376_s29 + $0x1e8] sm:$0xff] %vm4996_vm3, %v4986_v19 }
 0x71f   : > { %v4712_v3 = vpop.f32.mrf.mxu2  ;;  %v4993_v13 = vpop.f32.mrf.mxu3 }
 0x720   : > { %v4713_v58 = vadd.f32 %v4712_v3, %v4426_v63 }
 0x722   : > { %v4990_v51 = vadd.f32 %v4989_v53, %v4713_v58 }
 0x724   : > { %5059 = vst.msk [vmem:[%s7376_s29 + $0x1f0] sm:$0xff] %vm4996_vm3, %v4990_v51 }
 0x727   : > { %v4716_v46 = vpop.f32.mrf.mxu2 }
 0x728   : > { %v4717_v43 = vadd.f32 %v4716_v46, %v4432_v30 }
 0x72a   : > { %v4994_v55 = vadd.f32 %v4993_v13, %v4717_v43 }
 0x72c   : > { %5060 = vst.msk [vmem:[%s7376_s29 + $0x1f8] sm:$0xff] %vm4996_vm3, %v4994_v55 }
 0x72d PF: > { %s15_s18 = sadd.s32 1, %s5149_s18  }
 0x72e   : > { %p12_p4 = scmp.ge.s32.totalorder %s15_s18, 4  }
 0x730   :  { %14 = sbr.rel (!%p12_p4) target bundleno = 1 (0x1), region = 70 }

</bundles_post_ra>
